<compile_context>
chip_gen: v5e
topology: v5e:2x2
jax: 0.10.0
libtpu: 0.0.40
codegen_flags: <defaults>
</compile_context>

<pallas_src>
import functools
import math

import jax
import jax.numpy as jnp
import numpy as np
from jax import lax
from jax.experimental import pallas as pl
from jax.experimental.pallas import tpu as pltpu

_NEG_BIG = -1e30          # large-negative instead of -inf (no NaN edge cases)


def _vmem_limit_bytes():
    """Never request more than ~3/4 of physical VMEM (v7x has only 64 MiB / TC)."""
    try:
        cap = int(pltpu.get_tpu_info().vmem_capacity_bytes)
    except Exception:
        cap = 64 * 1024 * 1024
    return min((cap * 3) // 4, 96 * 1024 * 1024)


def _fit_tile(dim, target, align):
    """Largest tile <= target that divides `dim` and is a multiple of `align`; else full dim."""
    if dim <= target:
        return dim
    t = (target // align) * align
    while t >= align:
        if dim % t == 0:
            return t
        t -= align
    return dim


# ----------------------------------------------------------------------------
# Tiled matmuls (plain / fused-residual / fused-RoPE epilogue)
# ----------------------------------------------------------------------------
def _matmul_kernel(x_ref, w_ref, o_ref, acc_ref):
    @pl.when(pl.program_id(2) == 0)
    def _init():
        acc_ref[...] = jnp.zeros_like(acc_ref)

    acc_ref[...] += jnp.dot(x_ref[...], w_ref[...], preferred_element_type=jnp.float32)

    @pl.when(pl.program_id(2) == pl.num_programs(2) - 1)
    def _store():
        o_ref[...] = acc_ref[...].astype(o_ref.dtype)


def _matmul_residual_kernel(x_ref, w_ref, res_ref, o_ref, acc_ref):
    @pl.when(pl.program_id(2) == 0)
    def _init():
        acc_ref[...] = jnp.zeros_like(acc_ref)

    acc_ref[...] += jnp.dot(x_ref[...], w_ref[...], preferred_element_type=jnp.float32)

    @pl.when(pl.program_id(2) == pl.num_programs(2) - 1)
    def _store():
        # fused residual add: out = residual + x @ w  (f32 math)
        o_ref[...] = (acc_ref[...] + res_ref[...].astype(jnp.float32)).astype(o_ref.dtype)


def _matmul_rope_kernel(x_ref, w_ref, cos_ref, sin_ref, o_ref, acc_ref, *, head_dim):
    @pl.when(pl.program_id(2) == 0)
    def _init():
        acc_ref[...] = jnp.zeros_like(acc_ref)

    acc_ref[...] += jnp.dot(x_ref[...], w_ref[...], preferred_element_type=jnp.float32)

    @pl.when(pl.program_id(2) == pl.num_programs(2) - 1)
    def _store():
        # RoPE epilogue on the half-split per-head column layout ([real | imag]):
        # weight columns were pre-permuted so no stride-2 lane gathers are needed.
        acc = acc_ref[...]                       # (tm, tn) f32
        c = cos_ref[...]                         # (tm, head_dim//2) f32
        s = sin_ref[...]
        half = head_dim // 2
        tn = acc.shape[-1]
        for base in range(0, tn, head_dim):      # static unroll over heads in this tile
            xr = acc[:, base:base + half]
            xi = acc[:, base + half:base + head_dim]
            o_ref[:, base:base + half] = (xr * c - xi * s).astype(o_ref.dtype)
            o_ref[:, base + half:base + head_dim] = (xr * s + xi * c).astype(o_ref.dtype)


def pallas_linear(x, w, *, out_dtype=None, residual=None, tm=512, tn=512, tk=512):
    M, K = x.shape
    K2, N = w.shape
    assert K == K2
    out_dtype = out_dtype or x.dtype
    tm = _fit_tile(M, tm, 16)       # bf16 native sublane tile is 16
    tn = _fit_tile(N, tn, 128)
    tk = _fit_tile(K, tk, 128)
    grid = (M // tm, N // tn, K // tk)

    in_specs = [
        pl.BlockSpec((tm, tk), lambda i, j, k: (i, k)),
        pl.BlockSpec((tk, tn), lambda i, j, k: (k, j)),
    ]
    args = [x, w]
    if residual is not None:
        assert residual.shape == (M, N)
        in_specs.append(pl.BlockSpec((tm, tn), lambda i, j, k: (i, j)))
        args.append(residual)
        kernel = _matmul_residual_kernel
    else:
        kernel = _matmul_kernel

    return pl.pallas_call(
        kernel,
        out_shape=jax.ShapeDtypeStruct((M, N), out_dtype),
        grid=grid,
        in_specs=in_specs,
        out_specs=pl.BlockSpec((tm, tn), lambda i, j, k: (i, j)),
        scratch_shapes=[pltpu.VMEM((tm, tn), jnp.float32)],
        compiler_params=pltpu.CompilerParams(
            dimension_semantics=("parallel", "parallel", "arbitrary"),
            vmem_limit_bytes=_vmem_limit_bytes(),
        ),
    )(*args)


def pallas_linear_rope(x, w, cos_full, sin_full, *, head_dim, out_dtype,
                       tm=512, tn=512, tk=512):
    M, K = x.shape
    K2, N = w.shape
    assert K == K2 and N % head_dim == 0
    half = head_dim // 2
    assert cos_full.shape == (M, half) and sin_full.shape == (M, half)
    tm = _fit_tile(M, tm, 16)
    tn = _fit_tile(N, tn, math.lcm(128, head_dim))   # keep tile boundaries head-aligned
    tk = _fit_tile(K, tk, 128)
    assert tn % head_dim == 0
    grid = (M // tm, N // tn, K // tk)

    return pl.pallas_call(
        functools.partial(_matmul_rope_kernel, head_dim=head_dim),
        out_shape=jax.ShapeDtypeStruct((M, N), out_dtype),
        grid=grid,
        in_specs=[
            pl.BlockSpec((tm, tk), lambda i, j, k: (i, k)),
            pl.BlockSpec((tk, tn), lambda i, j, k: (k, j)),
            pl.BlockSpec((tm, half), lambda i, j, k: (i, 0)),
            pl.BlockSpec((tm, half), lambda i, j, k: (i, 0)),
        ],
        out_specs=pl.BlockSpec((tm, tn), lambda i, j, k: (i, j)),
        scratch_shapes=[pltpu.VMEM((tm, tn), jnp.float32)],
        compiler_params=pltpu.CompilerParams(
            dimension_semantics=("parallel", "parallel", "arbitrary"),
            vmem_limit_bytes=_vmem_limit_bytes(),
        ),
    )(x, w, cos_full, sin_full)


# ----------------------------------------------------------------------------
# RMSNorm
# ----------------------------------------------------------------------------
def _rmsnorm_kernel(x_ref, w_ref, o_ref, *, eps):
    x = x_ref[...].astype(jnp.float32)
    ms = jnp.mean(x * x, axis=-1, keepdims=True)
    inv = lax.rsqrt(ms + eps)
    o_ref[...] = (x * inv * w_ref[...].astype(jnp.float32)).astype(o_ref.dtype)


def pallas_rmsnorm(x, w, *, eps, out_dtype):
    M, dim = x.shape
    tm = _fit_tile(M, 512, 16)
    w2 = w.reshape(1, dim)
    return pl.pallas_call(
        functools.partial(_rmsnorm_kernel, eps=eps),
        out_shape=jax.ShapeDtypeStruct((M, dim), out_dtype),
        grid=(M // tm,),
        in_specs=[
            pl.BlockSpec((tm, dim), lambda i: (i, 0)),
            pl.BlockSpec((1, dim), lambda i: (0, 0)),
        ],
        out_specs=pl.BlockSpec((tm, dim), lambda i: (i, 0)),
        compiler_params=pltpu.CompilerParams(
            dimension_semantics=("parallel",),
            vmem_limit_bytes=_vmem_limit_bytes(),
        ),
    )(x, w2)


# ----------------------------------------------------------------------------
# Fused SwiGLU gate: silu(x @ w1) * (x @ w3)
# ----------------------------------------------------------------------------
def _swiglu_kernel(x_ref, w1_ref, w3_ref, o_ref, acc1_ref, acc3_ref):
    @pl.when(pl.program_id(2) == 0)
    def _init():
        acc1_ref[...] = jnp.zeros_like(acc1_ref)
        acc3_ref[...] = jnp.zeros_like(acc3_ref)

    x = x_ref[...]
    acc1_ref[...] += jnp.dot(x, w1_ref[...], preferred_element_type=jnp.float32)
    acc3_ref[...] += jnp.dot(x, w3_ref[...], preferred_element_type=jnp.float32)

    @pl.when(pl.program_id(2) == pl.num_programs(2) - 1)
    def _store():
        h1 = acc1_ref[...]
        sig = 1.0 / (1.0 + jnp.exp(-h1))       # f32 elementwise (v5e-safe)
        o_ref[...] = (h1 * sig * acc3_ref[...]).astype(o_ref.dtype)


def pallas_swiglu(x, w1, w3, *, out_dtype, tm=512, tn=512, tk=512):
    M, K = x.shape
    K2, H = w1.shape
    assert K == K2 and w3.shape == (K, H)
    tm = _fit_tile(M, tm, 16)
    tn = _fit_tile(H, tn, 128)
    tk = _fit_tile(K, tk, 128)
    grid = (M // tm, H // tn, K // tk)
    return pl.pallas_call(
        _swiglu_kernel,
        out_shape=jax.ShapeDtypeStruct((M, H), out_dtype),
        grid=grid,
        in_specs=[
            pl.BlockSpec((tm, tk), lambda i, j, k: (i, k)),
            pl.BlockSpec((tk, tn), lambda i, j, k: (k, j)),
            pl.BlockSpec((tk, tn), lambda i, j, k: (k, j)),
        ],
        out_specs=pl.BlockSpec((tm, tn), lambda i, j, k: (i, j)),
        scratch_shapes=[pltpu.VMEM((tm, tn), jnp.float32),
                        pltpu.VMEM((tm, tn), jnp.float32)],
        compiler_params=pltpu.CompilerParams(
            dimension_semantics=("parallel", "parallel", "arbitrary"),
            vmem_limit_bytes=_vmem_limit_bytes(),
        ),
    )(x, w1, w3)


# ----------------------------------------------------------------------------
# Flash-style causal GQA attention, lower-triangular schedule via scalar prefetch
# ----------------------------------------------------------------------------
def _flash_attn_kernel(qi_tab, ki_tab, q_ref, k_ref, v_ref, o_ref,
                       m_scr, l_scr, acc_scr, *,
                       n_heads, n_kv_heads, head_dim, tq, tk):
    t = pl.program_id(1)
    qi = qi_tab[t]
    ki = ki_tab[t]
    n_rep = n_heads // n_kv_heads
    D = head_dim

    @pl.when(ki == 0)
    def _init():
        m_scr[...] = jnp.full_like(m_scr, _NEG_BIG)
        l_scr[...] = jnp.zeros_like(l_scr)
        acc_scr[...] = jnp.zeros_like(acc_scr)

    def _update(masked):
        q = q_ref[0]                                   # (tq, Hq*D)  pre-scaled, pre-RoPE'd
        k = k_ref[0]                                   # (tk, Hkv*D) pre-RoPE'd
        v = v_ref[0]                                   # (tk, Hkv*D)
        if masked:
            # diagonal tile only: with tq == tk the mask depends on in-tile offsets only
            row = lax.broadcasted_iota(jnp.int32, (tq, tk), 0)
            col = lax.broadcasted_iota(jnp.int32, (tq, tk), 1)
            keep = col <= row
        for h in range(n_heads):                       # static unroll over query heads
            g = h // n_rep                             # GQA: shared kv head, no HBM repeat
            qh = q[:, h * D:(h + 1) * D]               # (tq, D)
            kh = k[:, g * D:(g + 1) * D]               # (tk, D)
            vh = v[:, g * D:(g + 1) * D]               # (tk, D)

            s = lax.dot_general(qh, kh, (((1,), (1,)), ((), ())),
                                preferred_element_type=jnp.float32)   # (tq, tk)
            if masked:
                s = jnp.where(keep, s, _NEG_BIG)

            m_old = m_scr[:, h:h + 1]                  # per-head slice loads/stores:
            l_old = l_scr[:, h:h + 1]                  # bounded vreg live ranges
            a_old = acc_scr[:, h * D:(h + 1) * D]

            m_new = jnp.maximum(m_old, jnp.max(s, axis=-1, keepdims=True))
            alpha = jnp.exp(m_old - m_new)
            p = jnp.exp(s - m_new)                     # f32 softmax math
            l_new = alpha * l_old + jnp.sum(p, axis=-1, keepdims=True)
            a_new = alpha * a_old + jnp.dot(p.astype(vh.dtype), vh,
                                            preferred_element_type=jnp.float32)
            m_scr[:, h:h + 1] = m_new
            l_scr[:, h:h + 1] = l_new
            acc_scr[:, h * D:(h + 1) * D] = a_new

    @pl.when(ki < qi)
    def _off_diag():
        _update(masked=False)

    @pl.when(ki == qi)
    def _diag_and_finalize():
        _update(masked=True)
        for h in range(n_heads):
            inv_l = pl.reciprocal(l_scr[:, h:h + 1], approx=True)     # EUP slot
            o_ref[0, :, h * D:(h + 1) * D] = (
                acc_scr[:, h * D:(h + 1) * D] * inv_l).astype(o_ref.dtype)


def pallas_flash_attention(q, k, v, *, n_heads, n_kv_heads, head_dim, tq_target=256):
    # q: (B, S, n_heads*head_dim), k/v: (B, S, n_kv_heads*head_dim) -- natural projection
    # layout (half-split per head for q/k, same permutation on both -> scores unchanged).
    B, S, QD = q.shape
    KD = k.shape[-1]
    assert QD == n_heads * head_dim and KD == n_kv_heads * head_dim
    assert n_heads % n_kv_heads == 0
    tq = _fit_tile(S, tq_target, 16)
    tk = tq
    n_t = S // tq

    # Lower-triangular (qi, ki) schedule: fully-masked KV tiles are never fetched nor
    # stepped through; the diagonal step (ki == qi) is the last one per q block, so the
    # output block is finalized right before its writeback.
    qi_list, ki_list = [], []
    for qi in range(n_t):
        for ki in range(qi + 1):
            qi_list.append(qi)
            ki_list.append(ki)
    qi_tab = jnp.asarray(qi_list, dtype=jnp.int32)
    ki_tab = jnp.asarray(ki_list, dtype=jnp.int32)
    n_steps = len(qi_list)

    kernel = functools.partial(
        _flash_attn_kernel, n_heads=n_heads, n_kv_heads=n_kv_heads,
        head_dim=head_dim, tq=tq, tk=tk)

    return pl.pallas_call(
        kernel,
        out_shape=jax.ShapeDtypeStruct((B, S, QD), q.dtype),
        grid_spec=pltpu.PrefetchScalarGridSpec(
            num_scalar_prefetch=2,
            grid=(B, n_steps),
            in_specs=[
                pl.BlockSpec((1, tq, QD), lambda b, t, qs, ks: (b, qs[t], 0)),
                pl.BlockSpec((1, tk, KD), lambda b, t, qs, ks: (b, ks[t], 0)),
                pl.BlockSpec((1, tk, KD), lambda b, t, qs, ks: (b, ks[t], 0)),
            ],
            out_specs=pl.BlockSpec((1, tq, QD), lambda b, t, qs, ks: (b, qs[t], 0)),
            scratch_shapes=[
                pltpu.VMEM((tq, n_heads), jnp.float32),   # running max  m
                pltpu.VMEM((tq, n_heads), jnp.float32),   # running sum  l
                pltpu.VMEM((tq, QD), jnp.float32),        # running acc
            ],
        ),
        compiler_params=pltpu.CompilerParams(
            dimension_semantics=("parallel", "arbitrary"),
            vmem_limit_bytes=_vmem_limit_bytes(),
        ),
    )(qi_tab, ki_tab, q, k, v)


# ----------------------------------------------------------------------------
# Weight preprocessing helpers (trace-time, tiny)
# ----------------------------------------------------------------------------
def _half_split_perm(n_cols, head_dim):
    """Permutation turning per-head interleaved (r0,i0,r1,i1,...) columns into
    half-split [r0..r_{D/2-1}, i0..i_{D/2-1}] columns."""
    half = head_dim // 2
    perm = []
    for h in range(n_cols // head_dim):
        base = h * head_dim
        perm.extend(base + 2 * i for i in range(half))
        perm.extend(base + 2 * i + 1 for i in range(half))
    return np.asarray(perm, dtype=np.int32)


# Pure-JAX interleaved RoPE (matches torch.view_as_complex semantics) -- used by the
# reference only; the Pallas path fuses RoPE into the wq/wk matmul epilogue.
def apply_rope_jax(x, cos, sin):
    xf = x.astype(jnp.float32)
    xr = xf[..., 0::2]
    xi = xf[..., 1::2]
    c = cos[None, :, None, :]
    s = sin[None, :, None, :]
    out_r = xr * c - xi * s
    out_i = xr * s + xi * c
    return jnp.stack([out_r, out_i], axis=-1).reshape(x.shape)


# ----------------------------------------------------------------------------
# Full BeruBlock forward
# ----------------------------------------------------------------------------
def beru_block_forward(x, cos, sin, params, *, n_heads, n_kv_heads,
                       norm_eps=1e-6, compute_dtype=jnp.bfloat16):
    B, S, dim = x.shape
    assert n_heads % n_kv_heads == 0
    head_dim = dim // n_heads
    scale = 1.0 / float(head_dim) ** 0.5

    x2 = x.reshape(B * S, dim)                                   # f32 residual stream

    # Trace-time weight preprocessing:
    #  * fold 1/sqrt(head_dim) into wq (commutes with the linear RoPE rotation)
    #  * permute wq/wk columns to half-split per-head layout for the fused RoPE epilogue
    q_perm = _half_split_perm(n_heads * head_dim, head_dim)
    k_perm = _half_split_perm(n_kv_heads * head_dim, head_dim)
    wq_p = (params["wq"].astype(jnp.float32) * scale)[:, q_perm].astype(compute_dtype)
    wk_p = params["wk"].astype(jnp.float32)[:, k_perm].astype(compute_dtype)

    cos_full = jnp.tile(cos.astype(jnp.float32), (B, 1))         # (B*S, head_dim//2)
    sin_full = jnp.tile(sin.astype(jnp.float32), (B, 1))

    # ---- attention branch ----
    h_norm = pallas_rmsnorm(x2, params["attn_norm"], eps=norm_eps, out_dtype=compute_dtype)
    xq = pallas_linear_rope(h_norm, wq_p, cos_full, sin_full,
                            head_dim=head_dim, out_dtype=compute_dtype)
    xk = pallas_linear_rope(h_norm, wk_p, cos_full, sin_full,
                            head_dim=head_dim, out_dtype=compute_dtype)
    xv = pallas_linear(h_norm, params["wv"], out_dtype=compute_dtype)

    attn = pallas_flash_attention(
        xq.reshape(B, S, n_heads * head_dim),
        xk.reshape(B, S, n_kv_heads * head_dim),
        xv.reshape(B, S, n_kv_heads * head_dim),
        n_heads=n_heads, n_kv_heads=n_kv_heads, head_dim=head_dim)

    # wo projection with fused residual add: h = x + attn @ wo    (f32)
    h = pallas_linear(attn.reshape(B * S, n_heads * head_dim), params["wo"],
                      out_dtype=jnp.float32, residual=x2)

    # ---- FFN branch ----
    f_norm = pallas_rmsnorm(h, params["ffn_norm"], eps=norm_eps, out_dtype=compute_dtype)
    gate = pallas_swiglu(f_norm, params["w1"], params["w3"], out_dtype=compute_dtype)
    # w2 projection with fused residual add: out = h + gate @ w2  (f32)
    out = pallas_linear(gate, params["w2"], out_dtype=jnp.float32, residual=h)
    return out.reshape(B, S, dim)


# ----------------------------------------------------------------------------
# Pure-JAX reference (f32 math on the same bf16 weights)
# ----------------------------------------------------------------------------
def beru_block_reference(x, cos, sin, params, *, n_heads, n_kv_heads, norm_eps=1e-6):
    B, S, dim = x.shape
    head_dim = dim // n_heads
    n_rep = n_heads // n_kv_heads
    f32 = lambda a: a.astype(jnp.float32)

    def rmsnorm(v, w):
        ms = jnp.mean(v * v, axis=-1, keepdims=True)
        return v * jax.lax.rsqrt(ms + norm_eps) * f32(w)

    h_norm = rmsnorm(x, params["attn_norm"])
    xq = (h_norm @ f32(params["wq"])).reshape(B, S, n_heads, head_dim)
    xk = (h_norm @ f32(params["wk"])).reshape(B, S, n_kv_heads, head_dim)
    xv = (h_norm @ f32(params["wv"])).reshape(B, S, n_kv_heads, head_dim)
    xq = apply_rope_jax(xq, cos, sin)
    xk = apply_rope_jax(xk, cos, sin)
    xk = jnp.repeat(xk, n_rep, axis=2)
    xv = jnp.repeat(xv, n_rep, axis=2)

    q = xq.transpose(0, 2, 1, 3)
    k = xk.transpose(0, 2, 1, 3)
    v = xv.transpose(0, 2, 1, 3)
    scores = jnp.einsum("bhqd,bhkd->bhqk", q, k) / (head_dim ** 0.5)
    mask = jnp.triu(jnp.full((S, S), -jnp.inf), k=1)
    scores = scores + mask[None, None]
    probs = jax.nn.softmax(scores, axis=-1)
    attn = jnp.einsum("bhqk,bhkd->bhqd", probs, v)
    attn = attn.transpose(0, 2, 1, 3).reshape(B, S, n_heads * head_dim)
    h = x + attn @ f32(params["wo"])

    f_norm = rmsnorm(h, params["ffn_norm"])
    h1 = f_norm @ f32(params["w1"])
    h3 = f_norm @ f32(params["w3"])
    gate = h1 * jax.nn.sigmoid(h1) * h3
    return h + gate @ f32(params["w2"])


# ----------------------------------------------------------------------------
# Main
# ----------------------------------------------------------------------------
if __name__ == "__main__":
    # Small config consistent with the module: dim=32, n_heads=4, n_kv_heads=2
    B, S = 2, 8
    dim, n_heads, n_kv_heads = 32, 4, 2
    head_dim = dim // n_heads
    multiple_of = 64
    hidden_dim = multiple_of * ((int(2 * 4 * dim / 3) + multiple_of - 1) // multiple_of)  # 128
    norm_eps = 1e-6

    key = jax.random.PRNGKey(0)
    kx, kq, kk, kv, ko, k1, k2, k3, kn1, kn2 = jax.random.split(key, 10)

    x = jax.random.normal(kx, (B, S, dim), dtype=jnp.float32)

    wdt = jnp.bfloat16   # MXU-native weight dtype (f32 accumulation in-kernel)
    params = {
        "attn_norm": (1.0 + 0.1 * jax.random.normal(kn1, (dim,))).astype(jnp.float32),
        "ffn_norm": (1.0 + 0.1 * jax.random.normal(kn2, (dim,))).astype(jnp.float32),
        "wq": (0.02 * jax.random.normal(kq, (dim, n_heads * head_dim))).astype(wdt),
        "wk": (0.02 * jax.random.normal(kk, (dim, n_kv_heads * head_dim))).astype(wdt),
        "wv": (0.02 * jax.random.normal(kv, (dim, n_kv_heads * head_dim))).astype(wdt),
        "wo": (0.02 * jax.random.normal(ko, (n_heads * head_dim, dim))).astype(wdt),
        "w1": (0.02 * jax.random.normal(k1, (dim, hidden_dim))).astype(wdt),
        "w3": (0.02 * jax.random.normal(k3, (dim, hidden_dim))).astype(wdt),
        "w2": (0.02 * jax.random.normal(k2, (hidden_dim, dim))).astype(wdt),
    }

    # pos_cis = exp(i * t * freqs), stored as (cos, sin) of shape (S, head_dim//2).
    freqs = 1.0 / (10000.0 ** (jnp.arange(0, head_dim, 2, dtype=jnp.float32) / head_dim))
    t = jnp.arange(S, dtype=jnp.float32)
    angles = jnp.outer(t, freqs)
    cos, sin = jnp.cos(angles), jnp.sin(angles)

    fwd = jax.jit(functools.partial(
        beru_block_forward, n_heads=n_heads, n_kv_heads=n_kv_heads, norm_eps=norm_eps))
    out = jax.block_until_ready(fwd(x, cos, sin, params))

    ref = beru_block_reference(x, cos, sin, params,
                               n_heads=n_heads, n_kv_heads=n_kv_heads, norm_eps=norm_eps)
    np.testing.assert_allclose(np.asarray(out, dtype=np.float32),
                               np.asarray(ref, dtype=np.float32),
                               atol=1e-2, rtol=1e-2)

    assert out.shape == (B, S, dim)
    print("KERNEL_OK")
</pallas_src>

<mosaic_0001>
module attributes {stable_mosaic.version = 11 : i64} {
  func.func @_rmsnorm_kernel(%arg0: i32, %arg1: memref<16x32xf32, #tpu.memory_space<vmem>>, %arg2: memref<1x32xf32, #tpu.memory_space<vmem>>, %arg3: memref<16x32xbf16, #tpu.memory_space<vmem>>) attributes {dimension_semantics = [#tpu.dimension_semantics<parallel>], iteration_bounds = array<i64: 1>, scalar_prefetch = 0 : i64, scratch_operands = 0 : i64, tpu.core_type = #tpu.core_type<tc>, window_params = [{transform_indices = @transform_0, window_bounds = array<i64: 16, 32>}, {pipeline_mode = #tpu.pipeline_mode<synchronous>, transform_indices = @transform_1, window_bounds = array<i64: 1, 32>}, {transform_indices = @transform_2, window_bounds = array<i64: 16, 32>}]} {
    %c0 = arith.constant 0 : index
    %c0_0 = arith.constant 0 : index
    %0 = vector.load %arg1[%c0, %c0_0] : memref<16x32xf32, #tpu.memory_space<vmem>>, vector<16x32xf32>
    %1 = arith.mulf %0, %0 : vector<16x32xf32>
    %cst = arith.constant dense<0.000000e+00> : vector<16xf32>
    %2 = vector.multi_reduction <add>, %1, %cst [1] : vector<16x32xf32> to vector<16xf32>
    %3 = vector.shape_cast %2 : vector<16xf32> to vector<16x1xf32>
    %cst_1 = arith.constant 3.200000e+01 : f32
    %4 = vector.broadcast %cst_1 : f32 to vector<16x1xf32>
    %5 = arith.divf %3, %4 : vector<16x1xf32>
    %cst_2 = arith.constant 9.99999997E-7 : f32
    %6 = vector.broadcast %cst_2 : f32 to vector<16x1xf32>
    %7 = arith.addf %5, %6 : vector<16x1xf32>
    %8 = math.rsqrt %7 : vector<16x1xf32>
    %9 = vector.broadcast %8 : vector<16x1xf32> to vector<16x32xf32>
    %10 = arith.mulf %0, %9 : vector<16x32xf32>
    %c0_3 = arith.constant 0 : index
    %c0_4 = arith.constant 0 : index
    %11 = vector.load %arg2[%c0_3, %c0_4] : memref<1x32xf32, #tpu.memory_space<vmem>>, vector<1x32xf32>
    %12 = vector.broadcast %11 : vector<1x32xf32> to vector<16x32xf32>
    %13 = arith.mulf %10, %12 : vector<16x32xf32>
    %14 = arith.truncf %13 : vector<16x32xf32> to vector<16x32xbf16>
    %c0_5 = arith.constant 0 : index
    %c0_6 = arith.constant 0 : index
    %15 = vector.load %arg3[%c0_5, %c0_6] : memref<16x32xbf16, #tpu.memory_space<vmem>>, vector<16x32xbf16>
    tpu.vector_store %arg3[%c0_5, %c0_6], %14 {strides = array<i32>} : memref<16x32xbf16, #tpu.memory_space<vmem>>, vector<16x32xbf16>,
    return
  }
  func.func @transform_0(%arg0: i32) -> (i32, i32) {
    %c0_i32 = arith.constant 0 : i32
    %c0_i32_0 = arith.constant 0 : i32
    return %arg0, %c0_i32 : i32, i32
  }
  func.func @transform_1(%arg0: i32) -> (i32, i32) {
    %c0_i32 = arith.constant 0 : i32
    %c0_i32_0 = arith.constant 0 : i32
    %c0_i32_1 = arith.constant 0 : i32
    return %c0_i32, %c0_i32_0 : i32, i32
  }
  func.func @transform_2(%arg0: i32) -> (i32, i32) {
    %c0_i32 = arith.constant 0 : i32
    %c0_i32_0 = arith.constant 0 : i32
    return %arg0, %c0_i32 : i32, i32
  }
}

module attributes {stable_mosaic.version = 11 : i64} {
  func.func @_matmul_kernel(%arg0: i32, %arg1: i32, %arg2: i32, %arg3: memref<16x32xbf16, #tpu.memory_space<vmem>>, %arg4: memref<32x16xbf16, #tpu.memory_space<vmem>>, %arg5: memref<16x16xbf16, #tpu.memory_space<vmem>>, %arg6: memref<16x16xf32, #tpu.memory_space<vmem>>) attributes {dimension_semantics = [#tpu.dimension_semantics<parallel>, #tpu.dimension_semantics<parallel>, #tpu.dimension_semantics<arbitrary>], iteration_bounds = array<i64: 1, 1, 1>, scalar_prefetch = 0 : i64, scratch_operands = 1 : i64, tpu.core_type = #tpu.core_type<tc>, window_params = [{transform_indices = @transform_0, window_bounds = array<i64: 16, 32>}, {transform_indices = @transform_1, window_bounds = array<i64: 32, 16>}, {transform_indices = @transform_2, window_bounds = array<i64: 16, 16>}]} {
    %c0_i32 = arith.constant 0 : i32
    %0 = arith.cmpi eq, %arg2, %c0_i32 : i32
    %1 = arith.extui %0 : i1 to i32
    %c0_i32_0 = arith.constant 0 : i32
    %2 = arith.cmpi ne, %1, %c0_i32_0 : i32
    scf.if %2 {
      %cst_10 = arith.constant 0.000000e+00 : f32
      %12 = vector.broadcast %cst_10 : f32 to vector<16x16xf32>
      %c0_11 = arith.constant 0 : index
      %c0_12 = arith.constant 0 : index
      %13 = vector.load %arg6[%c0_11, %c0_12] : memref<16x16xf32, #tpu.memory_space<vmem>>, vector<16x16xf32>
      tpu.vector_store %arg6[%c0_11, %c0_12], %12 {strides = array<i32>} : memref<16x16xf32, #tpu.memory_space<vmem>>, vector<16x16xf32>,
    } else {
    }
    %c0 = arith.constant 0 : index
    %c0_1 = arith.constant 0 : index
    %3 = vector.load %arg6[%c0, %c0_1] : memref<16x16xf32, #tpu.memory_space<vmem>>, vector<16x16xf32>
    %c0_2 = arith.constant 0 : index
    %c0_3 = arith.constant 0 : index
    %4 = vector.load %arg3[%c0_2, %c0_3] : memref<16x32xbf16, #tpu.memory_space<vmem>>, vector<16x32xbf16>
    %c0_4 = arith.constant 0 : index
    %c0_5 = arith.constant 0 : index
    %5 = vector.load %arg4[%c0_4, %c0_5] : memref<32x16xbf16, #tpu.memory_space<vmem>>, vector<32x16xbf16>
    %cst = arith.constant dense<0.000000e+00> : vector<16x16xf32>
    %6 = tpu.matmul %4, %5, %cst {dimension_numbers = #tpu.dot_dimension_numbers<[1], [0], [0], [1], [0, 0, 1, 1], [], []>} : vector<16x32xbf16>, vector<32x16xbf16>, vector<16x16xf32> -> vector<16x16xf32>
    %7 = arith.addf %3, %6 : vector<16x16xf32>
    %c0_6 = arith.constant 0 : index
    %c0_7 = arith.constant 0 : index
    %8 = vector.load %arg6[%c0_6, %c0_7] : memref<16x16xf32, #tpu.memory_space<vmem>>, vector<16x16xf32>
    tpu.vector_store %arg6[%c0_6, %c0_7], %7 {strides = array<i32>} : memref<16x16xf32, #tpu.memory_space<vmem>>, vector<16x16xf32>,
    %c0_i32_8 = arith.constant 0 : i32
    %9 = arith.cmpi eq, %arg2, %c0_i32_8 : i32
    %10 = arith.extui %9 : i1 to i32
    %c0_i32_9 = arith.constant 0 : i32
    %11 = arith.cmpi ne, %10, %c0_i32_9 : i32
    scf.if %11 {
      %c0_10 = arith.constant 0 : index
      %c0_11 = arith.constant 0 : index
      %12 = vector.load %arg6[%c0_10, %c0_11] : memref<16x16xf32, #tpu.memory_space<vmem>>, vector<16x16xf32>
      %13 = arith.truncf %12 : vector<16x16xf32> to vector<16x16xbf16>
      %c0_12 = arith.constant 0 : index
      %c0_13 = arith.constant 0 : index
      %14 = vector.load %arg5[%c0_12, %c0_13] : memref<16x16xbf16, #tpu.memory_space<vmem>>, vector<16x16xbf16>
      tpu.vector_store %arg5[%c0_12, %c0_13], %13 {strides = array<i32>} : memref<16x16xbf16, #tpu.memory_space<vmem>>, vector<16x16xbf16>,
    } else {
    }
    return
  }
  func.func @transform_0(%arg0: i32, %arg1: i32, %arg2: i32) -> (i32, i32) {
    %c0_i32 = arith.constant 0 : i32
    return %arg0, %arg2 : i32, i32
  }
  func.func @transform_1(%arg0: i32, %arg1: i32, %arg2: i32) -> (i32, i32) {
    %c0_i32 = arith.constant 0 : i32
    return %arg2, %arg1 : i32, i32
  }
  func.func @transform_2(%arg0: i32, %arg1: i32, %arg2: i32) -> (i32, i32) {
    %c0_i32 = arith.constant 0 : i32
    return %arg0, %arg1 : i32, i32
  }
}

module attributes {stable_mosaic.version = 11 : i64} {
  func.func @_matmul_rope_kernel(%arg0: i32, %arg1: i32, %arg2: i32, %arg3: memref<16x32xbf16, #tpu.memory_space<vmem>>, %arg4: memref<32x16xbf16, #tpu.memory_space<vmem>>, %arg5: memref<16x4xf32, #tpu.memory_space<vmem>>, %arg6: memref<16x4xf32, #tpu.memory_space<vmem>>, %arg7: memref<16x16xbf16, #tpu.memory_space<vmem>>, %arg8: memref<16x16xf32, #tpu.memory_space<vmem>>) attributes {dimension_semantics = [#tpu.dimension_semantics<parallel>, #tpu.dimension_semantics<parallel>, #tpu.dimension_semantics<arbitrary>], iteration_bounds = array<i64: 1, 1, 1>, scalar_prefetch = 0 : i64, scratch_operands = 1 : i64, tpu.core_type = #tpu.core_type<tc>, window_params = [{transform_indices = @transform_0, window_bounds = array<i64: 16, 32>}, {transform_indices = @transform_1, window_bounds = array<i64: 32, 16>}, {transform_indices = @transform_2, window_bounds = array<i64: 16, 4>}, {transform_indices = @transform_3, window_bounds = array<i64: 16, 4>}, {transform_indices = @transform_4, window_bounds = array<i64: 16, 16>}]} {
    %c0_i32 = arith.constant 0 : i32
    %0 = arith.cmpi eq, %arg2, %c0_i32 : i32
    %1 = arith.extui %0 : i1 to i32
    %c0_i32_0 = arith.constant 0 : i32
    %2 = arith.cmpi ne, %1, %c0_i32_0 : i32
    scf.if %2 {
      %cst_10 = arith.constant 0.000000e+00 : f32
      %12 = vector.broadcast %cst_10 : f32 to vector<16x16xf32>
      %c0_11 = arith.constant 0 : index
      %c0_12 = arith.constant 0 : index
      %13 = vector.load %arg8[%c0_11, %c0_12] : memref<16x16xf32, #tpu.memory_space<vmem>>, vector<16x16xf32>
      tpu.vector_store %arg8[%c0_11, %c0_12], %12 {strides = array<i32>} : memref<16x16xf32, #tpu.memory_space<vmem>>, vector<16x16xf32>,
    } else {
    }
    %c0 = arith.constant 0 : index
    %c0_1 = arith.constant 0 : index
    %3 = vector.load %arg8[%c0, %c0_1] : memref<16x16xf32, #tpu.memory_space<vmem>>, vector<16x16xf32>
    %c0_2 = arith.constant 0 : index
    %c0_3 = arith.constant 0 : index
    %4 = vector.load %arg3[%c0_2, %c0_3] : memref<16x32xbf16, #tpu.memory_space<vmem>>, vector<16x32xbf16>
    %c0_4 = arith.constant 0 : index
    %c0_5 = arith.constant 0 : index
    %5 = vector.load %arg4[%c0_4, %c0_5] : memref<32x16xbf16, #tpu.memory_space<vmem>>, vector<32x16xbf16>
    %cst = arith.constant dense<0.000000e+00> : vector<16x16xf32>
    %6 = tpu.matmul %4, %5, %cst {dimension_numbers = #tpu.dot_dimension_numbers<[1], [0], [0], [1], [0, 0, 1, 1], [], []>} : vector<16x32xbf16>, vector<32x16xbf16>, vector<16x16xf32> -> vector<16x16xf32>
    %7 = arith.addf %3, %6 : vector<16x16xf32>
    %c0_6 = arith.constant 0 : index
    %c0_7 = arith.constant 0 : index
    %8 = vector.load %arg8[%c0_6, %c0_7] : memref<16x16xf32, #tpu.memory_space<vmem>>, vector<16x16xf32>
    tpu.vector_store %arg8[%c0_6, %c0_7], %7 {strides = array<i32>} : memref<16x16xf32, #tpu.memory_space<vmem>>, vector<16x16xf32>,
    %c0_i32_8 = arith.constant 0 : i32
    %9 = arith.cmpi eq, %arg2, %c0_i32_8 : i32
    %10 = arith.extui %9 : i1 to i32
    %c0_i32_9 = arith.constant 0 : i32
    %11 = arith.cmpi ne, %10, %c0_i32_9 : i32
    scf.if %11 {
      %c0_10 = arith.constant 0 : index
      %c0_11 = arith.constant 0 : index
      %12 = vector.load %arg8[%c0_10, %c0_11] : memref<16x16xf32, #tpu.memory_space<vmem>>, vector<16x16xf32>
      %c0_12 = arith.constant 0 : index
      %c0_13 = arith.constant 0 : index
      %13 = vector.load %arg5[%c0_12, %c0_13] : memref<16x4xf32, #tpu.memory_space<vmem>>, vector<16x4xf32>
      %c0_14 = arith.constant 0 : index
      %c0_15 = arith.constant 0 : index
      %14 = vector.load %arg6[%c0_14, %c0_15] : memref<16x4xf32, #tpu.memory_space<vmem>>, vector<16x4xf32>
      %15 = vector.extract_strided_slice %12 {offsets = [0, 0], sizes = [16, 4], strides = [1, 1]} : vector<16x16xf32> to vector<16x4xf32>
      %16 = vector.extract_strided_slice %12 {offsets = [0, 4], sizes = [16, 4], strides = [1, 1]} : vector<16x16xf32> to vector<16x4xf32>
      %17 = arith.mulf %15, %13 : vector<16x4xf32>
      %18 = arith.mulf %16, %14 : vector<16x4xf32>
      %19 = arith.subf %17, %18 : vector<16x4xf32>
      %20 = arith.truncf %19 : vector<16x4xf32> to vector<16x4xbf16>
      %c0_16 = arith.constant 0 : index
      %c0_17 = arith.constant 0 : index
      %21 = vector.load %arg7[%c0_16, %c0_17] : memref<16x16xbf16, #tpu.memory_space<vmem>>, vector<16x4xbf16>
      tpu.vector_store %arg7[%c0_16, %c0_17], %20 {strides = array<i32>} : memref<16x16xbf16, #tpu.memory_space<vmem>>, vector<16x4xbf16>,
      %22 = arith.mulf %15, %14 : vector<16x4xf32>
      %23 = arith.mulf %16, %13 : vector<16x4xf32>
      %24 = arith.addf %22, %23 : vector<16x4xf32>
      %25 = arith.truncf %24 : vector<16x4xf32> to vector<16x4xbf16>
      %c0_18 = arith.constant 0 : index
      %c4 = arith.constant 4 : index
      %26 = vector.load %arg7[%c0_18, %c4] : memref<16x16xbf16, #tpu.memory_space<vmem>>, vector<16x4xbf16>
      tpu.vector_store %arg7[%c0_18, %c4], %25 {strides = array<i32>} : memref<16x16xbf16, #tpu.memory_space<vmem>>, vector<16x4xbf16>,
      %27 = vector.extract_strided_slice %12 {offsets = [0, 8], sizes = [16, 4], strides = [1, 1]} : vector<16x16xf32> to vector<16x4xf32>
      %28 = vector.extract_strided_slice %12 {offsets = [0, 12], sizes = [16, 4], strides = [1, 1]} : vector<16x16xf32> to vector<16x4xf32>
      %29 = arith.mulf %27, %13 : vector<16x4xf32>
      %30 = arith.mulf %28, %14 : vector<16x4xf32>
      %31 = arith.subf %29, %30 : vector<16x4xf32>
      %32 = arith.truncf %31 : vector<16x4xf32> to vector<16x4xbf16>
      %c0_19 = arith.constant 0 : index
      %c8 = arith.constant 8 : index
      %33 = vector.load %arg7[%c0_19, %c8] : memref<16x16xbf16, #tpu.memory_space<vmem>>, vector<16x4xbf16>
      tpu.vector_store %arg7[%c0_19, %c8], %32 {strides = array<i32>} : memref<16x16xbf16, #tpu.memory_space<vmem>>, vector<16x4xbf16>,
      %34 = arith.mulf %27, %14 : vector<16x4xf32>
      %35 = arith.mulf %28, %13 : vector<16x4xf32>
      %36 = arith.addf %34, %35 : vector<16x4xf32>
      %37 = arith.truncf %36 : vector<16x4xf32> to vector<16x4xbf16>
      %c0_20 = arith.constant 0 : index
      %c12 = arith.constant 12 : index
      %38 = vector.load %arg7[%c0_20, %c12] : memref<16x16xbf16, #tpu.memory_space<vmem>>, vector<16x4xbf16>
      tpu.vector_store %arg7[%c0_20, %c12], %37 {strides = array<i32>} : memref<16x16xbf16, #tpu.memory_space<vmem>>, vector<16x4xbf16>,
    } else {
    }
    return
  }
  func.func @transform_0(%arg0: i32, %arg1: i32, %arg2: i32) -> (i32, i32) {
    %c0_i32 = arith.constant 0 : i32
    return %arg0, %arg2 : i32, i32
  }
  func.func @transform_1(%arg0: i32, %arg1: i32, %arg2: i32) -> (i32, i32) {
    %c0_i32 = arith.constant 0 : i32
    return %arg2, %arg1 : i32, i32
  }
  func.func @transform_2(%arg0: i32, %arg1: i32, %arg2: i32) -> (i32, i32) {
    %c0_i32 = arith.constant 0 : i32
    %c0_i32_0 = arith.constant 0 : i32
    return %arg0, %c0_i32 : i32, i32
  }
  func.func @transform_3(%arg0: i32, %arg1: i32, %arg2: i32) -> (i32, i32) {
    %c0_i32 = arith.constant 0 : i32
    %c0_i32_0 = arith.constant 0 : i32
    return %arg0, %c0_i32 : i32, i32
  }
  func.func @transform_4(%arg0: i32, %arg1: i32, %arg2: i32) -> (i32, i32) {
    %c0_i32 = arith.constant 0 : i32
    return %arg0, %arg1 : i32, i32
  }
}

module attributes {stable_mosaic.version = 11 : i64} {
  func.func @_matmul_rope_kernel(%arg0: i32, %arg1: i32, %arg2: i32, %arg3: memref<16x32xbf16, #tpu.memory_space<vmem>>, %arg4: memref<32x32xbf16, #tpu.memory_space<vmem>>, %arg5: memref<16x4xf32, #tpu.memory_space<vmem>>, %arg6: memref<16x4xf32, #tpu.memory_space<vmem>>, %arg7: memref<16x32xbf16, #tpu.memory_space<vmem>>, %arg8: memref<16x32xf32, #tpu.memory_space<vmem>>) attributes {dimension_semantics = [#tpu.dimension_semantics<parallel>, #tpu.dimension_semantics<parallel>, #tpu.dimension_semantics<arbitrary>], iteration_bounds = array<i64: 1, 1, 1>, scalar_prefetch = 0 : i64, scratch_operands = 1 : i64, tpu.core_type = #tpu.core_type<tc>, window_params = [{transform_indices = @transform_0, window_bounds = array<i64: 16, 32>}, {transform_indices = @transform_1, window_bounds = array<i64: 32, 32>}, {transform_indices = @transform_2, window_bounds = array<i64: 16, 4>}, {transform_indices = @transform_3, window_bounds = array<i64: 16, 4>}, {transform_indices = @transform_4, window_bounds = array<i64: 16, 32>}]} {
    %c0_i32 = arith.constant 0 : i32
    %0 = arith.cmpi eq, %arg2, %c0_i32 : i32
    %1 = arith.extui %0 : i1 to i32
    %c0_i32_0 = arith.constant 0 : i32
    %2 = arith.cmpi ne, %1, %c0_i32_0 : i32
    scf.if %2 {
      %cst_10 = arith.constant 0.000000e+00 : f32
      %12 = vector.broadcast %cst_10 : f32 to vector<16x32xf32>
      %c0_11 = arith.constant 0 : index
      %c0_12 = arith.constant 0 : index
      %13 = vector.load %arg8[%c0_11, %c0_12] : memref<16x32xf32, #tpu.memory_space<vmem>>, vector<16x32xf32>
      tpu.vector_store %arg8[%c0_11, %c0_12], %12 {strides = array<i32>} : memref<16x32xf32, #tpu.memory_space<vmem>>, vector<16x32xf32>,
    } else {
    }
    %c0 = arith.constant 0 : index
    %c0_1 = arith.constant 0 : index
    %3 = vector.load %arg8[%c0, %c0_1] : memref<16x32xf32, #tpu.memory_space<vmem>>, vector<16x32xf32>
    %c0_2 = arith.constant 0 : index
    %c0_3 = arith.constant 0 : index
    %4 = vector.load %arg3[%c0_2, %c0_3] : memref<16x32xbf16, #tpu.memory_space<vmem>>, vector<16x32xbf16>
    %c0_4 = arith.constant 0 : index
    %c0_5 = arith.constant 0 : index
    %5 = vector.load %arg4[%c0_4, %c0_5] : memref<32x32xbf16, #tpu.memory_space<vmem>>, vector<32x32xbf16>
    %cst = arith.constant dense<0.000000e+00> : vector<16x32xf32>
    %6 = tpu.matmul %4, %5, %cst {dimension_numbers = #tpu.dot_dimension_numbers<[1], [0], [0], [1], [0, 0, 1, 1], [], []>} : vector<16x32xbf16>, vector<32x32xbf16>, vector<16x32xf32> -> vector<16x32xf32>
    %7 = arith.addf %3, %6 : vector<16x32xf32>
    %c0_6 = arith.constant 0 : index
    %c0_7 = arith.constant 0 : index
    %8 = vector.load %arg8[%c0_6, %c0_7] : memref<16x32xf32, #tpu.memory_space<vmem>>, vector<16x32xf32>
    tpu.vector_store %arg8[%c0_6, %c0_7], %7 {strides = array<i32>} : memref<16x32xf32, #tpu.memory_space<vmem>>, vector<16x32xf32>,
    %c0_i32_8 = arith.constant 0 : i32
    %9 = arith.cmpi eq, %arg2, %c0_i32_8 : i32
    %10 = arith.extui %9 : i1 to i32
    %c0_i32_9 = arith.constant 0 : i32
    %11 = arith.cmpi ne, %10, %c0_i32_9 : i32
    scf.if %11 {
      %c0_10 = arith.constant 0 : index
      %c0_11 = arith.constant 0 : index
      %12 = vector.load %arg8[%c0_10, %c0_11] : memref<16x32xf32, #tpu.memory_space<vmem>>, vector<16x32xf32>
      %c0_12 = arith.constant 0 : index
      %c0_13 = arith.constant 0 : index
      %13 = vector.load %arg5[%c0_12, %c0_13] : memref<16x4xf32, #tpu.memory_space<vmem>>, vector<16x4xf32>
      %c0_14 = arith.constant 0 : index
      %c0_15 = arith.constant 0 : index
      %14 = vector.load %arg6[%c0_14, %c0_15] : memref<16x4xf32, #tpu.memory_space<vmem>>, vector<16x4xf32>
      %15 = vector.extract_strided_slice %12 {offsets = [0, 0], sizes = [16, 4], strides = [1, 1]} : vector<16x32xf32> to vector<16x4xf32>
      %16 = vector.extract_strided_slice %12 {offsets = [0, 4], sizes = [16, 4], strides = [1, 1]} : vector<16x32xf32> to vector<16x4xf32>
      %17 = arith.mulf %15, %13 : vector<16x4xf32>
      %18 = arith.mulf %16, %14 : vector<16x4xf32>
      %19 = arith.subf %17, %18 : vector<16x4xf32>
      %20 = arith.truncf %19 : vector<16x4xf32> to vector<16x4xbf16>
      %c0_16 = arith.constant 0 : index
      %c0_17 = arith.constant 0 : index
      %21 = vector.load %arg7[%c0_16, %c0_17] : memref<16x32xbf16, #tpu.memory_space<vmem>>, vector<16x4xbf16>
      tpu.vector_store %arg7[%c0_16, %c0_17], %20 {strides = array<i32>} : memref<16x32xbf16, #tpu.memory_space<vmem>>, vector<16x4xbf16>,
      %22 = arith.mulf %15, %14 : vector<16x4xf32>
      %23 = arith.mulf %16, %13 : vector<16x4xf32>
      %24 = arith.addf %22, %23 : vector<16x4xf32>
      %25 = arith.truncf %24 : vector<16x4xf32> to vector<16x4xbf16>
      %c0_18 = arith.constant 0 : index
      %c4 = arith.constant 4 : index
      %26 = vector.load %arg7[%c0_18, %c4] : memref<16x32xbf16, #tpu.memory_space<vmem>>, vector<16x4xbf16>
      tpu.vector_store %arg7[%c0_18, %c4], %25 {strides = array<i32>} : memref<16x32xbf16, #tpu.memory_space<vmem>>, vector<16x4xbf16>,
      %27 = vector.extract_strided_slice %12 {offsets = [0, 8], sizes = [16, 4], strides = [1, 1]} : vector<16x32xf32> to vector<16x4xf32>
      %28 = vector.extract_strided_slice %12 {offsets = [0, 12], sizes = [16, 4], strides = [1, 1]} : vector<16x32xf32> to vector<16x4xf32>
      %29 = arith.mulf %27, %13 : vector<16x4xf32>
      %30 = arith.mulf %28, %14 : vector<16x4xf32>
      %31 = arith.subf %29, %30 : vector<16x4xf32>
      %32 = arith.truncf %31 : vector<16x4xf32> to vector<16x4xbf16>
      %c0_19 = arith.constant 0 : index
      %c8 = arith.constant 8 : index
      %33 = vector.load %arg7[%c0_19, %c8] : memref<16x32xbf16, #tpu.memory_space<vmem>>, vector<16x4xbf16>
      tpu.vector_store %arg7[%c0_19, %c8], %32 {strides = array<i32>} : memref<16x32xbf16, #tpu.memory_space<vmem>>, vector<16x4xbf16>,
      %34 = arith.mulf %27, %14 : vector<16x4xf32>
      %35 = arith.mulf %28, %13 : vector<16x4xf32>
      %36 = arith.addf %34, %35 : vector<16x4xf32>
      %37 = arith.truncf %36 : vector<16x4xf32> to vector<16x4xbf16>
      %c0_20 = arith.constant 0 : index
      %c12 = arith.constant 12 : index
      %38 = vector.load %arg7[%c0_20, %c12] : memref<16x32xbf16, #tpu.memory_space<vmem>>, vector<16x4xbf16>
      tpu.vector_store %arg7[%c0_20, %c12], %37 {strides = array<i32>} : memref<16x32xbf16, #tpu.memory_space<vmem>>, vector<16x4xbf16>,
      %39 = vector.extract_strided_slice %12 {offsets = [0, 16], sizes = [16, 4], strides = [1, 1]} : vector<16x32xf32> to vector<16x4xf32>
      %40 = vector.extract_strided_slice %12 {offsets = [0, 20], sizes = [16, 4], strides = [1, 1]} : vector<16x32xf32> to vector<16x4xf32>
      %41 = arith.mulf %39, %13 : vector<16x4xf32>
      %42 = arith.mulf %40, %14 : vector<16x4xf32>
      %43 = arith.subf %41, %42 : vector<16x4xf32>
      %44 = arith.truncf %43 : vector<16x4xf32> to vector<16x4xbf16>
      %c0_21 = arith.constant 0 : index
      %c16 = arith.constant 16 : index
      %45 = vector.load %arg7[%c0_21, %c16] : memref<16x32xbf16, #tpu.memory_space<vmem>>, vector<16x4xbf16>
      tpu.vector_store %arg7[%c0_21, %c16], %44 {strides = array<i32>} : memref<16x32xbf16, #tpu.memory_space<vmem>>, vector<16x4xbf16>,
      %46 = arith.mulf %39, %14 : vector<16x4xf32>
      %47 = arith.mulf %40, %13 : vector<16x4xf32>
      %48 = arith.addf %46, %47 : vector<16x4xf32>
      %49 = arith.truncf %48 : vector<16x4xf32> to vector<16x4xbf16>
      %c0_22 = arith.constant 0 : index
      %c20 = arith.constant 20 : index
      %50 = vector.load %arg7[%c0_22, %c20] : memref<16x32xbf16, #tpu.memory_space<vmem>>, vector<16x4xbf16>
      tpu.vector_store %arg7[%c0_22, %c20], %49 {strides = array<i32>} : memref<16x32xbf16, #tpu.memory_space<vmem>>, vector<16x4xbf16>,
      %51 = vector.extract_strided_slice %12 {offsets = [0, 24], sizes = [16, 4], strides = [1, 1]} : vector<16x32xf32> to vector<16x4xf32>
      %52 = vector.extract_strided_slice %12 {offsets = [0, 28], sizes = [16, 4], strides = [1, 1]} : vector<16x32xf32> to vector<16x4xf32>
      %53 = arith.mulf %51, %13 : vector<16x4xf32>
      %54 = arith.mulf %52, %14 : vector<16x4xf32>
      %55 = arith.subf %53, %54 : vector<16x4xf32>
      %56 = arith.truncf %55 : vector<16x4xf32> to vector<16x4xbf16>
      %c0_23 = arith.constant 0 : index
      %c24 = arith.constant 24 : index
      %57 = vector.load %arg7[%c0_23, %c24] : memref<16x32xbf16, #tpu.memory_space<vmem>>, vector<16x4xbf16>
      tpu.vector_store %arg7[%c0_23, %c24], %56 {strides = array<i32>} : memref<16x32xbf16, #tpu.memory_space<vmem>>, vector<16x4xbf16>,
      %58 = arith.mulf %51, %14 : vector<16x4xf32>
      %59 = arith.mulf %52, %13 : vector<16x4xf32>
      %60 = arith.addf %58, %59 : vector<16x4xf32>
      %61 = arith.truncf %60 : vector<16x4xf32> to vector<16x4xbf16>
      %c0_24 = arith.constant 0 : index
      %c28 = arith.constant 28 : index
      %62 = vector.load %arg7[%c0_24, %c28] : memref<16x32xbf16, #tpu.memory_space<vmem>>, vector<16x4xbf16>
      tpu.vector_store %arg7[%c0_24, %c28], %61 {strides = array<i32>} : memref<16x32xbf16, #tpu.memory_space<vmem>>, vector<16x4xbf16>,
    } else {
    }
    return
  }
  func.func @transform_0(%arg0: i32, %arg1: i32, %arg2: i32) -> (i32, i32) {
    %c0_i32 = arith.constant 0 : i32
    return %arg0, %arg2 : i32, i32
  }
  func.func @transform_1(%arg0: i32, %arg1: i32, %arg2: i32) -> (i32, i32) {
    %c0_i32 = arith.constant 0 : i32
    return %arg2, %arg1 : i32, i32
  }
  func.func @transform_2(%arg0: i32, %arg1: i32, %arg2: i32) -> (i32, i32) {
    %c0_i32 = arith.constant 0 : i32
    %c0_i32_0 = arith.constant 0 : i32
    return %arg0, %c0_i32 : i32, i32
  }
  func.func @transform_3(%arg0: i32, %arg1: i32, %arg2: i32) -> (i32, i32) {
    %c0_i32 = arith.constant 0 : i32
    %c0_i32_0 = arith.constant 0 : i32
    return %arg0, %c0_i32 : i32, i32
  }
  func.func @transform_4(%arg0: i32, %arg1: i32, %arg2: i32) -> (i32, i32) {
    %c0_i32 = arith.constant 0 : i32
    return %arg0, %arg1 : i32, i32
  }
}

module attributes {stable_mosaic.version = 11 : i64} {
  func.func @_matmul_residual_kernel(%arg0: i32, %arg1: i32, %arg2: i32, %arg3: memref<16x32xbf16, #tpu.memory_space<vmem>>, %arg4: memref<32x32xbf16, #tpu.memory_space<vmem>>, %arg5: memref<16x32xf32, #tpu.memory_space<vmem>>, %arg6: memref<16x32xf32, #tpu.memory_space<vmem>>, %arg7: memref<16x32xf32, #tpu.memory_space<vmem>>) attributes {dimension_semantics = [#tpu.dimension_semantics<parallel>, #tpu.dimension_semantics<parallel>, #tpu.dimension_semantics<arbitrary>], iteration_bounds = array<i64: 1, 1, 1>, scalar_prefetch = 0 : i64, scratch_operands = 1 : i64, tpu.core_type = #tpu.core_type<tc>, window_params = [{transform_indices = @transform_0, window_bounds = array<i64: 16, 32>}, {transform_indices = @transform_1, window_bounds = array<i64: 32, 32>}, {transform_indices = @transform_2, window_bounds = array<i64: 16, 32>}, {transform_indices = @transform_3, window_bounds = array<i64: 16, 32>}]} {
    %c0_i32 = arith.constant 0 : i32
    %0 = arith.cmpi eq, %arg2, %c0_i32 : i32
    %1 = arith.extui %0 : i1 to i32
    %c0_i32_0 = arith.constant 0 : i32
    %2 = arith.cmpi ne, %1, %c0_i32_0 : i32
    scf.if %2 {
      %cst_10 = arith.constant 0.000000e+00 : f32
      %12 = vector.broadcast %cst_10 : f32 to vector<16x32xf32>
      %c0_11 = arith.constant 0 : index
      %c0_12 = arith.constant 0 : index
      %13 = vector.load %arg7[%c0_11, %c0_12] : memref<16x32xf32, #tpu.memory_space<vmem>>, vector<16x32xf32>
      tpu.vector_store %arg7[%c0_11, %c0_12], %12 {strides = array<i32>} : memref<16x32xf32, #tpu.memory_space<vmem>>, vector<16x32xf32>,
    } else {
    }
    %c0 = arith.constant 0 : index
    %c0_1 = arith.constant 0 : index
    %3 = vector.load %arg7[%c0, %c0_1] : memref<16x32xf32, #tpu.memory_space<vmem>>, vector<16x32xf32>
    %c0_2 = arith.constant 0 : index
    %c0_3 = arith.constant 0 : index
    %4 = vector.load %arg3[%c0_2, %c0_3] : memref<16x32xbf16, #tpu.memory_space<vmem>>, vector<16x32xbf16>
    %c0_4 = arith.constant 0 : index
    %c0_5 = arith.constant 0 : index
    %5 = vector.load %arg4[%c0_4, %c0_5] : memref<32x32xbf16, #tpu.memory_space<vmem>>, vector<32x32xbf16>
    %cst = arith.constant dense<0.000000e+00> : vector<16x32xf32>
    %6 = tpu.matmul %4, %5, %cst {dimension_numbers = #tpu.dot_dimension_numbers<[1], [0], [0], [1], [0, 0, 1, 1], [], []>} : vector<16x32xbf16>, vector<32x32xbf16>, vector<16x32xf32> -> vector<16x32xf32>
    %7 = arith.addf %3, %6 : vector<16x32xf32>
    %c0_6 = arith.constant 0 : index
    %c0_7 = arith.constant 0 : index
    %8 = vector.load %arg7[%c0_6, %c0_7] : memref<16x32xf32, #tpu.memory_space<vmem>>, vector<16x32xf32>
    tpu.vector_store %arg7[%c0_6, %c0_7], %7 {strides = array<i32>} : memref<16x32xf32, #tpu.memory_space<vmem>>, vector<16x32xf32>,
    %c0_i32_8 = arith.constant 0 : i32
    %9 = arith.cmpi eq, %arg2, %c0_i32_8 : i32
    %10 = arith.extui %9 : i1 to i32
    %c0_i32_9 = arith.constant 0 : i32
    %11 = arith.cmpi ne, %10, %c0_i32_9 : i32
    scf.if %11 {
      %c0_10 = arith.constant 0 : index
      %c0_11 = arith.constant 0 : index
      %12 = vector.load %arg7[%c0_10, %c0_11] : memref<16x32xf32, #tpu.memory_space<vmem>>, vector<16x32xf32>
      %c0_12 = arith.constant 0 : index
      %c0_13 = arith.constant 0 : index
      %13 = vector.load %arg5[%c0_12, %c0_13] : memref<16x32xf32, #tpu.memory_space<vmem>>, vector<16x32xf32>
      %14 = arith.addf %12, %13 : vector<16x32xf32>
      %c0_14 = arith.constant 0 : index
      %c0_15 = arith.constant 0 : index
      %15 = vector.load %arg6[%c0_14, %c0_15] : memref<16x32xf32, #tpu.memory_space<vmem>>, vector<16x32xf32>
      tpu.vector_store %arg6[%c0_14, %c0_15], %14 {strides = array<i32>} : memref<16x32xf32, #tpu.memory_space<vmem>>, vector<16x32xf32>,
    } else {
    }
    return
  }
  func.func @transform_0(%arg0: i32, %arg1: i32, %arg2: i32) -> (i32, i32) {
    %c0_i32 = arith.constant 0 : i32
    return %arg0, %arg2 : i32, i32
  }
  func.func @transform_1(%arg0: i32, %arg1: i32, %arg2: i32) -> (i32, i32) {
    %c0_i32 = arith.constant 0 : i32
    return %arg2, %arg1 : i32, i32
  }
  func.func @transform_2(%arg0: i32, %arg1: i32, %arg2: i32) -> (i32, i32) {
    %c0_i32 = arith.constant 0 : i32
    return %arg0, %arg1 : i32, i32
  }
  func.func @transform_3(%arg0: i32, %arg1: i32, %arg2: i32) -> (i32, i32) {
    %c0_i32 = arith.constant 0 : i32
    return %arg0, %arg1 : i32, i32
  }
}

module attributes {stable_mosaic.version = 11 : i64} {
  func.func @_rmsnorm_kernel(%arg0: i32, %arg1: memref<16x32xf32, #tpu.memory_space<vmem>>, %arg2: memref<1x32xf32, #tpu.memory_space<vmem>>, %arg3: memref<16x32xbf16, #tpu.memory_space<vmem>>) attributes {dimension_semantics = [#tpu.dimension_semantics<parallel>], iteration_bounds = array<i64: 1>, scalar_prefetch = 0 : i64, scratch_operands = 0 : i64, tpu.core_type = #tpu.core_type<tc>, window_params = [{transform_indices = @transform_0, window_bounds = array<i64: 16, 32>}, {pipeline_mode = #tpu.pipeline_mode<synchronous>, transform_indices = @transform_1, window_bounds = array<i64: 1, 32>}, {transform_indices = @transform_2, window_bounds = array<i64: 16, 32>}]} {
    %c0 = arith.constant 0 : index
    %c0_0 = arith.constant 0 : index
    %0 = vector.load %arg1[%c0, %c0_0] : memref<16x32xf32, #tpu.memory_space<vmem>>, vector<16x32xf32>
    %1 = arith.mulf %0, %0 : vector<16x32xf32>
    %cst = arith.constant dense<0.000000e+00> : vector<16xf32>
    %2 = vector.multi_reduction <add>, %1, %cst [1] : vector<16x32xf32> to vector<16xf32>
    %3 = vector.shape_cast %2 : vector<16xf32> to vector<16x1xf32>
    %cst_1 = arith.constant 3.200000e+01 : f32
    %4 = vector.broadcast %cst_1 : f32 to vector<16x1xf32>
    %5 = arith.divf %3, %4 : vector<16x1xf32>
    %cst_2 = arith.constant 9.99999997E-7 : f32
    %6 = vector.broadcast %cst_2 : f32 to vector<16x1xf32>
    %7 = arith.addf %5, %6 : vector<16x1xf32>
    %8 = math.rsqrt %7 : vector<16x1xf32>
    %9 = vector.broadcast %8 : vector<16x1xf32> to vector<16x32xf32>
    %10 = arith.mulf %0, %9 : vector<16x32xf32>
    %c0_3 = arith.constant 0 : index
    %c0_4 = arith.constant 0 : index
    %11 = vector.load %arg2[%c0_3, %c0_4] : memref<1x32xf32, #tpu.memory_space<vmem>>, vector<1x32xf32>
    %12 = vector.broadcast %11 : vector<1x32xf32> to vector<16x32xf32>
    %13 = arith.mulf %10, %12 : vector<16x32xf32>
    %14 = arith.truncf %13 : vector<16x32xf32> to vector<16x32xbf16>
    %c0_5 = arith.constant 0 : index
    %c0_6 = arith.constant 0 : index
    %15 = vector.load %arg3[%c0_5, %c0_6] : memref<16x32xbf16, #tpu.memory_space<vmem>>, vector<16x32xbf16>
    tpu.vector_store %arg3[%c0_5, %c0_6], %14 {strides = array<i32>} : memref<16x32xbf16, #tpu.memory_space<vmem>>, vector<16x32xbf16>,
    return
  }
  func.func @transform_0(%arg0: i32) -> (i32, i32) {
    %c0_i32 = arith.constant 0 : i32
    %c0_i32_0 = arith.constant 0 : i32
    return %arg0, %c0_i32 : i32, i32
  }
  func.func @transform_1(%arg0: i32) -> (i32, i32) {
    %c0_i32 = arith.constant 0 : i32
    %c0_i32_0 = arith.constant 0 : i32
    %c0_i32_1 = arith.constant 0 : i32
    return %c0_i32, %c0_i32_0 : i32, i32
  }
  func.func @transform_2(%arg0: i32) -> (i32, i32) {
    %c0_i32 = arith.constant 0 : i32
    %c0_i32_0 = arith.constant 0 : i32
    return %arg0, %c0_i32 : i32, i32
  }
}

module attributes {stable_mosaic.version = 11 : i64} {
  func.func @_swiglu_kernel(%arg0: i32, %arg1: i32, %arg2: i32, %arg3: memref<16x32xbf16, #tpu.memory_space<vmem>>, %arg4: memref<32x128xbf16, #tpu.memory_space<vmem>>, %arg5: memref<32x128xbf16, #tpu.memory_space<vmem>>, %arg6: memref<16x128xbf16, #tpu.memory_space<vmem>>, %arg7: memref<16x128xf32, #tpu.memory_space<vmem>>, %arg8: memref<16x128xf32, #tpu.memory_space<vmem>>) attributes {dimension_semantics = [#tpu.dimension_semantics<parallel>, #tpu.dimension_semantics<parallel>, #tpu.dimension_semantics<arbitrary>], iteration_bounds = array<i64: 1, 1, 1>, scalar_prefetch = 0 : i64, scratch_operands = 2 : i64, tpu.core_type = #tpu.core_type<tc>, window_params = [{transform_indices = @transform_0, window_bounds = array<i64: 16, 32>}, {transform_indices = @transform_1, window_bounds = array<i64: 32, 128>}, {transform_indices = @transform_2, window_bounds = array<i64: 32, 128>}, {transform_indices = @transform_3, window_bounds = array<i64: 16, 128>}]} {
    %c0_i32 = arith.constant 0 : i32
    %0 = arith.cmpi eq, %arg2, %c0_i32 : i32
    %1 = arith.extui %0 : i1 to i32
    %c0_i32_0 = arith.constant 0 : i32
    %2 = arith.cmpi ne, %1, %c0_i32_0 : i32
    scf.if %2 {
      %cst_17 = arith.constant 0.000000e+00 : f32
      %17 = vector.broadcast %cst_17 : f32 to vector<16x128xf32>
      %c0_18 = arith.constant 0 : index
      %c0_19 = arith.constant 0 : index
      %18 = vector.load %arg7[%c0_18, %c0_19] : memref<16x128xf32, #tpu.memory_space<vmem>>, vector<16x128xf32>
      tpu.vector_store %arg7[%c0_18, %c0_19], %17 {strides = array<i32>} : memref<16x128xf32, #tpu.memory_space<vmem>>, vector<16x128xf32>,
      %cst_20 = arith.constant 0.000000e+00 : f32
      %19 = vector.broadcast %cst_20 : f32 to vector<16x128xf32>
      %c0_21 = arith.constant 0 : index
      %c0_22 = arith.constant 0 : index
      %20 = vector.load %arg8[%c0_21, %c0_22] : memref<16x128xf32, #tpu.memory_space<vmem>>, vector<16x128xf32>
      tpu.vector_store %arg8[%c0_21, %c0_22], %19 {strides = array<i32>} : memref<16x128xf32, #tpu.memory_space<vmem>>, vector<16x128xf32>,
    } else {
    }
    %c0 = arith.constant 0 : index
    %c0_1 = arith.constant 0 : index
    %3 = vector.load %arg3[%c0, %c0_1] : memref<16x32xbf16, #tpu.memory_space<vmem>>, vector<16x32xbf16>
    %c0_2 = arith.constant 0 : index
    %c0_3 = arith.constant 0 : index
    %4 = vector.load %arg7[%c0_2, %c0_3] : memref<16x128xf32, #tpu.memory_space<vmem>>, vector<16x128xf32>
    %c0_4 = arith.constant 0 : index
    %c0_5 = arith.constant 0 : index
    %5 = vector.load %arg4[%c0_4, %c0_5] : memref<32x128xbf16, #tpu.memory_space<vmem>>, vector<32x128xbf16>
    %cst = arith.constant dense<0.000000e+00> : vector<16x128xf32>
    %6 = tpu.matmul %3, %5, %cst {dimension_numbers = #tpu.dot_dimension_numbers<[1], [0], [0], [1], [0, 0, 1, 1], [], []>} : vector<16x32xbf16>, vector<32x128xbf16>, vector<16x128xf32> -> vector<16x128xf32>
    %7 = arith.addf %4, %6 : vector<16x128xf32>
    %c0_6 = arith.constant 0 : index
    %c0_7 = arith.constant 0 : index
    %8 = vector.load %arg7[%c0_6, %c0_7] : memref<16x128xf32, #tpu.memory_space<vmem>>, vector<16x128xf32>
    tpu.vector_store %arg7[%c0_6, %c0_7], %7 {strides = array<i32>} : memref<16x128xf32, #tpu.memory_space<vmem>>, vector<16x128xf32>,
    %c0_8 = arith.constant 0 : index
    %c0_9 = arith.constant 0 : index
    %9 = vector.load %arg8[%c0_8, %c0_9] : memref<16x128xf32, #tpu.memory_space<vmem>>, vector<16x128xf32>
    %c0_10 = arith.constant 0 : index
    %c0_11 = arith.constant 0 : index
    %10 = vector.load %arg5[%c0_10, %c0_11] : memref<32x128xbf16, #tpu.memory_space<vmem>>, vector<32x128xbf16>
    %cst_12 = arith.constant dense<0.000000e+00> : vector<16x128xf32>
    %11 = tpu.matmul %3, %10, %cst_12 {dimension_numbers = #tpu.dot_dimension_numbers<[1], [0], [0], [1], [0, 0, 1, 1], [], []>} : vector<16x32xbf16>, vector<32x128xbf16>, vector<16x128xf32> -> vector<16x128xf32>
    %12 = arith.addf %9, %11 : vector<16x128xf32>
    %c0_13 = arith.constant 0 : index
    %c0_14 = arith.constant 0 : index
    %13 = vector.load %arg8[%c0_13, %c0_14] : memref<16x128xf32, #tpu.memory_space<vmem>>, vector<16x128xf32>
    tpu.vector_store %arg8[%c0_13, %c0_14], %12 {strides = array<i32>} : memref<16x128xf32, #tpu.memory_space<vmem>>, vector<16x128xf32>,
    %c0_i32_15 = arith.constant 0 : i32
    %14 = arith.cmpi eq, %arg2, %c0_i32_15 : i32
    %15 = arith.extui %14 : i1 to i32
    %c0_i32_16 = arith.constant 0 : i32
    %16 = arith.cmpi ne, %15, %c0_i32_16 : i32
    scf.if %16 {
      %c0_17 = arith.constant 0 : index
      %c0_18 = arith.constant 0 : index
      %17 = vector.load %arg7[%c0_17, %c0_18] : memref<16x128xf32, #tpu.memory_space<vmem>>, vector<16x128xf32>
      %cst_19 = arith.constant 0.000000e+00 : f32
      %18 = vector.broadcast %cst_19 : f32 to vector<16x128xf32>
      %19 = arith.subf %18, %17 : vector<16x128xf32>
      %20 = math.exp %19 : vector<16x128xf32>
      %cst_20 = arith.constant 1.000000e+00 : f32
      %21 = vector.broadcast %cst_20 : f32 to vector<16x128xf32>
      %22 = arith.addf %21, %20 : vector<16x128xf32>
      %cst_21 = arith.constant 1.000000e+00 : f32
      %23 = vector.broadcast %cst_21 : f32 to vector<16x128xf32>
      %24 = arith.divf %23, %22 : vector<16x128xf32>
      %25 = arith.mulf %17, %24 : vector<16x128xf32>
      %c0_22 = arith.constant 0 : index
      %c0_23 = arith.constant 0 : index
      %26 = vector.load %arg8[%c0_22, %c0_23] : memref<16x128xf32, #tpu.memory_space<vmem>>, vector<16x128xf32>
      %27 = arith.mulf %25, %26 : vector<16x128xf32>
      %28 = arith.truncf %27 : vector<16x128xf32> to vector<16x128xbf16>
      %c0_24 = arith.constant 0 : index
      %c0_25 = arith.constant 0 : index
      %29 = vector.load %arg6[%c0_24, %c0_25] : memref<16x128xbf16, #tpu.memory_space<vmem>>, vector<16x128xbf16>
      tpu.vector_store %arg6[%c0_24, %c0_25], %28 {strides = array<i32>} : memref<16x128xbf16, #tpu.memory_space<vmem>>, vector<16x128xbf16>,
    } else {
    }
    return
  }
  func.func @transform_0(%arg0: i32, %arg1: i32, %arg2: i32) -> (i32, i32) {
    %c0_i32 = arith.constant 0 : i32
    return %arg0, %arg2 : i32, i32
  }
  func.func @transform_1(%arg0: i32, %arg1: i32, %arg2: i32) -> (i32, i32) {
    %c0_i32 = arith.constant 0 : i32
    return %arg2, %arg1 : i32, i32
  }
  func.func @transform_2(%arg0: i32, %arg1: i32, %arg2: i32) -> (i32, i32) {
    %c0_i32 = arith.constant 0 : i32
    return %arg2, %arg1 : i32, i32
  }
  func.func @transform_3(%arg0: i32, %arg1: i32, %arg2: i32) -> (i32, i32) {
    %c0_i32 = arith.constant 0 : i32
    return %arg0, %arg1 : i32, i32
  }
}

module attributes {stable_mosaic.version = 11 : i64} {
  func.func @_flash_attn_kernel(%arg0: i32, %arg1: i32, %arg2: memref<1xi32, #tpu.memory_space<smem>>, %arg3: memref<1xi32, #tpu.memory_space<smem>>, %arg4: memref<1x8x32xbf16, #tpu.memory_space<vmem>>, %arg5: memref<1x8x16xbf16, #tpu.memory_space<vmem>>, %arg6: memref<1x8x16xbf16, #tpu.memory_space<vmem>>, %arg7: memref<1x8x32xbf16, #tpu.memory_space<vmem>>, %arg8: memref<8x4xf32, #tpu.memory_space<vmem>>, %arg9: memref<8x4xf32, #tpu.memory_space<vmem>>, %arg10: memref<8x32xf32, #tpu.memory_space<vmem>>) attributes {dimension_semantics = [#tpu.dimension_semantics<parallel>, #tpu.dimension_semantics<arbitrary>], iteration_bounds = array<i64: 2, 1>, scalar_prefetch = 2 : i64, scratch_operands = 3 : i64, tpu.core_type = #tpu.core_type<tc>, window_params = [{transform_indices = @transform_0, window_bounds = array<i64: 1, 8, 32>}, {transform_indices = @transform_1, window_bounds = array<i64: 1, 8, 16>}, {transform_indices = @transform_2, window_bounds = array<i64: 1, 8, 16>}, {transform_indices = @transform_3, window_bounds = array<i64: 1, 8, 32>}]} {
    %0 = arith.index_cast %arg1 : i32 to index
    %1 = memref.load %arg2[%0] : memref<1xi32, #tpu.memory_space<smem>>
    %2 = arith.index_cast %arg1 : i32 to index
    %3 = memref.load %arg3[%2] : memref<1xi32, #tpu.memory_space<smem>>
    %c0_i32 = arith.constant 0 : i32
    %4 = arith.cmpi eq, %3, %c0_i32 : i32
    %5 = arith.extui %4 : i1 to i32
    %c0_i32_0 = arith.constant 0 : i32
    %6 = arith.cmpi ne, %5, %c0_i32_0 : i32
    scf.if %6 {
      %cst = arith.constant -1.000000e+30 : f32
      %13 = vector.broadcast %cst : f32 to vector<8x4xf32>
      %c0 = arith.constant 0 : index
      %c0_3 = arith.constant 0 : index
      %14 = vector.load %arg8[%c0, %c0_3] : memref<8x4xf32, #tpu.memory_space<vmem>>, vector<8x4xf32>
      tpu.vector_store %arg8[%c0, %c0_3], %13 {strides = array<i32>} : memref<8x4xf32, #tpu.memory_space<vmem>>, vector<8x4xf32>,
      %cst_4 = arith.constant 0.000000e+00 : f32
      %15 = vector.broadcast %cst_4 : f32 to vector<8x4xf32>
      %c0_5 = arith.constant 0 : index
      %c0_6 = arith.constant 0 : index
      %16 = vector.load %arg9[%c0_5, %c0_6] : memref<8x4xf32, #tpu.memory_space<vmem>>, vector<8x4xf32>
      tpu.vector_store %arg9[%c0_5, %c0_6], %15 {strides = array<i32>} : memref<8x4xf32, #tpu.memory_space<vmem>>, vector<8x4xf32>,
      %cst_7 = arith.constant 0.000000e+00 : f32
      %17 = vector.broadcast %cst_7 : f32 to vector<8x32xf32>
      %c0_8 = arith.constant 0 : index
      %c0_9 = arith.constant 0 : index
      %18 = vector.load %arg10[%c0_8, %c0_9] : memref<8x32xf32, #tpu.memory_space<vmem>>, vector<8x32xf32>
      tpu.vector_store %arg10[%c0_8, %c0_9], %17 {strides = array<i32>} : memref<8x32xf32, #tpu.memory_space<vmem>>, vector<8x32xf32>,
    } else {
    }
    %7 = arith.cmpi slt, %3, %1 : i32
    %8 = arith.extui %7 : i1 to i32
    %c0_i32_1 = arith.constant 0 : i32
    %9 = arith.cmpi ne, %8, %c0_i32_1 : i32
    scf.if %9 {
      %c0 = arith.constant 0 : index
      %c0_3 = arith.constant 0 : index
      %c0_4 = arith.constant 0 : index
      %13 = vector.load %arg4[%c0, %c0_3, %c0_4] : memref<1x8x32xbf16, #tpu.memory_space<vmem>>, vector<1x8x32xbf16>
      %14 = vector.shape_cast %13 : vector<1x8x32xbf16> to vector<8x32xbf16>
      %c0_5 = arith.constant 0 : index
      %c0_6 = arith.constant 0 : index
      %c0_7 = arith.constant 0 : index
      %15 = vector.load %arg5[%c0_5, %c0_6, %c0_7] : memref<1x8x16xbf16, #tpu.memory_space<vmem>>, vector<1x8x16xbf16>
      %16 = vector.shape_cast %15 : vector<1x8x16xbf16> to vector<8x16xbf16>
      %c0_8 = arith.constant 0 : index
      %c0_9 = arith.constant 0 : index
      %c0_10 = arith.constant 0 : index
      %17 = vector.load %arg6[%c0_8, %c0_9, %c0_10] : memref<1x8x16xbf16, #tpu.memory_space<vmem>>, vector<1x8x16xbf16>
      %18 = vector.shape_cast %17 : vector<1x8x16xbf16> to vector<8x16xbf16>
      %19 = vector.extract_strided_slice %14 {offsets = [0, 0], sizes = [8, 8], strides = [1, 1]} : vector<8x32xbf16> to vector<8x8xbf16>
      %20 = vector.extract_strided_slice %16 {offsets = [0, 0], sizes = [8, 8], strides = [1, 1]} : vector<8x16xbf16> to vector<8x8xbf16>
      %21 = vector.extract_strided_slice %18 {offsets = [0, 0], sizes = [8, 8], strides = [1, 1]} : vector<8x16xbf16> to vector<8x8xbf16>
      %cst = arith.constant dense<0.000000e+00> : vector<8x8xf32>
      %22 = tpu.matmul %19, %20, %cst {dimension_numbers = #tpu.dot_dimension_numbers<[1], [1], [0], [0], [0, 0, 1, 0], [], []>} : vector<8x8xbf16>, vector<8x8xbf16>, vector<8x8xf32> -> vector<8x8xf32>
      %c0_11 = arith.constant 0 : index
      %c0_12 = arith.constant 0 : index
      %23 = vector.load %arg8[%c0_11, %c0_12] : memref<8x4xf32, #tpu.memory_space<vmem>>, vector<8x1xf32>
      %c0_13 = arith.constant 0 : index
      %c0_14 = arith.constant 0 : index
      %24 = vector.load %arg9[%c0_13, %c0_14] : memref<8x4xf32, #tpu.memory_space<vmem>>, vector<8x1xf32>
      %c0_15 = arith.constant 0 : index
      %c0_16 = arith.constant 0 : index
      %25 = vector.load %arg10[%c0_15, %c0_16] : memref<8x32xf32, #tpu.memory_space<vmem>>, vector<8x8xf32>
      %cst_17 = arith.constant dense<0xFF800000> : vector<8xf32>
      %26 = vector.multi_reduction <maximumf>, %22, %cst_17 [1] : vector<8x8xf32> to vector<8xf32>
      %27 = vector.shape_cast %26 : vector<8xf32> to vector<8x1xf32>
      %28 = arith.maximumf %23, %27 : vector<8x1xf32>
      %29 = arith.subf %23, %28 : vector<8x1xf32>
      %30 = math.exp %29 : vector<8x1xf32>
      %31 = vector.broadcast %28 : vector<8x1xf32> to vector<8x8xf32>
      %32 = arith.subf %22, %31 : vector<8x8xf32>
      %33 = math.exp %32 : vector<8x8xf32>
      %34 = arith.mulf %30, %24 : vector<8x1xf32>
      %cst_18 = arith.constant dense<0.000000e+00> : vector<8xf32>
      %35 = vector.multi_reduction <add>, %33, %cst_18 [1] : vector<8x8xf32> to vector<8xf32>
      %36 = vector.shape_cast %35 : vector<8xf32> to vector<8x1xf32>
      %37 = arith.addf %34, %36 : vector<8x1xf32>
      %38 = vector.broadcast %30 : vector<8x1xf32> to vector<8x8xf32>
      %39 = arith.mulf %38, %25 : vector<8x8xf32>
      %40 = arith.truncf %33 : vector<8x8xf32> to vector<8x8xbf16>
      %cst_19 = arith.constant dense<0.000000e+00> : vector<8x8xf32>
      %41 = tpu.matmul %40, %21, %cst_19 {dimension_numbers = #tpu.dot_dimension_numbers<[1], [0], [0], [1], [0, 0, 1, 1], [], []>} : vector<8x8xbf16>, vector<8x8xbf16>, vector<8x8xf32> -> vector<8x8xf32>
      %42 = arith.addf %39, %41 : vector<8x8xf32>
      %c0_20 = arith.constant 0 : index
      %c0_21 = arith.constant 0 : index
      %43 = vector.load %arg8[%c0_20, %c0_21] : memref<8x4xf32, #tpu.memory_space<vmem>>, vector<8x1xf32>
      tpu.vector_store %arg8[%c0_20, %c0_21], %28 {strides = array<i32>} : memref<8x4xf32, #tpu.memory_space<vmem>>, vector<8x1xf32>,
      %c0_22 = arith.constant 0 : index
      %c0_23 = arith.constant 0 : index
      %44 = vector.load %arg9[%c0_22, %c0_23] : memref<8x4xf32, #tpu.memory_space<vmem>>, vector<8x1xf32>
      tpu.vector_store %arg9[%c0_22, %c0_23], %37 {strides = array<i32>} : memref<8x4xf32, #tpu.memory_space<vmem>>, vector<8x1xf32>,
      %c0_24 = arith.constant 0 : index
      %c0_25 = arith.constant 0 : index
      %45 = vector.load %arg10[%c0_24, %c0_25] : memref<8x32xf32, #tpu.memory_space<vmem>>, vector<8x8xf32>
      tpu.vector_store %arg10[%c0_24, %c0_25], %42 {strides = array<i32>} : memref<8x32xf32, #tpu.memory_space<vmem>>, vector<8x8xf32>,
      %46 = vector.extract_strided_slice %14 {offsets = [0, 8], sizes = [8, 8], strides = [1, 1]} : vector<8x32xbf16> to vector<8x8xbf16>
      %47 = vector.extract_strided_slice %16 {offsets = [0, 0], sizes = [8, 8], strides = [1, 1]} : vector<8x16xbf16> to vector<8x8xbf16>
      %48 = vector.extract_strided_slice %18 {offsets = [0, 0], sizes = [8, 8], strides = [1, 1]} : vector<8x16xbf16> to vector<8x8xbf16>
      %cst_26 = arith.constant dense<0.000000e+00> : vector<8x8xf32>
      %49 = tpu.matmul %46, %47, %cst_26 {dimension_numbers = #tpu.dot_dimension_numbers<[1], [1], [0], [0], [0, 0, 1, 0], [], []>} : vector<8x8xbf16>, vector<8x8xbf16>, vector<8x8xf32> -> vector<8x8xf32>
      %c0_27 = arith.constant 0 : index
      %c1 = arith.constant 1 : index
      %50 = vector.load %arg8[%c0_27, %c1] : memref<8x4xf32, #tpu.memory_space<vmem>>, vector<8x1xf32>
      %c0_28 = arith.constant 0 : index
      %c1_29 = arith.constant 1 : index
      %51 = vector.load %arg9[%c0_28, %c1_29] : memref<8x4xf32, #tpu.memory_space<vmem>>, vector<8x1xf32>
      %c0_30 = arith.constant 0 : index
      %c8 = arith.constant 8 : index
      %52 = vector.load %arg10[%c0_30, %c8] : memref<8x32xf32, #tpu.memory_space<vmem>>, vector<8x8xf32>
      %cst_31 = arith.constant dense<0xFF800000> : vector<8xf32>
      %53 = vector.multi_reduction <maximumf>, %49, %cst_31 [1] : vector<8x8xf32> to vector<8xf32>
      %54 = vector.shape_cast %53 : vector<8xf32> to vector<8x1xf32>
      %55 = arith.maximumf %50, %54 : vector<8x1xf32>
      %56 = arith.subf %50, %55 : vector<8x1xf32>
      %57 = math.exp %56 : vector<8x1xf32>
      %58 = vector.broadcast %55 : vector<8x1xf32> to vector<8x8xf32>
      %59 = arith.subf %49, %58 : vector<8x8xf32>
      %60 = math.exp %59 : vector<8x8xf32>
      %61 = arith.mulf %57, %51 : vector<8x1xf32>
      %cst_32 = arith.constant dense<0.000000e+00> : vector<8xf32>
      %62 = vector.multi_reduction <add>, %60, %cst_32 [1] : vector<8x8xf32> to vector<8xf32>
      %63 = vector.shape_cast %62 : vector<8xf32> to vector<8x1xf32>
      %64 = arith.addf %61, %63 : vector<8x1xf32>
      %65 = vector.broadcast %57 : vector<8x1xf32> to vector<8x8xf32>
      %66 = arith.mulf %65, %52 : vector<8x8xf32>
      %67 = arith.truncf %60 : vector<8x8xf32> to vector<8x8xbf16>
      %cst_33 = arith.constant dense<0.000000e+00> : vector<8x8xf32>
      %68 = tpu.matmul %67, %48, %cst_33 {dimension_numbers = #tpu.dot_dimension_numbers<[1], [0], [0], [1], [0, 0, 1, 1], [], []>} : vector<8x8xbf16>, vector<8x8xbf16>, vector<8x8xf32> -> vector<8x8xf32>
      %69 = arith.addf %66, %68 : vector<8x8xf32>
      %c0_34 = arith.constant 0 : index
      %c1_35 = arith.constant 1 : index
      %70 = vector.load %arg8[%c0_34, %c1_35] : memref<8x4xf32, #tpu.memory_space<vmem>>, vector<8x1xf32>
      tpu.vector_store %arg8[%c0_34, %c1_35], %55 {strides = array<i32>} : memref<8x4xf32, #tpu.memory_space<vmem>>, vector<8x1xf32>,
      %c0_36 = arith.constant 0 : index
      %c1_37 = arith.constant 1 : index
      %71 = vector.load %arg9[%c0_36, %c1_37] : memref<8x4xf32, #tpu.memory_space<vmem>>, vector<8x1xf32>
      tpu.vector_store %arg9[%c0_36, %c1_37], %64 {strides = array<i32>} : memref<8x4xf32, #tpu.memory_space<vmem>>, vector<8x1xf32>,
      %c0_38 = arith.constant 0 : index
      %c8_39 = arith.constant 8 : index
      %72 = vector.load %arg10[%c0_38, %c8_39] : memref<8x32xf32, #tpu.memory_space<vmem>>, vector<8x8xf32>
      tpu.vector_store %arg10[%c0_38, %c8_39], %69 {strides = array<i32>} : memref<8x32xf32, #tpu.memory_space<vmem>>, vector<8x8xf32>,
      %73 = vector.extract_strided_slice %14 {offsets = [0, 16], sizes = [8, 8], strides = [1, 1]} : vector<8x32xbf16> to vector<8x8xbf16>
      %74 = vector.extract_strided_slice %16 {offsets = [0, 8], sizes = [8, 8], strides = [1, 1]} : vector<8x16xbf16> to vector<8x8xbf16>
      %75 = vector.extract_strided_slice %18 {offsets = [0, 8], sizes = [8, 8], strides = [1, 1]} : vector<8x16xbf16> to vector<8x8xbf16>
      %cst_40 = arith.constant dense<0.000000e+00> : vector<8x8xf32>
      %76 = tpu.matmul %73, %74, %cst_40 {dimension_numbers = #tpu.dot_dimension_numbers<[1], [1], [0], [0], [0, 0, 1, 0], [], []>} : vector<8x8xbf16>, vector<8x8xbf16>, vector<8x8xf32> -> vector<8x8xf32>
      %c0_41 = arith.constant 0 : index
      %c2 = arith.constant 2 : index
      %77 = vector.load %arg8[%c0_41, %c2] : memref<8x4xf32, #tpu.memory_space<vmem>>, vector<8x1xf32>
      %c0_42 = arith.constant 0 : index
      %c2_43 = arith.constant 2 : index
      %78 = vector.load %arg9[%c0_42, %c2_43] : memref<8x4xf32, #tpu.memory_space<vmem>>, vector<8x1xf32>
      %c0_44 = arith.constant 0 : index
      %c16 = arith.constant 16 : index
      %79 = vector.load %arg10[%c0_44, %c16] : memref<8x32xf32, #tpu.memory_space<vmem>>, vector<8x8xf32>
      %cst_45 = arith.constant dense<0xFF800000> : vector<8xf32>
      %80 = vector.multi_reduction <maximumf>, %76, %cst_45 [1] : vector<8x8xf32> to vector<8xf32>
      %81 = vector.shape_cast %80 : vector<8xf32> to vector<8x1xf32>
      %82 = arith.maximumf %77, %81 : vector<8x1xf32>
      %83 = arith.subf %77, %82 : vector<8x1xf32>
      %84 = math.exp %83 : vector<8x1xf32>
      %85 = vector.broadcast %82 : vector<8x1xf32> to vector<8x8xf32>
      %86 = arith.subf %76, %85 : vector<8x8xf32>
      %87 = math.exp %86 : vector<8x8xf32>
      %88 = arith.mulf %84, %78 : vector<8x1xf32>
      %cst_46 = arith.constant dense<0.000000e+00> : vector<8xf32>
      %89 = vector.multi_reduction <add>, %87, %cst_46 [1] : vector<8x8xf32> to vector<8xf32>
      %90 = vector.shape_cast %89 : vector<8xf32> to vector<8x1xf32>
      %91 = arith.addf %88, %90 : vector<8x1xf32>
      %92 = vector.broadcast %84 : vector<8x1xf32> to vector<8x8xf32>
      %93 = arith.mulf %92, %79 : vector<8x8xf32>
      %94 = arith.truncf %87 : vector<8x8xf32> to vector<8x8xbf16>
      %cst_47 = arith.constant dense<0.000000e+00> : vector<8x8xf32>
      %95 = tpu.matmul %94, %75, %cst_47 {dimension_numbers = #tpu.dot_dimension_numbers<[1], [0], [0], [1], [0, 0, 1, 1], [], []>} : vector<8x8xbf16>, vector<8x8xbf16>, vector<8x8xf32> -> vector<8x8xf32>
      %96 = arith.addf %93, %95 : vector<8x8xf32>
      %c0_48 = arith.constant 0 : index
      %c2_49 = arith.constant 2 : index
      %97 = vector.load %arg8[%c0_48, %c2_49] : memref<8x4xf32, #tpu.memory_space<vmem>>, vector<8x1xf32>
      tpu.vector_store %arg8[%c0_48, %c2_49], %82 {strides = array<i32>} : memref<8x4xf32, #tpu.memory_space<vmem>>, vector<8x1xf32>,
      %c0_50 = arith.constant 0 : index
      %c2_51 = arith.constant 2 : index
      %98 = vector.load %arg9[%c0_50, %c2_51] : memref<8x4xf32, #tpu.memory_space<vmem>>, vector<8x1xf32>
      tpu.vector_store %arg9[%c0_50, %c2_51], %91 {strides = array<i32>} : memref<8x4xf32, #tpu.memory_space<vmem>>, vector<8x1xf32>,
      %c0_52 = arith.constant 0 : index
      %c16_53 = arith.constant 16 : index
      %99 = vector.load %arg10[%c0_52, %c16_53] : memref<8x32xf32, #tpu.memory_space<vmem>>, vector<8x8xf32>
      tpu.vector_store %arg10[%c0_52, %c16_53], %96 {strides = array<i32>} : memref<8x32xf32, #tpu.memory_space<vmem>>, vector<8x8xf32>,
      %100 = vector.extract_strided_slice %14 {offsets = [0, 24], sizes = [8, 8], strides = [1, 1]} : vector<8x32xbf16> to vector<8x8xbf16>
      %101 = vector.extract_strided_slice %16 {offsets = [0, 8], sizes = [8, 8], strides = [1, 1]} : vector<8x16xbf16> to vector<8x8xbf16>
      %102 = vector.extract_strided_slice %18 {offsets = [0, 8], sizes = [8, 8], strides = [1, 1]} : vector<8x16xbf16> to vector<8x8xbf16>
      %cst_54 = arith.constant dense<0.000000e+00> : vector<8x8xf32>
      %103 = tpu.matmul %100, %101, %cst_54 {dimension_numbers = #tpu.dot_dimension_numbers<[1], [1], [0], [0], [0, 0, 1, 0], [], []>} : vector<8x8xbf16>, vector<8x8xbf16>, vector<8x8xf32> -> vector<8x8xf32>
      %c0_55 = arith.constant 0 : index
      %c3 = arith.constant 3 : index
      %104 = vector.load %arg8[%c0_55, %c3] : memref<8x4xf32, #tpu.memory_space<vmem>>, vector<8x1xf32>
      %c0_56 = arith.constant 0 : index
      %c3_57 = arith.constant 3 : index
      %105 = vector.load %arg9[%c0_56, %c3_57] : memref<8x4xf32, #tpu.memory_space<vmem>>, vector<8x1xf32>
      %c0_58 = arith.constant 0 : index
      %c24 = arith.constant 24 : index
      %106 = vector.load %arg10[%c0_58, %c24] : memref<8x32xf32, #tpu.memory_space<vmem>>, vector<8x8xf32>
      %cst_59 = arith.constant dense<0xFF800000> : vector<8xf32>
      %107 = vector.multi_reduction <maximumf>, %103, %cst_59 [1] : vector<8x8xf32> to vector<8xf32>
      %108 = vector.shape_cast %107 : vector<8xf32> to vector<8x1xf32>
      %109 = arith.maximumf %104, %108 : vector<8x1xf32>
      %110 = arith.subf %104, %109 : vector<8x1xf32>
      %111 = math.exp %110 : vector<8x1xf32>
      %112 = vector.broadcast %109 : vector<8x1xf32> to vector<8x8xf32>
      %113 = arith.subf %103, %112 : vector<8x8xf32>
      %114 = math.exp %113 : vector<8x8xf32>
      %115 = arith.mulf %111, %105 : vector<8x1xf32>
      %cst_60 = arith.constant dense<0.000000e+00> : vector<8xf32>
      %116 = vector.multi_reduction <add>, %114, %cst_60 [1] : vector<8x8xf32> to vector<8xf32>
      %117 = vector.shape_cast %116 : vector<8xf32> to vector<8x1xf32>
      %118 = arith.addf %115, %117 : vector<8x1xf32>
      %119 = vector.broadcast %111 : vector<8x1xf32> to vector<8x8xf32>
      %120 = arith.mulf %119, %106 : vector<8x8xf32>
      %121 = arith.truncf %114 : vector<8x8xf32> to vector<8x8xbf16>
      %cst_61 = arith.constant dense<0.000000e+00> : vector<8x8xf32>
      %122 = tpu.matmul %121, %102, %cst_61 {dimension_numbers = #tpu.dot_dimension_numbers<[1], [0], [0], [1], [0, 0, 1, 1], [], []>} : vector<8x8xbf16>, vector<8x8xbf16>, vector<8x8xf32> -> vector<8x8xf32>
      %123 = arith.addf %120, %122 : vector<8x8xf32>
      %c0_62 = arith.constant 0 : index
      %c3_63 = arith.constant 3 : index
      %124 = vector.load %arg8[%c0_62, %c3_63] : memref<8x4xf32, #tpu.memory_space<vmem>>, vector<8x1xf32>
      tpu.vector_store %arg8[%c0_62, %c3_63], %109 {strides = array<i32>} : memref<8x4xf32, #tpu.memory_space<vmem>>, vector<8x1xf32>,
      %c0_64 = arith.constant 0 : index
      %c3_65 = arith.constant 3 : index
      %125 = vector.load %arg9[%c0_64, %c3_65] : memref<8x4xf32, #tpu.memory_space<vmem>>, vector<8x1xf32>
      tpu.vector_store %arg9[%c0_64, %c3_65], %118 {strides = array<i32>} : memref<8x4xf32, #tpu.memory_space<vmem>>, vector<8x1xf32>,
      %c0_66 = arith.constant 0 : index
      %c24_67 = arith.constant 24 : index
      %126 = vector.load %arg10[%c0_66, %c24_67] : memref<8x32xf32, #tpu.memory_space<vmem>>, vector<8x8xf32>
      tpu.vector_store %arg10[%c0_66, %c24_67], %123 {strides = array<i32>} : memref<8x32xf32, #tpu.memory_space<vmem>>, vector<8x8xf32>,
    } else {
    }
    %10 = arith.cmpi eq, %3, %1 : i32
    %11 = arith.extui %10 : i1 to i32
    %c0_i32_2 = arith.constant 0 : i32
    %12 = arith.cmpi ne, %11, %c0_i32_2 : i32
    scf.if %12 {
      %c0 = arith.constant 0 : index
      %c0_3 = arith.constant 0 : index
      %c0_4 = arith.constant 0 : index
      %13 = vector.load %arg4[%c0, %c0_3, %c0_4] : memref<1x8x32xbf16, #tpu.memory_space<vmem>>, vector<1x8x32xbf16>
      %14 = vector.shape_cast %13 : vector<1x8x32xbf16> to vector<8x32xbf16>
      %c0_5 = arith.constant 0 : index
      %c0_6 = arith.constant 0 : index
      %c0_7 = arith.constant 0 : index
      %15 = vector.load %arg5[%c0_5, %c0_6, %c0_7] : memref<1x8x16xbf16, #tpu.memory_space<vmem>>, vector<1x8x16xbf16>
      %16 = vector.shape_cast %15 : vector<1x8x16xbf16> to vector<8x16xbf16>
      %c0_8 = arith.constant 0 : index
      %c0_9 = arith.constant 0 : index
      %c0_10 = arith.constant 0 : index
      %17 = vector.load %arg6[%c0_8, %c0_9, %c0_10] : memref<1x8x16xbf16, #tpu.memory_space<vmem>>, vector<1x8x16xbf16>
      %18 = vector.shape_cast %17 : vector<1x8x16xbf16> to vector<8x16xbf16>
      %19 = tpu.iota {dimensions = array<i32: 0>} : vector<8x8xi32>
      %20 = tpu.iota {dimensions = array<i32: 1>} : vector<8x8xi32>
      %21 = arith.cmpi sle, %20, %19 : vector<8x8xi32>
      %22 = vector.extract_strided_slice %14 {offsets = [0, 0], sizes = [8, 8], strides = [1, 1]} : vector<8x32xbf16> to vector<8x8xbf16>
      %23 = vector.extract_strided_slice %16 {offsets = [0, 0], sizes = [8, 8], strides = [1, 1]} : vector<8x16xbf16> to vector<8x8xbf16>
      %24 = vector.extract_strided_slice %18 {offsets = [0, 0], sizes = [8, 8], strides = [1, 1]} : vector<8x16xbf16> to vector<8x8xbf16>
      %cst = arith.constant dense<0.000000e+00> : vector<8x8xf32>
      %25 = tpu.matmul %22, %23, %cst {dimension_numbers = #tpu.dot_dimension_numbers<[1], [1], [0], [0], [0, 0, 1, 0], [], []>} : vector<8x8xbf16>, vector<8x8xbf16>, vector<8x8xf32> -> vector<8x8xf32>
      %cst_11 = arith.constant -1.000000e+30 : f32
      %26 = vector.broadcast %cst_11 : f32 to vector<8x8xf32>
      %27 = arith.select %21, %25, %26 : vector<8x8xi1>, vector<8x8xf32>
      %c0_12 = arith.constant 0 : index
      %c0_13 = arith.constant 0 : index
      %28 = vector.load %arg8[%c0_12, %c0_13] : memref<8x4xf32, #tpu.memory_space<vmem>>, vector<8x1xf32>
      %c0_14 = arith.constant 0 : index
      %c0_15 = arith.constant 0 : index
      %29 = vector.load %arg9[%c0_14, %c0_15] : memref<8x4xf32, #tpu.memory_space<vmem>>, vector<8x1xf32>
      %c0_16 = arith.constant 0 : index
      %c0_17 = arith.constant 0 : index
      %30 = vector.load %arg10[%c0_16, %c0_17] : memref<8x32xf32, #tpu.memory_space<vmem>>, vector<8x8xf32>
      %cst_18 = arith.constant dense<0xFF800000> : vector<8xf32>
      %31 = vector.multi_reduction <maximumf>, %27, %cst_18 [1] : vector<8x8xf32> to vector<8xf32>
      %32 = vector.shape_cast %31 : vector<8xf32> to vector<8x1xf32>
      %33 = arith.maximumf %28, %32 : vector<8x1xf32>
      %34 = arith.subf %28, %33 : vector<8x1xf32>
      %35 = math.exp %34 : vector<8x1xf32>
      %36 = vector.broadcast %33 : vector<8x1xf32> to vector<8x8xf32>
      %37 = arith.subf %27, %36 : vector<8x8xf32>
      %38 = math.exp %37 : vector<8x8xf32>
      %39 = arith.mulf %35, %29 : vector<8x1xf32>
      %cst_19 = arith.constant dense<0.000000e+00> : vector<8xf32>
      %40 = vector.multi_reduction <add>, %38, %cst_19 [1] : vector<8x8xf32> to vector<8xf32>
      %41 = vector.shape_cast %40 : vector<8xf32> to vector<8x1xf32>
      %42 = arith.addf %39, %41 : vector<8x1xf32>
      %43 = vector.broadcast %35 : vector<8x1xf32> to vector<8x8xf32>
      %44 = arith.mulf %43, %30 : vector<8x8xf32>
      %45 = arith.truncf %38 : vector<8x8xf32> to vector<8x8xbf16>
      %cst_20 = arith.constant dense<0.000000e+00> : vector<8x8xf32>
      %46 = tpu.matmul %45, %24, %cst_20 {dimension_numbers = #tpu.dot_dimension_numbers<[1], [0], [0], [1], [0, 0, 1, 1], [], []>} : vector<8x8xbf16>, vector<8x8xbf16>, vector<8x8xf32> -> vector<8x8xf32>
      %47 = arith.addf %44, %46 : vector<8x8xf32>
      %c0_21 = arith.constant 0 : index
      %c0_22 = arith.constant 0 : index
      %48 = vector.load %arg8[%c0_21, %c0_22] : memref<8x4xf32, #tpu.memory_space<vmem>>, vector<8x1xf32>
      tpu.vector_store %arg8[%c0_21, %c0_22], %33 {strides = array<i32>} : memref<8x4xf32, #tpu.memory_space<vmem>>, vector<8x1xf32>,
      %c0_23 = arith.constant 0 : index
      %c0_24 = arith.constant 0 : index
      %49 = vector.load %arg9[%c0_23, %c0_24] : memref<8x4xf32, #tpu.memory_space<vmem>>, vector<8x1xf32>
      tpu.vector_store %arg9[%c0_23, %c0_24], %42 {strides = array<i32>} : memref<8x4xf32, #tpu.memory_space<vmem>>, vector<8x1xf32>,
      %c0_25 = arith.constant 0 : index
      %c0_26 = arith.constant 0 : index
      %50 = vector.load %arg10[%c0_25, %c0_26] : memref<8x32xf32, #tpu.memory_space<vmem>>, vector<8x8xf32>
      tpu.vector_store %arg10[%c0_25, %c0_26], %47 {strides = array<i32>} : memref<8x32xf32, #tpu.memory_space<vmem>>, vector<8x8xf32>,
      %51 = vector.extract_strided_slice %14 {offsets = [0, 8], sizes = [8, 8], strides = [1, 1]} : vector<8x32xbf16> to vector<8x8xbf16>
      %52 = vector.extract_strided_slice %16 {offsets = [0, 0], sizes = [8, 8], strides = [1, 1]} : vector<8x16xbf16> to vector<8x8xbf16>
      %53 = vector.extract_strided_slice %18 {offsets = [0, 0], sizes = [8, 8], strides = [1, 1]} : vector<8x16xbf16> to vector<8x8xbf16>
      %cst_27 = arith.constant dense<0.000000e+00> : vector<8x8xf32>
      %54 = tpu.matmul %51, %52, %cst_27 {dimension_numbers = #tpu.dot_dimension_numbers<[1], [1], [0], [0], [0, 0, 1, 0], [], []>} : vector<8x8xbf16>, vector<8x8xbf16>, vector<8x8xf32> -> vector<8x8xf32>
      %cst_28 = arith.constant -1.000000e+30 : f32
      %55 = vector.broadcast %cst_28 : f32 to vector<8x8xf32>
      %56 = arith.select %21, %54, %55 : vector<8x8xi1>, vector<8x8xf32>
      %c0_29 = arith.constant 0 : index
      %c1 = arith.constant 1 : index
      %57 = vector.load %arg8[%c0_29, %c1] : memref<8x4xf32, #tpu.memory_space<vmem>>, vector<8x1xf32>
      %c0_30 = arith.constant 0 : index
      %c1_31 = arith.constant 1 : index
      %58 = vector.load %arg9[%c0_30, %c1_31] : memref<8x4xf32, #tpu.memory_space<vmem>>, vector<8x1xf32>
      %c0_32 = arith.constant 0 : index
      %c8 = arith.constant 8 : index
      %59 = vector.load %arg10[%c0_32, %c8] : memref<8x32xf32, #tpu.memory_space<vmem>>, vector<8x8xf32>
      %cst_33 = arith.constant dense<0xFF800000> : vector<8xf32>
      %60 = vector.multi_reduction <maximumf>, %56, %cst_33 [1] : vector<8x8xf32> to vector<8xf32>
      %61 = vector.shape_cast %60 : vector<8xf32> to vector<8x1xf32>
      %62 = arith.maximumf %57, %61 : vector<8x1xf32>
      %63 = arith.subf %57, %62 : vector<8x1xf32>
      %64 = math.exp %63 : vector<8x1xf32>
      %65 = vector.broadcast %62 : vector<8x1xf32> to vector<8x8xf32>
      %66 = arith.subf %56, %65 : vector<8x8xf32>
      %67 = math.exp %66 : vector<8x8xf32>
      %68 = arith.mulf %64, %58 : vector<8x1xf32>
      %cst_34 = arith.constant dense<0.000000e+00> : vector<8xf32>
      %69 = vector.multi_reduction <add>, %67, %cst_34 [1] : vector<8x8xf32> to vector<8xf32>
      %70 = vector.shape_cast %69 : vector<8xf32> to vector<8x1xf32>
      %71 = arith.addf %68, %70 : vector<8x1xf32>
      %72 = vector.broadcast %64 : vector<8x1xf32> to vector<8x8xf32>
      %73 = arith.mulf %72, %59 : vector<8x8xf32>
      %74 = arith.truncf %67 : vector<8x8xf32> to vector<8x8xbf16>
      %cst_35 = arith.constant dense<0.000000e+00> : vector<8x8xf32>
      %75 = tpu.matmul %74, %53, %cst_35 {dimension_numbers = #tpu.dot_dimension_numbers<[1], [0], [0], [1], [0, 0, 1, 1], [], []>} : vector<8x8xbf16>, vector<8x8xbf16>, vector<8x8xf32> -> vector<8x8xf32>
      %76 = arith.addf %73, %75 : vector<8x8xf32>
      %c0_36 = arith.constant 0 : index
      %c1_37 = arith.constant 1 : index
      %77 = vector.load %arg8[%c0_36, %c1_37] : memref<8x4xf32, #tpu.memory_space<vmem>>, vector<8x1xf32>
      tpu.vector_store %arg8[%c0_36, %c1_37], %62 {strides = array<i32>} : memref<8x4xf32, #tpu.memory_space<vmem>>, vector<8x1xf32>,
      %c0_38 = arith.constant 0 : index
      %c1_39 = arith.constant 1 : index
      %78 = vector.load %arg9[%c0_38, %c1_39] : memref<8x4xf32, #tpu.memory_space<vmem>>, vector<8x1xf32>
      tpu.vector_store %arg9[%c0_38, %c1_39], %71 {strides = array<i32>} : memref<8x4xf32, #tpu.memory_space<vmem>>, vector<8x1xf32>,
      %c0_40 = arith.constant 0 : index
      %c8_41 = arith.constant 8 : index
      %79 = vector.load %arg10[%c0_40, %c8_41] : memref<8x32xf32, #tpu.memory_space<vmem>>, vector<8x8xf32>
      tpu.vector_store %arg10[%c0_40, %c8_41], %76 {strides = array<i32>} : memref<8x32xf32, #tpu.memory_space<vmem>>, vector<8x8xf32>,
      %80 = vector.extract_strided_slice %14 {offsets = [0, 16], sizes = [8, 8], strides = [1, 1]} : vector<8x32xbf16> to vector<8x8xbf16>
      %81 = vector.extract_strided_slice %16 {offsets = [0, 8], sizes = [8, 8], strides = [1, 1]} : vector<8x16xbf16> to vector<8x8xbf16>
      %82 = vector.extract_strided_slice %18 {offsets = [0, 8], sizes = [8, 8], strides = [1, 1]} : vector<8x16xbf16> to vector<8x8xbf16>
      %cst_42 = arith.constant dense<0.000000e+00> : vector<8x8xf32>
      %83 = tpu.matmul %80, %81, %cst_42 {dimension_numbers = #tpu.dot_dimension_numbers<[1], [1], [0], [0], [0, 0, 1, 0], [], []>} : vector<8x8xbf16>, vector<8x8xbf16>, vector<8x8xf32> -> vector<8x8xf32>
      %cst_43 = arith.constant -1.000000e+30 : f32
      %84 = vector.broadcast %cst_43 : f32 to vector<8x8xf32>
      %85 = arith.select %21, %83, %84 : vector<8x8xi1>, vector<8x8xf32>
      %c0_44 = arith.constant 0 : index
      %c2 = arith.constant 2 : index
      %86 = vector.load %arg8[%c0_44, %c2] : memref<8x4xf32, #tpu.memory_space<vmem>>, vector<8x1xf32>
      %c0_45 = arith.constant 0 : index
      %c2_46 = arith.constant 2 : index
      %87 = vector.load %arg9[%c0_45, %c2_46] : memref<8x4xf32, #tpu.memory_space<vmem>>, vector<8x1xf32>
      %c0_47 = arith.constant 0 : index
      %c16 = arith.constant 16 : index
      %88 = vector.load %arg10[%c0_47, %c16] : memref<8x32xf32, #tpu.memory_space<vmem>>, vector<8x8xf32>
      %cst_48 = arith.constant dense<0xFF800000> : vector<8xf32>
      %89 = vector.multi_reduction <maximumf>, %85, %cst_48 [1] : vector<8x8xf32> to vector<8xf32>
      %90 = vector.shape_cast %89 : vector<8xf32> to vector<8x1xf32>
      %91 = arith.maximumf %86, %90 : vector<8x1xf32>
      %92 = arith.subf %86, %91 : vector<8x1xf32>
      %93 = math.exp %92 : vector<8x1xf32>
      %94 = vector.broadcast %91 : vector<8x1xf32> to vector<8x8xf32>
      %95 = arith.subf %85, %94 : vector<8x8xf32>
      %96 = math.exp %95 : vector<8x8xf32>
      %97 = arith.mulf %93, %87 : vector<8x1xf32>
      %cst_49 = arith.constant dense<0.000000e+00> : vector<8xf32>
      %98 = vector.multi_reduction <add>, %96, %cst_49 [1] : vector<8x8xf32> to vector<8xf32>
      %99 = vector.shape_cast %98 : vector<8xf32> to vector<8x1xf32>
      %100 = arith.addf %97, %99 : vector<8x1xf32>
      %101 = vector.broadcast %93 : vector<8x1xf32> to vector<8x8xf32>
      %102 = arith.mulf %101, %88 : vector<8x8xf32>
      %103 = arith.truncf %96 : vector<8x8xf32> to vector<8x8xbf16>
      %cst_50 = arith.constant dense<0.000000e+00> : vector<8x8xf32>
      %104 = tpu.matmul %103, %82, %cst_50 {dimension_numbers = #tpu.dot_dimension_numbers<[1], [0], [0], [1], [0, 0, 1, 1], [], []>} : vector<8x8xbf16>, vector<8x8xbf16>, vector<8x8xf32> -> vector<8x8xf32>
      %105 = arith.addf %102, %104 : vector<8x8xf32>
      %c0_51 = arith.constant 0 : index
      %c2_52 = arith.constant 2 : index
      %106 = vector.load %arg8[%c0_51, %c2_52] : memref<8x4xf32, #tpu.memory_space<vmem>>, vector<8x1xf32>
      tpu.vector_store %arg8[%c0_51, %c2_52], %91 {strides = array<i32>} : memref<8x4xf32, #tpu.memory_space<vmem>>, vector<8x1xf32>,
      %c0_53 = arith.constant 0 : index
      %c2_54 = arith.constant 2 : index
      %107 = vector.load %arg9[%c0_53, %c2_54] : memref<8x4xf32, #tpu.memory_space<vmem>>, vector<8x1xf32>
      tpu.vector_store %arg9[%c0_53, %c2_54], %100 {strides = array<i32>} : memref<8x4xf32, #tpu.memory_space<vmem>>, vector<8x1xf32>,
      %c0_55 = arith.constant 0 : index
      %c16_56 = arith.constant 16 : index
      %108 = vector.load %arg10[%c0_55, %c16_56] : memref<8x32xf32, #tpu.memory_space<vmem>>, vector<8x8xf32>
      tpu.vector_store %arg10[%c0_55, %c16_56], %105 {strides = array<i32>} : memref<8x32xf32, #tpu.memory_space<vmem>>, vector<8x8xf32>,
      %109 = vector.extract_strided_slice %14 {offsets = [0, 24], sizes = [8, 8], strides = [1, 1]} : vector<8x32xbf16> to vector<8x8xbf16>
      %110 = vector.extract_strided_slice %16 {offsets = [0, 8], sizes = [8, 8], strides = [1, 1]} : vector<8x16xbf16> to vector<8x8xbf16>
      %111 = vector.extract_strided_slice %18 {offsets = [0, 8], sizes = [8, 8], strides = [1, 1]} : vector<8x16xbf16> to vector<8x8xbf16>
      %cst_57 = arith.constant dense<0.000000e+00> : vector<8x8xf32>
      %112 = tpu.matmul %109, %110, %cst_57 {dimension_numbers = #tpu.dot_dimension_numbers<[1], [1], [0], [0], [0, 0, 1, 0], [], []>} : vector<8x8xbf16>, vector<8x8xbf16>, vector<8x8xf32> -> vector<8x8xf32>
      %cst_58 = arith.constant -1.000000e+30 : f32
      %113 = vector.broadcast %cst_58 : f32 to vector<8x8xf32>
      %114 = arith.select %21, %112, %113 : vector<8x8xi1>, vector<8x8xf32>
      %c0_59 = arith.constant 0 : index
      %c3 = arith.constant 3 : index
      %115 = vector.load %arg8[%c0_59, %c3] : memref<8x4xf32, #tpu.memory_space<vmem>>, vector<8x1xf32>
      %c0_60 = arith.constant 0 : index
      %c3_61 = arith.constant 3 : index
      %116 = vector.load %arg9[%c0_60, %c3_61] : memref<8x4xf32, #tpu.memory_space<vmem>>, vector<8x1xf32>
      %c0_62 = arith.constant 0 : index
      %c24 = arith.constant 24 : index
      %117 = vector.load %arg10[%c0_62, %c24] : memref<8x32xf32, #tpu.memory_space<vmem>>, vector<8x8xf32>
      %cst_63 = arith.constant dense<0xFF800000> : vector<8xf32>
      %118 = vector.multi_reduction <maximumf>, %114, %cst_63 [1] : vector<8x8xf32> to vector<8xf32>
      %119 = vector.shape_cast %118 : vector<8xf32> to vector<8x1xf32>
      %120 = arith.maximumf %115, %119 : vector<8x1xf32>
      %121 = arith.subf %115, %120 : vector<8x1xf32>
      %122 = math.exp %121 : vector<8x1xf32>
      %123 = vector.broadcast %120 : vector<8x1xf32> to vector<8x8xf32>
      %124 = arith.subf %114, %123 : vector<8x8xf32>
      %125 = math.exp %124 : vector<8x8xf32>
      %126 = arith.mulf %122, %116 : vector<8x1xf32>
      %cst_64 = arith.constant dense<0.000000e+00> : vector<8xf32>
      %127 = vector.multi_reduction <add>, %125, %cst_64 [1] : vector<8x8xf32> to vector<8xf32>
      %128 = vector.shape_cast %127 : vector<8xf32> to vector<8x1xf32>
      %129 = arith.addf %126, %128 : vector<8x1xf32>
      %130 = vector.broadcast %122 : vector<8x1xf32> to vector<8x8xf32>
      %131 = arith.mulf %130, %117 : vector<8x8xf32>
      %132 = arith.truncf %125 : vector<8x8xf32> to vector<8x8xbf16>
      %cst_65 = arith.constant dense<0.000000e+00> : vector<8x8xf32>
      %133 = tpu.matmul %132, %111, %cst_65 {dimension_numbers = #tpu.dot_dimension_numbers<[1], [0], [0], [1], [0, 0, 1, 1], [], []>} : vector<8x8xbf16>, vector<8x8xbf16>, vector<8x8xf32> -> vector<8x8xf32>
      %134 = arith.addf %131, %133 : vector<8x8xf32>
      %c0_66 = arith.constant 0 : index
      %c3_67 = arith.constant 3 : index
      %135 = vector.load %arg8[%c0_66, %c3_67] : memref<8x4xf32, #tpu.memory_space<vmem>>, vector<8x1xf32>
      tpu.vector_store %arg8[%c0_66, %c3_67], %120 {strides = array<i32>} : memref<8x4xf32, #tpu.memory_space<vmem>>, vector<8x1xf32>,
      %c0_68 = arith.constant 0 : index
      %c3_69 = arith.constant 3 : index
      %136 = vector.load %arg9[%c0_68, %c3_69] : memref<8x4xf32, #tpu.memory_space<vmem>>, vector<8x1xf32>
      tpu.vector_store %arg9[%c0_68, %c3_69], %129 {strides = array<i32>} : memref<8x4xf32, #tpu.memory_space<vmem>>, vector<8x1xf32>,
      %c0_70 = arith.constant 0 : index
      %c24_71 = arith.constant 24 : index
      %137 = vector.load %arg10[%c0_70, %c24_71] : memref<8x32xf32, #tpu.memory_space<vmem>>, vector<8x8xf32>
      tpu.vector_store %arg10[%c0_70, %c24_71], %134 {strides = array<i32>} : memref<8x32xf32, #tpu.memory_space<vmem>>, vector<8x8xf32>,
      %c0_72 = arith.constant 0 : index
      %c0_73 = arith.constant 0 : index
      %138 = vector.load %arg9[%c0_72, %c0_73] : memref<8x4xf32, #tpu.memory_space<vmem>>, vector<8x1xf32>
      %139 = tpu.reciprocal %138 {approx = true} : vector<8x1xf32> -> vector<8x1xf32>
      %c0_74 = arith.constant 0 : index
      %c0_75 = arith.constant 0 : index
      %140 = vector.load %arg10[%c0_74, %c0_75] : memref<8x32xf32, #tpu.memory_space<vmem>>, vector<8x8xf32>
      %141 = vector.broadcast %139 : vector<8x1xf32> to vector<8x8xf32>
      %142 = arith.mulf %140, %141 : vector<8x8xf32>
      %143 = arith.truncf %142 : vector<8x8xf32> to vector<8x8xbf16>
      %c0_76 = arith.constant 0 : index
      %c0_77 = arith.constant 0 : index
      %c0_78 = arith.constant 0 : index
      %144 = vector.load %arg7[%c0_76, %c0_77, %c0_78] : memref<1x8x32xbf16, #tpu.memory_space<vmem>>, vector<1x8x8xbf16>
      %145 = vector.shape_cast %144 : vector<1x8x8xbf16> to vector<8x8xbf16>
      %146 = vector.shape_cast %143 : vector<8x8xbf16> to vector<1x8x8xbf16>
      tpu.vector_store %arg7[%c0_76, %c0_77, %c0_78], %146 {strides = array<i32>} : memref<1x8x32xbf16, #tpu.memory_space<vmem>>, vector<1x8x8xbf16>,
      %c0_79 = arith.constant 0 : index
      %c1_80 = arith.constant 1 : index
      %147 = vector.load %arg9[%c0_79, %c1_80] : memref<8x4xf32, #tpu.memory_space<vmem>>, vector<8x1xf32>
      %148 = tpu.reciprocal %147 {approx = true} : vector<8x1xf32> -> vector<8x1xf32>
      %c0_81 = arith.constant 0 : index
      %c8_82 = arith.constant 8 : index
      %149 = vector.load %arg10[%c0_81, %c8_82] : memref<8x32xf32, #tpu.memory_space<vmem>>, vector<8x8xf32>
      %150 = vector.broadcast %148 : vector<8x1xf32> to vector<8x8xf32>
      %151 = arith.mulf %149, %150 : vector<8x8xf32>
      %152 = arith.truncf %151 : vector<8x8xf32> to vector<8x8xbf16>
      %c0_83 = arith.constant 0 : index
      %c0_84 = arith.constant 0 : index
      %c8_85 = arith.constant 8 : index
      %153 = vector.load %arg7[%c0_83, %c0_84, %c8_85] : memref<1x8x32xbf16, #tpu.memory_space<vmem>>, vector<1x8x8xbf16>
      %154 = vector.shape_cast %153 : vector<1x8x8xbf16> to vector<8x8xbf16>
      %155 = vector.shape_cast %152 : vector<8x8xbf16> to vector<1x8x8xbf16>
      tpu.vector_store %arg7[%c0_83, %c0_84, %c8_85], %155 {strides = array<i32>} : memref<1x8x32xbf16, #tpu.memory_space<vmem>>, vector<1x8x8xbf16>,
      %c0_86 = arith.constant 0 : index
      %c2_87 = arith.constant 2 : index
      %156 = vector.load %arg9[%c0_86, %c2_87] : memref<8x4xf32, #tpu.memory_space<vmem>>, vector<8x1xf32>
      %157 = tpu.reciprocal %156 {approx = true} : vector<8x1xf32> -> vector<8x1xf32>
      %c0_88 = arith.constant 0 : index
      %c16_89 = arith.constant 16 : index
      %158 = vector.load %arg10[%c0_88, %c16_89] : memref<8x32xf32, #tpu.memory_space<vmem>>, vector<8x8xf32>
      %159 = vector.broadcast %157 : vector<8x1xf32> to vector<8x8xf32>
      %160 = arith.mulf %158, %159 : vector<8x8xf32>
      %161 = arith.truncf %160 : vector<8x8xf32> to vector<8x8xbf16>
      %c0_90 = arith.constant 0 : index
      %c0_91 = arith.constant 0 : index
      %c16_92 = arith.constant 16 : index
      %162 = vector.load %arg7[%c0_90, %c0_91, %c16_92] : memref<1x8x32xbf16, #tpu.memory_space<vmem>>, vector<1x8x8xbf16>
      %163 = vector.shape_cast %162 : vector<1x8x8xbf16> to vector<8x8xbf16>
      %164 = vector.shape_cast %161 : vector<8x8xbf16> to vector<1x8x8xbf16>
      tpu.vector_store %arg7[%c0_90, %c0_91, %c16_92], %164 {strides = array<i32>} : memref<1x8x32xbf16, #tpu.memory_space<vmem>>, vector<1x8x8xbf16>,
      %c0_93 = arith.constant 0 : index
      %c3_94 = arith.constant 3 : index
      %165 = vector.load %arg9[%c0_93, %c3_94] : memref<8x4xf32, #tpu.memory_space<vmem>>, vector<8x1xf32>
      %166 = tpu.reciprocal %165 {approx = true} : vector<8x1xf32> -> vector<8x1xf32>
      %c0_95 = arith.constant 0 : index
      %c24_96 = arith.constant 24 : index
      %167 = vector.load %arg10[%c0_95, %c24_96] : memref<8x32xf32, #tpu.memory_space<vmem>>, vector<8x8xf32>
      %168 = vector.broadcast %166 : vector<8x1xf32> to vector<8x8xf32>
      %169 = arith.mulf %167, %168 : vector<8x8xf32>
      %170 = arith.truncf %169 : vector<8x8xf32> to vector<8x8xbf16>
      %c0_97 = arith.constant 0 : index
      %c0_98 = arith.constant 0 : index
      %c24_99 = arith.constant 24 : index
      %171 = vector.load %arg7[%c0_97, %c0_98, %c24_99] : memref<1x8x32xbf16, #tpu.memory_space<vmem>>, vector<1x8x8xbf16>
      %172 = vector.shape_cast %171 : vector<1x8x8xbf16> to vector<8x8xbf16>
      %173 = vector.shape_cast %170 : vector<8x8xbf16> to vector<1x8x8xbf16>
      tpu.vector_store %arg7[%c0_97, %c0_98, %c24_99], %173 {strides = array<i32>} : memref<1x8x32xbf16, #tpu.memory_space<vmem>>, vector<1x8x8xbf16>,
    } else {
    }
    return
  }
  func.func @transform_0(%arg0: i32, %arg1: i32, %arg2: memref<1xi32, #tpu.memory_space<smem>>, %arg3: memref<1xi32, #tpu.memory_space<smem>>) -> (i32, i32, i32) {
    %0 = arith.index_cast %arg1 : i32 to index
    %1 = memref.load %arg2[%0] : memref<1xi32, #tpu.memory_space<smem>>
    %c0_i32 = arith.constant 0 : i32
    %c0_i32_0 = arith.constant 0 : i32
    return %arg0, %1, %c0_i32 : i32, i32, i32
  }
  func.func @transform_1(%arg0: i32, %arg1: i32, %arg2: memref<1xi32, #tpu.memory_space<smem>>, %arg3: memref<1xi32, #tpu.memory_space<smem>>) -> (i32, i32, i32) {
    %0 = arith.index_cast %arg1 : i32 to index
    %1 = memref.load %arg3[%0] : memref<1xi32, #tpu.memory_space<smem>>
    %c0_i32 = arith.constant 0 : i32
    %c0_i32_0 = arith.constant 0 : i32
    return %arg0, %1, %c0_i32 : i32, i32, i32
  }
  func.func @transform_2(%arg0: i32, %arg1: i32, %arg2: memref<1xi32, #tpu.memory_space<smem>>, %arg3: memref<1xi32, #tpu.memory_space<smem>>) -> (i32, i32, i32) {
    %0 = arith.index_cast %arg1 : i32 to index
    %1 = memref.load %arg3[%0] : memref<1xi32, #tpu.memory_space<smem>>
    %c0_i32 = arith.constant 0 : i32
    %c0_i32_0 = arith.constant 0 : i32
    return %arg0, %1, %c0_i32 : i32, i32, i32
  }
  func.func @transform_3(%arg0: i32, %arg1: i32, %arg2: memref<1xi32, #tpu.memory_space<smem>>, %arg3: memref<1xi32, #tpu.memory_space<smem>>) -> (i32, i32, i32) {
    %0 = arith.index_cast %arg1 : i32 to index
    %1 = memref.load %arg2[%0] : memref<1xi32, #tpu.memory_space<smem>>
    %c0_i32 = arith.constant 0 : i32
    %c0_i32_0 = arith.constant 0 : i32
    return %arg0, %1, %c0_i32 : i32, i32, i32
  }
}

module attributes {stable_mosaic.version = 11 : i64} {
  func.func @_matmul_residual_kernel(%arg0: i32, %arg1: i32, %arg2: i32, %arg3: memref<16x128xbf16, #tpu.memory_space<vmem>>, %arg4: memref<128x32xbf16, #tpu.memory_space<vmem>>, %arg5: memref<16x32xf32, #tpu.memory_space<vmem>>, %arg6: memref<16x32xf32, #tpu.memory_space<vmem>>, %arg7: memref<16x32xf32, #tpu.memory_space<vmem>>) attributes {dimension_semantics = [#tpu.dimension_semantics<parallel>, #tpu.dimension_semantics<parallel>, #tpu.dimension_semantics<arbitrary>], iteration_bounds = array<i64: 1, 1, 1>, scalar_prefetch = 0 : i64, scratch_operands = 1 : i64, tpu.core_type = #tpu.core_type<tc>, window_params = [{transform_indices = @transform_0, window_bounds = array<i64: 16, 128>}, {transform_indices = @transform_1, window_bounds = array<i64: 128, 32>}, {transform_indices = @transform_2, window_bounds = array<i64: 16, 32>}, {transform_indices = @transform_3, window_bounds = array<i64: 16, 32>}]} {
    %c0_i32 = arith.constant 0 : i32
    %0 = arith.cmpi eq, %arg2, %c0_i32 : i32
    %1 = arith.extui %0 : i1 to i32
    %c0_i32_0 = arith.constant 0 : i32
    %2 = arith.cmpi ne, %1, %c0_i32_0 : i32
    scf.if %2 {
      %cst_10 = arith.constant 0.000000e+00 : f32
      %12 = vector.broadcast %cst_10 : f32 to vector<16x32xf32>
      %c0_11 = arith.constant 0 : index
      %c0_12 = arith.constant 0 : index
      %13 = vector.load %arg7[%c0_11, %c0_12] : memref<16x32xf32, #tpu.memory_space<vmem>>, vector<16x32xf32>
      tpu.vector_store %arg7[%c0_11, %c0_12], %12 {strides = array<i32>} : memref<16x32xf32, #tpu.memory_space<vmem>>, vector<16x32xf32>,
    } else {
    }
    %c0 = arith.constant 0 : index
    %c0_1 = arith.constant 0 : index
    %3 = vector.load %arg7[%c0, %c0_1] : memref<16x32xf32, #tpu.memory_space<vmem>>, vector<16x32xf32>
    %c0_2 = arith.constant 0 : index
    %c0_3 = arith.constant 0 : index
    %4 = vector.load %arg3[%c0_2, %c0_3] : memref<16x128xbf16, #tpu.memory_space<vmem>>, vector<16x128xbf16>
    %c0_4 = arith.constant 0 : index
    %c0_5 = arith.constant 0 : index
    %5 = vector.load %arg4[%c0_4, %c0_5] : memref<128x32xbf16, #tpu.memory_space<vmem>>, vector<128x32xbf16>
    %cst = arith.constant dense<0.000000e+00> : vector<16x32xf32>
    %6 = tpu.matmul %4, %5, %cst {dimension_numbers = #tpu.dot_dimension_numbers<[1], [0], [0], [1], [0, 0, 1, 1], [], []>} : vector<16x128xbf16>, vector<128x32xbf16>, vector<16x32xf32> -> vector<16x32xf32>
    %7 = arith.addf %3, %6 : vector<16x32xf32>
    %c0_6 = arith.constant 0 : index
    %c0_7 = arith.constant 0 : index
    %8 = vector.load %arg7[%c0_6, %c0_7] : memref<16x32xf32, #tpu.memory_space<vmem>>, vector<16x32xf32>
    tpu.vector_store %arg7[%c0_6, %c0_7], %7 {strides = array<i32>} : memref<16x32xf32, #tpu.memory_space<vmem>>, vector<16x32xf32>,
    %c0_i32_8 = arith.constant 0 : i32
    %9 = arith.cmpi eq, %arg2, %c0_i32_8 : i32
    %10 = arith.extui %9 : i1 to i32
    %c0_i32_9 = arith.constant 0 : i32
    %11 = arith.cmpi ne, %10, %c0_i32_9 : i32
    scf.if %11 {
      %c0_10 = arith.constant 0 : index
      %c0_11 = arith.constant 0 : index
      %12 = vector.load %arg7[%c0_10, %c0_11] : memref<16x32xf32, #tpu.memory_space<vmem>>, vector<16x32xf32>
      %c0_12 = arith.constant 0 : index
      %c0_13 = arith.constant 0 : index
      %13 = vector.load %arg5[%c0_12, %c0_13] : memref<16x32xf32, #tpu.memory_space<vmem>>, vector<16x32xf32>
      %14 = arith.addf %12, %13 : vector<16x32xf32>
      %c0_14 = arith.constant 0 : index
      %c0_15 = arith.constant 0 : index
      %15 = vector.load %arg6[%c0_14, %c0_15] : memref<16x32xf32, #tpu.memory_space<vmem>>, vector<16x32xf32>
      tpu.vector_store %arg6[%c0_14, %c0_15], %14 {strides = array<i32>} : memref<16x32xf32, #tpu.memory_space<vmem>>, vector<16x32xf32>,
    } else {
    }
    return
  }
  func.func @transform_0(%arg0: i32, %arg1: i32, %arg2: i32) -> (i32, i32) {
    %c0_i32 = arith.constant 0 : i32
    return %arg0, %arg2 : i32, i32
  }
  func.func @transform_1(%arg0: i32, %arg1: i32, %arg2: i32) -> (i32, i32) {
    %c0_i32 = arith.constant 0 : i32
    return %arg2, %arg1 : i32, i32
  }
  func.func @transform_2(%arg0: i32, %arg1: i32, %arg2: i32) -> (i32, i32) {
    %c0_i32 = arith.constant 0 : i32
    return %arg0, %arg1 : i32, i32
  }
  func.func @transform_3(%arg0: i32, %arg1: i32, %arg2: i32) -> (i32, i32) {
    %c0_i32 = arith.constant 0 : i32
    return %arg0, %arg1 : i32, i32
  }
}

</mosaic_0001>

<bundles_post_ra>
// kernel: beru_block_forward.12
= control target key start
LH: loop header
LB: loop body
LE: loop exit
PB: predicated region body
PF: predicated region fallthrough
CT: control target
= control target key end

     0   :  { %vm16_vm0 = vcmask 130048   ;;  %v98_v1 = vmov 0.0   ;;  %vm44_vm1 = vcmask 261120   ;;  %vm74_vm2 = vcmask 125952   ;;  %s133_s1 = inlined_call_operand.vmem [shape: bf16[32,16], index: 1, kind: input, shape index: {}]   ;;  %s134_s0 = inlined_call_operand.vmem [shape: bf16[16,32], index: 0, kind: input, shape index: {}]   ;;  %s135_s2 = inlined_call_operand.vmem [shape: bf16[16,16], index: 2, kind: output, shape index: {}]  }
   0x1   :  { %v96_v0 = vld [vmem:[%s133_s1 + $0x8] sm:$0xff]  ;;  %17 = vst.msk [vmem:[#allocation2] sm:$0xff] %vm16_vm0, %v98_v1  ;;  %v95_v2 = vld [vmem:[%s133_s1] sm:$0xff] }
   0x2   :  { %18 = vst.msk [vmem:[#allocation2 + $0x8] sm:$0xff] %vm16_vm0, %v98_v1  ;;  %54 = vmatpush.bf16.msra.mxu0 %v96_v0  ;;  %v94_v3 = vld [vmem:[%s134_s0] sm:$0xff] }
   0x6   :  { %55 = vmatpush.bf16.msra.mxu0 %v95_v2 }
   0x8   :  { %v19_v4 = vld [vmem:[#allocation2] sm:$0xff] }
   0x9   :  { %93 = vmatmul.msk.bf16.vlgmr.msra.gmra.mxu0 %vm44_vm1, %v94_v3  ;;  %v20_v7 = vld [vmem:[#allocation2 + $0x8] sm:$0xff] }
  0x86   :  { %v57_v5 = vpop.f32.mrf.mxu0 }
  0x87   :  { %v62_v6 = vadd.f32 %v57_v5, %v19_v4 }
  0x89   :  { %65 = vst.msk [vmem:[#allocation2] sm:$0xff] %vm16_vm0, %v62_v6 }
  0x8e   :  { %v59_v8 = vpop.f32.mrf.mxu0 }
  0x8f   :  { %v63_v9 = vadd.f32 %v59_v8, %v20_v7 }
  0x90   :  { %v70_v10 = vld [vmem:[#allocation2] sm:$0xff] }
  0x91   :  { %v72_v11 = vpack.c.bf16 %v70_v10, %v70_v10  ;;  %66 = vst.msk [vmem:[#allocation2 + $0x8] sm:$0xff] %vm16_vm0, %v63_v9 }
  0x93   :  { %75 = vst.msk [vmem:[%s135_s2] sm:$0xf] %vm74_vm2, %v72_v11 }
  0x98   :  { %v71_v12 = vld [vmem:[#allocation2 + $0x8] sm:$0xff] }
  0x99   :  { %v73_v13 = vpack.c.bf16 %v71_v12, %v71_v12 }
  0x9b   :  { %76 = vst.msk [vmem:[%s135_s2 + $0x4] sm:$0xf] %vm74_vm2, %v73_v13 }

// kernel: beru_block_forward.11
= control target key start
LH: loop header
LB: loop body
LE: loop exit
PB: predicated region body
PF: predicated region fallthrough
CT: control target
= control target key end

     0   :  { %s239_s19 = smov 12   ;;  %s240_s20 = smov 4   ;;  %vm50_vm0 = vcmask 261120   ;;  %vm22_vm1 = vcmask 130048   ;;  %v242_v7 = vmov 0.0   ;;  %vm106_vm2 = vcmask 27648   ;;  %s366_s1 = inlined_call_operand.vmem [shape: bf16[32,16], index: 1, kind: input, shape index: {}]   ;;  %s367_s2 = inlined_call_operand.vmem [shape: f32[16,4], index: 2, kind: input, shape index: {}]   ;;  %s368_s3 = inlined_call_operand.vmem [shape: f32[16,4], index: 3, kind: input, shape index: {}]   ;;  %s369_s0 = inlined_call_operand.vmem [shape: bf16[16,32], index: 0, kind: input, shape index: {}]   ;;  %s370_s4 = inlined_call_operand.vmem [shape: bf16[16,16], index: 4, kind: output, shape index: {}]  }
   0x1   :  { %v233_v0 = vld [vmem:[%s366_s1 + $0x8] sm:$0xff]  ;;  %v275_v1 = vld [vmem:[%s367_s2] sm:$0xff]  ;;  %23 = vst.msk [vmem:[#allocation2] sm:$0xff] %vm22_vm1, %v242_v7  ;;  %vm141_vm3 = vcmask 60448   ;;  %vm172_vm4 = vcmask 93248   ;;  %vm211_vm5 = vcmask 126048  }
   0x2   :  { %183 = vrot.lane.b32.xlu1 %v275_v1, %s239_s19  ;;  %113 = vrot.lane.b32.xlu0 %v275_v1, %s240_s20  ;;  %v232_v2 = vld [vmem:[%s366_s1] sm:$0xff]  ;;  %v293_v5 = vld [vmem:[%s367_s2 + $0x8] sm:$0xff]  ;;  %24 = vst.msk [vmem:[#allocation2 + $0x8] sm:$0xff] %vm22_vm1, %v242_v7  ;;  %s243_s2 = smov 124  }
   0x3   :  { %60 = vmatpush.bf16.msra.mxu0 %v233_v0  ;;  %v80_v3 = vld [vmem:[%s368_s3] sm:$0xff]  ;;  %v299_v6 = vld [vmem:[%s368_s3 + $0x8] sm:$0xff] }
   0x4   :  { %86 = vrot.lane.b32.xlu2 %v80_v3, %s240_s20  ;;  %v231_v4 = vld [vmem:[%s369_s0] sm:$0xff]  ;;  %s241_s0 = smov 8  }
   0x7   :  { %61 = vmatpush.bf16.msra.mxu0 %v232_v2 }
   0x8   :  { %v25_v8 = vld [vmem:[#allocation2] sm:$0xff] }
   0x9   :  { %v26_v11 = vld [vmem:[#allocation2 + $0x8] sm:$0xff] }
   0xa   :  { %230 = vmatmul.msk.bf16.vlgmr.msra.gmra.mxu0 %vm50_vm0, %v231_v4  ;;  %185 = vrot.lane.b32.xlu1 %v293_v5, %s239_s19 }
   0xb   :  { %115 = vrot.lane.b32.xlu0 %v293_v5, %s240_s20 }
   0xc   :  { %88 = vrot.lane.b32.xlu2 %v299_v6, %s240_s20 }
  0x12   :  { %154 = vrot.lane.b32.xlu1 %v299_v6, %s239_s19 }
  0x13   :  { %152 = vrot.lane.b32.xlu0 %v80_v3, %s239_s19 }
  0x1a   :  { %175 = vrot.lane.b32.xlu1 %v80_v3, %s241_s0 }
  0x5e   :  { %v87_v23 = vpop.permute.xlu2 %86 }
  0x66   :  { %v89_v30 = vpop.permute.xlu2 %88 }
  0x74   :  { %v184_v12 = vpop.permute.xlu1 %183  ;;  %v114_v13 = vpop.permute.xlu0 %113 }
  0x7c   :  { %v186_v18 = vpop.permute.xlu1 %185 }
  0x7d   :  { %v116_v19 = vpop.permute.xlu0 %115 }
  0x84   :  { %v155_v27 = vpop.permute.xlu1 %154 }
  0x85   :  { %v153_v26 = vpop.permute.xlu0 %152 }
  0x87   :  { %v63_v9 = vpop.f32.mrf.mxu0 }
  0x88   :  { %v68_v10 = vadd.f32 %v63_v9, %v25_v8 }
  0x8a   :  { %71 = vst.msk [vmem:[#allocation2] sm:$0xff] %vm22_vm1, %v68_v10 }
  0x8c   :  { %v176_v41 = vpop.permute.xlu1 %175 }
  0x8f   :  { %v65_v14 = vpop.f32.mrf.mxu0 }
  0x90   :  { %v69_v15 = vadd.f32 %v65_v14, %v26_v11 }
  0x91   :  { %v307_v16 = vld [vmem:[#allocation2] sm:$0xff] }
  0x92   :  { %72 = vst.msk [vmem:[#allocation2 + $0x8] sm:$0xff] %vm22_vm1, %v69_v15  ;;  %v119_v17 = vmul.f32 %v114_v13, %v307_v16  ;;  %v92_v24 = vmul.f32 %v87_v23, %v307_v16  ;;  %v189_v25 = vmul.f32 %v184_v12, %v307_v16  ;;  %v158_v29 = vmul.f32 %v153_v26, %v307_v16 }
  0x93   :  { %v109_v32 = vmul.f32 %v80_v3, %v307_v16  ;;  %v82_v37 = vmul.f32 %v275_v1, %v307_v16  ;;  %v181_v50 = vmul.f32 %v176_v41, %v307_v16 }
  0x94   :  { %123 = vrot.lane.b32.xlu2 %v119_v17, %s243_s2 }
  0x99   :  { %v310_v20 = vld [vmem:[#allocation2 + $0x8] sm:$0xff] }
  0x9a   :  { %v190_v21 = vmul.f32 %v186_v18, %v310_v20  ;;  %v120_v22 = vmul.f32 %v116_v19, %v310_v20  ;;  %v159_v28 = vmul.f32 %v155_v27, %v310_v20  ;;  %v93_v31 = vmul.f32 %v89_v30, %v310_v20 }
  0x9b   :  { %v110_v44 = vmul.f32 %v299_v6, %v310_v20  ;;  %v83_v55 = vmul.f32 %v293_v5, %v310_v20 }
  0x9c   :  { %177 = vrot.lane.b32.xlu2 %v299_v6, %s241_s0  ;;  %195 = vrot.lane.b32.xlu1 %v190_v21, %s243_s2 }
  0x9d   :  { %125 = vrot.lane.b32.xlu0 %v120_v22, %s243_s2 }
  0xa4   :  { %96 = vrot.lane.b32.xlu2 %v92_v24, %s243_s2  ;;  %144 = vrot.lane.b32.xlu1 %v275_v1, %s241_s0 }
  0xa5   :  { %193 = vrot.lane.b32.xlu0 %v189_v25, %s243_s2 }
  0xac   :  { %146 = vrot.lane.b32.xlu2 %v293_v5, %s241_s0  ;;  %164 = vrot.lane.b32.xlu1 %v159_v28, %s243_s2 }
  0xad   :  { %162 = vrot.lane.b32.xlu0 %v158_v29, %s243_s2 }
  0xb5   :  { %98 = vrot.lane.b32.xlu0 %v93_v31, %s243_s2 }
  0xee   :  { %v124_v33 = vpop.permute.xlu2 %123 }
  0xef   :  { %v129_v34 = vadd.f32 %v124_v33, %v109_v32 }
  0xf1   :  { %v131_v35 = vpack.c.bf16 %v129_v34, %v129_v34 }
  0xf3   :  { %135 = vrot.lane.b32.xlu2 %v131_v35, %s240_s20 }
  0xf6   :  { %v178_v36 = vpop.permute.xlu2 %177 }
  0xf7   :  { %v182_v42 = vmul.f32 %v178_v36, %v310_v20 }
  0xfe   :  { %v97_v38 = vpop.permute.xlu2 %96 }
  0xff   :  { %v102_v39 = vsub.f32 %v82_v37, %v97_v38 }
 0x101   :  { %v104_v40 = vpack.c.bf16 %v102_v39, %v102_v39 }
 0x103   :  { %107 = vst.msk [vmem:[%s370_s4] sm:$0xf] %vm106_vm2, %v104_v40 }
 0x106   :  { %v147_v60 = vpop.permute.xlu2 %146 }
 0x107   :  { %v151_v2 = vmul.f32 %v147_v60, %v310_v20 }
 0x10e   :  { %v196_v43 = vpop.permute.xlu1 %195 }
 0x10f   :  { %v200_v45 = vadd.f32 %v196_v43, %v182_v42  ;;  %v126_v46 = vpop.permute.xlu0 %125 }
 0x110   :  { %v130_v47 = vadd.f32 %v126_v46, %v110_v44 }
 0x111   :  { %v202_v48 = vpack.c.bf16 %v200_v45, %v200_v45 }
 0x112   :  { %v132_v49 = vpack.c.bf16 %v130_v47, %v130_v47 }
 0x113   :  { %207 = vrot.lane.b32.xlu2 %v202_v48, %s240_s20 }
 0x114   :  { %137 = vrot.lane.b32.xlu0 %v132_v49, %s240_s20 }
 0x116   :  { %v145_v59 = vpop.permute.xlu1 %144 }
 0x117   :  { %v194_v51 = vpop.permute.xlu0 %193  ;;  %v150_v61 = vmul.f32 %v145_v59, %v307_v16 }
 0x118   :  { %v199_v52 = vadd.f32 %v194_v51, %v181_v50 }
 0x11a   :  { %v201_v53 = vpack.c.bf16 %v199_v52, %v199_v52 }
 0x11c   :  { %205 = vrot.lane.b32.xlu1 %v201_v53, %s240_s20 }
 0x11e   :  { %v165_v1 = vpop.permute.xlu1 %164 }
 0x11f   :  { %v163_v54 = vpop.permute.xlu0 %162  ;;  %v169_v3 = vsub.f32 %v151_v2, %v165_v1 }
 0x120   :  { %v168_v62 = vsub.f32 %v150_v61, %v163_v54 }
 0x121   :  { %v171_v4 = vpack.c.bf16 %v169_v3, %v169_v3 }
 0x122   :  { %v170_v63 = vpack.c.bf16 %v168_v62, %v168_v62 }
 0x127   :  { %v99_v56 = vpop.permute.xlu0 %98 }
 0x128   :  { %v103_v57 = vsub.f32 %v83_v55, %v99_v56 }
 0x12a   :  { %v105_v58 = vpack.c.bf16 %v103_v57, %v103_v57 }
 0x12c   :  { %108 = vst.msk [vmem:[%s370_s4 + $0x4] sm:$0xf] %vm106_vm2, %v105_v58 }
 0x14d   :  { %v136_v0 = vpop.permute.xlu2 %135 }
 0x14e   :  { %142 = vst.msk [vmem:[%s370_s4] sm:$0xf] %vm141_vm3, %v136_v0 }
 0x14f   :  { %173 = vst.msk [vmem:[%s370_s4] sm:$0xf] %vm172_vm4, %v170_v63 }
 0x16d   :  { %v208_v6 = vpop.permute.xlu2 %207 }
 0x186   :  { %v138_v5 = vpop.permute.xlu0 %137 }
 0x187   :  { %143 = vst.msk [vmem:[%s370_s4 + $0x4] sm:$0xf] %vm141_vm3, %v138_v5 }
 0x188   :  { %174 = vst.msk [vmem:[%s370_s4 + $0x4] sm:$0xf] %vm172_vm4, %v171_v4 }
 0x189   :  { %213 = vst.msk [vmem:[%s370_s4 + $0x4] sm:$0xf] %vm211_vm5, %v208_v6 }
 0x18e   :  { %v206_v7 = vpop.permute.xlu1 %205 }
 0x18f   :  { %212 = vst.msk [vmem:[%s370_s4] sm:$0xf] %vm211_vm5, %v206_v7 }

// kernel: beru_block_forward.9
= control target key start
LH: loop header
LB: loop body
LE: loop exit
PB: predicated region body
PF: predicated region fallthrough
CT: control target
= control target key end

     0   :  { %7 = vsyncpa [#allocation3], 0  ;;  %s124_s12 = smov [#allocation2]   ;;  %s125_s14 = smov 128   ;;  %s155_s0 = inlined_call_operand.hbm [shape: f32[16,32], index: 0, kind: input, shape index: {}]   ;;  %s156_s1 = inlined_call_operand.vmem [shape: f32[1,32], index: 1, kind: input, shape index: {}]   ;;  %s157_s2 = inlined_call_operand.vmem [shape: bf16[16,32], index: 2, kind: output, shape index: {}]  }
   0x1   :  { %s12_s11 = sshll.u32 %s155_s0, 4  ;;  %s14_s13 = sshll.u32 %s124_s12, 4  ;;  %s13_s11 = int_to_ptr.hbm [resolvable:$true] %s12_s11  ;;  %s15_s13 = int_to_ptr.vmem [resolvable:$true] %s14_s13 }
   0x2   :  { %s126_s15 = smov 8  }
   0x3   :  { %20 = dma.hbm_to_vmem [thread:$0]  %s13_s11, 256, %s15_s13, [#allocation3], %s125_s14, %s125_s14, %s126_s15  }
   0x4   :  { %122 = dma.done.wait [#allocation3], 256  }
   0x5   :  { %123 = vsyncadd [#allocation3], 4294967040  ;;  %v27_v0 = vld [vmem:[#allocation2] sm:$0xff]  ;;  %vm31_vm0 = vcmask 261120   ;;  %v28_v2 = vld [vmem:[#allocation2 + $0x8] sm:$0xff]  ;;  %v127_v6 = vmov 32.0  }
   0x6   :  { %v29_v1 = vmul.f32 %v27_v0, %v27_v0  ;;  %v30_v4 = vmul.f32 %v28_v2, %v28_v2  ;;  %92 = vrcp.f32 %v127_v6  ;;  %v91_v27 = vld [vmem:[%s156_s1] ss:$0 sm:$0xff]  ;;  %vm79_vm5 = vcmask 257024  }
   0x8   :  { %v32_v3 = vsel %vm31_vm0, %v29_v1, 0.0  ;;  %v35_v5 = vsel %vm31_vm0, %v30_v4, 0.0 }
   0x9   :  { %33 = vadd.xlane.f32.xlu0 %v32_v3 }
   0xc   :  { %v93_v7 = vpop.eup %92 }
   0xd   :  { %v39_v8 = vmul.f32 32.0, %v93_v7  ;;  %vm43_vm1 = vweird.f32 %v93_v7 }
   0xf   :  { %v40_v9 = vsub.f32 1.0, %v39_v8 }
  0x11   :  { %36 = vadd.xlane.f32.xlu0 %v35_v5  ;;  %v41_v10 = vmul.f32 %v93_v7, %v40_v9 }
  0x13   :  { %v42_v11 = vadd.f32 %v93_v7, %v41_v10 }
  0x15   :  { %v44_v12 = vsel %vm43_vm1, %v93_v7, %v42_v11 }
  0x7c   :  { %v34_v13 = vpop.xlane.xlu0 %33 }
  0x7d   :  { %v45_v14 = vmul.f32 %v44_v12, %v34_v13 }
  0x7f   :  { %v47_v15 = vadd.f32 1e-06, %v45_v14 }
  0x81   :  { %94 = vrsqrt.f32 %v47_v15  ;;  %vm55_vm3 = vweird.f32 %v47_v15 }
  0x84   :  { %v37_v16 = vpop.xlane.xlu0 %36 }
  0x85   :  { %v46_v17 = vmul.f32 %v44_v12, %v37_v16 }
  0x87   :  { %v95_v18 = vpop.eup %94  ;;  %v48_v19 = vadd.f32 1e-06, %v46_v17 }
  0x88   :  { %v50_v20 = vmul.f32 %v95_v18, %v47_v15  ;;  %vm56_vm2 = vweird.f32 %v95_v18 }
  0x89   :  { %96 = vrsqrt.f32 %v48_v19  ;;  %vm57_vm4 = vmor %vm55_vm3, %vm56_vm2  ;;  %vm65_vm7 = vweird.f32 %v48_v19 }
  0x8a   :  { %v51_v21 = vmul.f32 %v95_v18, %v50_v20 }
  0x8c   :  { %v52_v22 = vmul.f32 0.5, %v51_v21 }
  0x8e   :  { %v53_v23 = vsub.f32 1.5, %v52_v22 }
  0x8f   :  { %v97_v24 = vpop.eup %96 }
  0x90   :  { %v54_v25 = vmul.f32 %v95_v18, %v53_v23  ;;  %v60_v26 = vmul.f32 %v97_v24, %v48_v19  ;;  %vm66_vm6 = vweird.f32 %v97_v24 }
  0x91   :  { %vm67_vm8 = vmor %vm65_vm7, %vm66_vm6 }
  0x92   :  { %v58_v28 = vsel %vm57_vm4, %v95_v18, %v54_v25  ;;  %v61_v29 = vmul.f32 %v97_v24, %v60_v26 }
  0x93   :  { %v69_v30 = vmul.f32 %v58_v28, %v27_v0 }
  0x94   :  { %v62_v31 = vmul.f32 0.5, %v61_v29 }
  0x95   :  { %v75_v32 = vmul.f32 %v91_v27, %v69_v30 }
  0x96   :  { %v63_v33 = vsub.f32 1.5, %v62_v31 }
  0x97   :  { %v77_v34 = vpack.c.bf16 %v75_v32, %v75_v32 }
  0x98   :  { %v64_v35 = vmul.f32 %v97_v24, %v63_v33 }
  0x99   :  { %80 = vst.msk [vmem:[%s157_s2] sm:$0xf] %vm79_vm5, %v77_v34 }
  0x9a   :  { %v68_v36 = vsel %vm67_vm8, %v97_v24, %v64_v35 }
  0x9b   :  { %v70_v37 = vmul.f32 %v68_v36, %v28_v2 }
  0x9d   :  { %v76_v38 = vmul.f32 %v91_v27, %v70_v37 }
  0x9f   :  { %v78_v39 = vpack.c.bf16 %v76_v38, %v76_v38 }
  0xa1   :  { %81 = vst.msk [vmem:[%s157_s2 + $0x4] sm:$0xf] %vm79_vm5, %v78_v39 }
  0xa2   :  { %86 = vsyncpa [#allocation3], 1 }

// kernel: beru_block_forward.10
= control target key start
LH: loop header
LB: loop body
LE: loop exit
PB: predicated region body
PF: predicated region fallthrough
CT: control target
= control target key end

     0   :  { %s382_s21 = smov 4   ;;  %s383_s22 = smov 12   ;;  %vm22_vm0 = vcmask 261120   ;;  %v389_v7 = vmov 0.0   ;;  %vm105_vm1 = vcmask 27648   ;;  %vm140_vm2 = vcmask 60448   ;;  %s624_s3 = inlined_call_operand.vmem [shape: f32[16,4], index: 3, kind: input, shape index: {}]   ;;  %s625_s2 = inlined_call_operand.vmem [shape: f32[16,4], index: 2, kind: input, shape index: {}]   ;;  %s626_s1 = inlined_call_operand.vmem [shape: bf16[32,32], index: 1, kind: input, shape index: {}]   ;;  %s627_s0 = inlined_call_operand.vmem [shape: bf16[16,32], index: 0, kind: input, shape index: {}]   ;;  %s628_s4 = inlined_call_operand.vmem [shape: bf16[16,32], index: 4, kind: output, shape index: {}]  }
   0x1   :  { %v419_v0 = vld [vmem:[%s624_s3] sm:$0xff]  ;;  %v372_v2 = vld [vmem:[%s626_s1 + $0x8] sm:$0xff]  ;;  %s388_s5 = smov 24   ;;  %23 = vst.msk [vmem:[#allocation2] sm:$0xff] %vm22_vm0, %v389_v7  ;;  %s390_s6 = smov 124   ;;  %vm171_vm3 = vcmask 93248  }
   0x2   :  { %v424_v1 = vld [vmem:[%s625_s2] sm:$0xff]  ;;  %85 = vrot.lane.b32.xlu0 %v419_v0, %s382_s21  ;;  %60 = vmatpush.bf16.msra.mxu0 %v372_v2  ;;  %v440_v4 = vld [vmem:[%s624_s3 + $0x8] sm:$0xff]  ;;  %s387_s3 = smov 16   ;;  %24 = vst.msk [vmem:[#allocation2 + $0x8] sm:$0xff] %vm22_vm0, %v389_v7  ;;  %vm210_vm4 = vcmask 126048   ;;  %vm241_vm5 = vcmask 158848  }
   0x3   :  { %182 = vrot.lane.b32.xlu1 %v424_v1, %s383_s22  ;;  %112 = vrot.lane.b32.xlu2 %v424_v1, %s382_s21  ;;  %v371_v3 = vld [vmem:[%s626_s1] sm:$0xff]  ;;  %v445_v5 = vld [vmem:[%s625_s2 + $0x8] sm:$0xff]  ;;  %s384_s1 = smov 20   ;;  %s385_s2 = smov 8   ;;  %vm280_vm6 = vcmask 191648   ;;  %vm311_vm7 = vcmask 224448  }
   0x4   :  { %v370_v6 = vld [vmem:[%s627_s0] sm:$0xff]  ;;  %s386_s0 = smov 28   ;;  %vm350_vm8 = vcmask 257248  }
   0x6   :  { %61 = vmatpush.bf16.msra.mxu0 %v371_v3 }
   0x8   :  { %v25_v14 = vld [vmem:[#allocation2] sm:$0xff] }
   0x9   :  { %369 = vmatmul.msk.bf16.vlgmr.msra.gmra.mxu0 %vm22_vm0, %v370_v6  ;;  %v26_v19 = vld [vmem:[#allocation2 + $0x8] sm:$0xff] }
   0xa   :  { %87 = vrot.lane.b32.xlu0 %v440_v4, %s382_s21 }
   0xb   :  { %254 = vrot.lane.b32.xlu1 %v445_v5, %s384_s1  ;;  %114 = vrot.lane.b32.xlu2 %v445_v5, %s382_s21 }
  0x12   :  { %252 = vrot.lane.b32.xlu0 %v424_v1, %s384_s1 }
  0x13   :  { %143 = vrot.lane.b32.xlu1 %v424_v1, %s385_s2  ;;  %184 = vrot.lane.b32.xlu2 %v445_v5, %s383_s22 }
  0x1a   :  { %324 = vrot.lane.b32.xlu0 %v445_v5, %s386_s0 }
  0x1b   :  { %153 = vrot.lane.b32.xlu1 %v440_v4, %s383_s22  ;;  %322 = vrot.lane.b32.xlu2 %v424_v1, %s386_s0 }
  0x22   :  { %151 = vrot.lane.b32.xlu0 %v419_v0, %s383_s22 }
  0x23   :  { %174 = vrot.lane.b32.xlu1 %v419_v0, %s385_s2  ;;  %145 = vrot.lane.b32.xlu2 %v445_v5, %s385_s2 }
  0x2a   :  { %221 = vrot.lane.b32.xlu0 %v419_v0, %s384_s1 }
  0x2b   :  { %223 = vrot.lane.b32.xlu1 %v440_v4, %s384_s1  ;;  %176 = vrot.lane.b32.xlu2 %v440_v4, %s385_s2 }
  0x32   :  { %291 = vrot.lane.b32.xlu0 %v419_v0, %s386_s0 }
  0x33   :  { %244 = vrot.lane.b32.xlu1 %v419_v0, %s387_s3  ;;  %246 = vrot.lane.b32.xlu2 %v440_v4, %s387_s3 }
  0x3b   :  { %293 = vrot.lane.b32.xlu1 %v440_v4, %s386_s0  ;;  %316 = vrot.lane.b32.xlu2 %v440_v4, %s388_s5 }
  0x43   :  { %314 = vrot.lane.b32.xlu1 %v419_v0, %s388_s5 }
  0x5d   :  { %v113_v9 = vpop.permute.xlu2 %112 }
  0x65   :  { %v115_v13 = vpop.permute.xlu2 %114 }
  0x6d   :  { %v185_v20 = vpop.permute.xlu2 %184 }
  0x74   :  { %v86_v8 = vpop.permute.xlu0 %85 }
  0x75   :  { %v183_v11 = vpop.permute.xlu1 %182  ;;  %v323_v29 = vpop.permute.xlu2 %322 }
  0x7c   :  { %v88_v10 = vpop.permute.xlu0 %87 }
  0x7d   :  { %v255_v17 = vpop.permute.xlu1 %254  ;;  %v146_v50 = vpop.permute.xlu2 %145 }
  0x84   :  { %v253_v12 = vpop.permute.xlu0 %252 }
  0x85   :  { %v144_v28 = vpop.permute.xlu1 %143  ;;  %v177_v52 = vpop.permute.xlu2 %176 }
  0x86   :  { %v63_v15 = vpop.f32.mrf.mxu0 }
  0x87   :  { %v68_v16 = vadd.f32 %v63_v15, %v25_v14 }
  0x89   :  { %70 = vst.msk [vmem:[#allocation2] sm:$0xff] %vm22_vm0, %v68_v16 }
  0x8c   :  { %v325_v18 = vpop.permute.xlu0 %324 }
  0x8d   :  { %v154_v34 = vpop.permute.xlu1 %153  ;;  %v247_v53 = vpop.permute.xlu2 %246 }
  0x8e   :  { %v65_v21 = vpop.f32.mrf.mxu0 }
  0x8f   :  { %v69_v22 = vadd.f32 %v65_v21, %v26_v19 }
  0x90   :  { %v481_v23 = vld [vmem:[#allocation2] sm:$0xff] }
  0x91   :  { %71 = vst.msk [vmem:[#allocation2 + $0x8] sm:$0xff] %vm22_vm0, %v69_v22  ;;  %v118_v24 = vmul.f32 %v113_v9, %v481_v23  ;;  %v91_v25 = vmul.f32 %v86_v8, %v481_v23  ;;  %v328_v31 = vmul.f32 %v323_v29, %v481_v23  ;;  %v188_v33 = vmul.f32 %v183_v11, %v481_v23 }
  0x92   :  { %v258_v37 = vmul.f32 %v253_v12, %v481_v23  ;;  %v149_v55 = vmul.f32 %v144_v28, %v481_v23  ;;  %v108_v7 = vmul.f32 %v419_v0, %v481_v23  ;;  %v81_v8 = vmul.f32 %v424_v1, %v481_v23 }
  0x93   :  { %122 = vrot.lane.b32.xlu0 %v118_v24, %s390_s6  ;;  %95 = vrot.lane.b32.xlu1 %v91_v25, %s390_s6 }
  0x94   :  { %v152_v26 = vpop.permute.xlu0 %151 }
  0x95   :  { %v157_v27 = vmul.f32 %v152_v26, %v481_v23  ;;  %v175_v39 = vpop.permute.xlu1 %174  ;;  %v317_v54 = vpop.permute.xlu2 %316 }
  0x96   :  { %v180_v58 = vmul.f32 %v175_v39, %v481_v23 }
  0x97   :  { %161 = vrot.lane.b32.xlu2 %v157_v27, %s390_s6 }
  0x98   :  { %v490_v30 = vld [vmem:[#allocation2 + $0x8] sm:$0xff] }
  0x99   :  { %v92_v32 = vmul.f32 %v88_v10, %v490_v30  ;;  %v158_v35 = vmul.f32 %v154_v34, %v490_v30  ;;  %v119_v36 = vmul.f32 %v115_v13, %v490_v30  ;;  %v189_v40 = vmul.f32 %v185_v20, %v490_v30 }
  0x9a   :  { %v329_v41 = vmul.f32 %v325_v18, %v490_v30  ;;  %v259_v44 = vmul.f32 %v255_v17, %v490_v30  ;;  %v82_v15 = vmul.f32 %v445_v5, %v490_v30  ;;  %v150_v18 = vmul.f32 %v146_v50, %v490_v30 }
  0x9b   :  { %332 = vrot.lane.b32.xlu0 %v328_v31, %s390_s6  ;;  %97 = vrot.lane.b32.xlu1 %v92_v32, %s390_s6  ;;  %v109_v19 = vmul.f32 %v440_v4, %v490_v30  ;;  %v181_v26 = vmul.f32 %v177_v52, %v490_v30  ;;  %v251_v34 = vmul.f32 %v247_v53, %v490_v30 }
  0x9c   :  { %v222_v38 = vpop.permute.xlu0 %221 }
  0x9d   :  { %v227_v43 = vmul.f32 %v222_v38, %v481_v23  ;;  %v224_v45 = vpop.permute.xlu1 %223 }
  0x9e   :  { %v228_v47 = vmul.f32 %v224_v45, %v490_v30 }
  0x9f   :  { %192 = vrot.lane.b32.xlu2 %v188_v33, %s390_s6 }
  0xa3   :  { %163 = vrot.lane.b32.xlu0 %v158_v35, %s390_s6  ;;  %124 = vrot.lane.b32.xlu1 %v119_v36, %s390_s6 }
  0xa4   :  { %v292_v42 = vpop.permute.xlu0 %291 }
  0xa5   :  { %v297_v46 = vmul.f32 %v292_v42, %v481_v23  ;;  %v245_v48 = vpop.permute.xlu1 %244 }
  0xa6   :  { %v250_v63 = vmul.f32 %v245_v48, %v481_v23 }
  0xa7   :  { %262 = vrot.lane.b32.xlu2 %v258_v37, %s390_s6 }
  0xab   :  { %194 = vrot.lane.b32.xlu0 %v189_v40, %s390_s6  ;;  %334 = vrot.lane.b32.xlu1 %v329_v41, %s390_s6 }
  0xad   :  { %v294_v49 = vpop.permute.xlu1 %293 }
  0xae   :  { %v298_v51 = vmul.f32 %v294_v49, %v490_v30 }
  0xaf   :  { %213 = vrot.lane.b32.xlu2 %v424_v1, %s387_s3 }
  0xb3   :  { %264 = vrot.lane.b32.xlu0 %v259_v44, %s390_s6  ;;  %231 = vrot.lane.b32.xlu1 %v227_v43, %s390_s6 }
  0xb5   :  { %v315_v62 = vpop.permute.xlu1 %314 }
  0xb6   :  { %v320_v4 = vmul.f32 %v315_v62, %v481_v23 }
  0xb7   :  { %301 = vrot.lane.b32.xlu2 %v297_v46, %s390_s6 }
  0xbb   :  { %215 = vrot.lane.b32.xlu0 %v445_v5, %s387_s3  ;;  %285 = vrot.lane.b32.xlu1 %v445_v5, %s388_s5  ;;  %v321_v5 = vmul.f32 %v317_v54, %v490_v30 }
  0xbf   :  { %233 = vrot.lane.b32.xlu2 %v228_v47, %s390_s6 }
  0xc3   :  { %283 = vrot.lane.b32.xlu0 %v424_v1, %s388_s5 }
  0xcb   :  { %303 = vrot.lane.b32.xlu0 %v298_v51, %s390_s6 }
  0xf1   :  { %v162_v56 = vpop.permute.xlu2 %161 }
  0xf2   :  { %v527_v57 = vsub.f32 %v149_v55, %v162_v56 }
  0xf4   :  { %v169_v45 = vpack.c.bf16 %v527_v57, %v527_v57 }
  0xf9   :  { %v193_v59 = vpop.permute.xlu2 %192 }
  0xfa   :  { %v198_v60 = vadd.f32 %v193_v59, %v180_v58 }
  0xfc   :  { %v200_v61 = vpack.c.bf16 %v198_v60, %v198_v60 }
  0xfe   :  { %204 = vrot.lane.b32.xlu1 %v200_v61, %s382_s21 }
 0x101   :  { %v263_v2 = vpop.permute.xlu2 %262 }
 0x102   :  { %v268_v3 = vadd.f32 %v263_v2, %v250_v63 }
 0x104   :  { %v270_v6 = vpack.c.bf16 %v268_v3, %v268_v3 }
 0x105   :  { %v123_v9 = vpop.permute.xlu0 %122  ;;  %v96_v10 = vpop.permute.xlu1 %95 }
 0x106   :  { %274 = vrot.lane.b32.xlu0 %v270_v6, %s382_s21  ;;  %v128_v11 = vadd.f32 %v123_v9, %v108_v7  ;;  %v101_v12 = vsub.f32 %v81_v8, %v96_v10 }
 0x108   :  { %v130_v13 = vpack.c.bf16 %v128_v11, %v128_v11  ;;  %v103_v14 = vpack.c.bf16 %v101_v12, %v101_v12 }
 0x109   :  { %v214_v40 = vpop.permute.xlu2 %213 }
 0x10a   :  { %106 = vst.msk [vmem:[%s628_s4] sm:$0xf] %vm105_vm1, %v103_v14  ;;  %134 = vrot.lane.b32.xlu2 %v130_v13, %s382_s21  ;;  %v219_v49 = vmul.f32 %v214_v40, %v481_v23 }
 0x10d   :  { %v333_v0 = vpop.permute.xlu0 %332  ;;  %v98_v16 = vpop.permute.xlu1 %97 }
 0x10e   :  { %v102_v17 = vsub.f32 %v82_v15, %v98_v16  ;;  %v338_v35 = vadd.f32 %v333_v0, %v320_v4 }
 0x110   :  { %v104_v1 = vpack.c.bf16 %v102_v17, %v102_v17  ;;  %v340_v38 = vpack.c.bf16 %v338_v35, %v338_v35 }
 0x111   :  { %v302_v41 = vpop.permute.xlu2 %301 }
 0x112   :  { %107 = vst.msk [vmem:[%s628_s4 + $0x4] sm:$0xf] %vm105_vm1, %v104_v1 }
 0x115   :  { %v164_v20 = vpop.permute.xlu0 %163  ;;  %v125_v21 = vpop.permute.xlu1 %124 }
 0x116   :  { %v549_v22 = vsub.f32 %v150_v18, %v164_v20  ;;  %v129_v24 = vadd.f32 %v125_v21, %v109_v19 }
 0x118   :  { %v131_v25 = vpack.c.bf16 %v129_v24, %v129_v24  ;;  %v170_v61 = vpack.c.bf16 %v549_v22, %v549_v22 }
 0x119   :  { %v234_v43 = vpop.permute.xlu2 %233 }
 0x11a   :  { %136 = vrot.lane.b32.xlu0 %v131_v25, %s382_s21 }
 0x11d   :  { %v195_v27 = vpop.permute.xlu0 %194  ;;  %v335_v28 = vpop.permute.xlu1 %334 }
 0x11e   :  { %v199_v29 = vadd.f32 %v195_v27, %v181_v26  ;;  %v339_v31 = vadd.f32 %v335_v28, %v321_v5 }
 0x120   :  { %v201_v32 = vpack.c.bf16 %v199_v29, %v199_v29  ;;  %v341_v33 = vpack.c.bf16 %v339_v31, %v339_v31 }
 0x122   :  { %206 = vrot.lane.b32.xlu2 %v201_v32, %s382_s21  ;;  %346 = vrot.lane.b32.xlu0 %v341_v33, %s382_s21 }
 0x125   :  { %v265_v36 = vpop.permute.xlu0 %264  ;;  %v232_v44 = vpop.permute.xlu1 %231 }
 0x126   :  { %v269_v37 = vadd.f32 %v265_v36, %v251_v34  ;;  %v237_v50 = vsub.f32 %v219_v49, %v232_v44 }
 0x128   :  { %v271_v39 = vpack.c.bf16 %v269_v37, %v269_v37  ;;  %v239_v51 = vpack.c.bf16 %v237_v50, %v237_v50 }
 0x12a   :  { %344 = vrot.lane.b32.xlu2 %v340_v38, %s382_s21  ;;  %276 = vrot.lane.b32.xlu1 %v271_v39, %s382_s21 }
 0x12d   :  { %v216_v42 = vpop.permute.xlu0 %215  ;;  %v286_v48 = vpop.permute.xlu1 %285 }
 0x12e   :  { %v220_v59 = vmul.f32 %v216_v42, %v490_v30  ;;  %v290_v2 = vmul.f32 %v286_v48, %v490_v30 }
 0x130   :  { %v238_v60 = vsub.f32 %v220_v59, %v234_v43 }
 0x132   :  { %v240_v63 = vpack.c.bf16 %v238_v60, %v238_v60 }
 0x135   :  { %v284_v46 = vpop.permute.xlu0 %283 }
 0x136   :  { %v289_v52 = vmul.f32 %v284_v46, %v481_v23 }
 0x138   :  { %v307_v55 = vsub.f32 %v289_v52, %v302_v41 }
 0x13a   :  { %v309_v56 = vpack.c.bf16 %v307_v55, %v307_v55 }
 0x13d   :  { %v304_v53 = vpop.permute.xlu0 %303 }
 0x13e   :  { %v308_v3 = vsub.f32 %v290_v2, %v304_v53 }
 0x140   :  { %v310_v6 = vpack.c.bf16 %v308_v3, %v308_v3 }
 0x164   :  { %v135_v47 = vpop.permute.xlu2 %134 }
 0x165   :  { %141 = vst.msk [vmem:[%s628_s4] sm:$0xf] %vm140_vm2, %v135_v47 }
 0x166   :  { %172 = vst.msk [vmem:[%s628_s4] sm:$0xf] %vm171_vm3, %v169_v45 }
 0x170   :  { %v205_v54 = vpop.permute.xlu1 %204 }
 0x171   :  { %211 = vst.msk [vmem:[%s628_s4] sm:$0xf] %vm210_vm4, %v205_v54 }
 0x172   :  { %242 = vst.msk [vmem:[%s628_s4] sm:$0xf] %vm241_vm5, %v239_v51 }
 0x178   :  { %v275_v57 = vpop.permute.xlu0 %274 }
 0x179   :  { %281 = vst.msk [vmem:[%s628_s4] sm:$0xf] %vm280_vm6, %v275_v57 }
 0x17a   :  { %312 = vst.msk [vmem:[%s628_s4] sm:$0xf] %vm311_vm7, %v309_v56 }
 0x17c   :  { %v207_v23 = vpop.permute.xlu2 %206 }
 0x184   :  { %v345_v58 = vpop.permute.xlu2 %344 }
 0x185   :  { %351 = vst.msk [vmem:[%s628_s4] sm:$0xf] %vm350_vm8, %v345_v58 }
 0x18c   :  { %v137_v62 = vpop.permute.xlu0 %136 }
 0x18d   :  { %142 = vst.msk [vmem:[%s628_s4 + $0x4] sm:$0xf] %vm140_vm2, %v137_v62 }
 0x18e   :  { %173 = vst.msk [vmem:[%s628_s4 + $0x4] sm:$0xf] %vm171_vm3, %v170_v61 }
 0x18f   :  { %212 = vst.msk [vmem:[%s628_s4 + $0x4] sm:$0xf] %vm210_vm4, %v207_v23 }
 0x190   :  { %243 = vst.msk [vmem:[%s628_s4 + $0x4] sm:$0xf] %vm241_vm5, %v240_v63 }
 0x194   :  { %v347_v8 = vpop.permute.xlu0 %346 }
 0x19c   :  { %v277_v7 = vpop.permute.xlu1 %276 }
 0x19d   :  { %282 = vst.msk [vmem:[%s628_s4 + $0x4] sm:$0xf] %vm280_vm6, %v277_v7 }
 0x19e   :  { %313 = vst.msk [vmem:[%s628_s4 + $0x4] sm:$0xf] %vm311_vm7, %v310_v6 }
 0x19f   :  { %352 = vst.msk [vmem:[%s628_s4 + $0x4] sm:$0xf] %vm350_vm8, %v347_v8 }

// kernel: beru_block_forward.14
= control target key start
LH: loop header
LB: loop body
LE: loop exit
PB: predicated region body
PF: predicated region fallthrough
CT: control target
= control target key end

     0   :  { %vm19_vm0 = vcmask 261120   ;;  %v101_v1 = vmov 0.0   ;;  %s150_s1 = inlined_call_operand.vmem [shape: bf16[32,32], index: 1, kind: input, shape index: {}]   ;;  %s151_s0 = inlined_call_operand.vmem [shape: bf16[16,32], index: 0, kind: input, shape index: {}]   ;;  %s152_s2 = inlined_call_operand.vmem [shape: f32[16,32], index: 2, kind: input, shape index: {}]   ;;  %s153_s3 = inlined_call_operand.vmem [shape: f32[16,32], index: 3, kind: output, shape index: {}]  }
   0x1   :  { %v99_v0 = vld [vmem:[%s150_s1 + $0x8] sm:$0xff]  ;;  %20 = vst.msk [vmem:[#allocation2] sm:$0xff] %vm19_vm0, %v101_v1  ;;  %v98_v2 = vld [vmem:[%s150_s1] sm:$0xff] }
   0x2   :  { %21 = vst.msk [vmem:[#allocation2 + $0x8] sm:$0xff] %vm19_vm0, %v101_v1  ;;  %57 = vmatpush.bf16.msra.mxu0 %v99_v0  ;;  %v97_v3 = vld [vmem:[%s151_s0] sm:$0xff]  ;;  %v75_v13 = vld [vmem:[%s152_s2 + $0x8] sm:$0xff] }
   0x3   :  { %v74_v8 = vld [vmem:[%s152_s2] sm:$0xff] }
   0x6   :  { %58 = vmatpush.bf16.msra.mxu0 %v98_v2 }
   0x8   :  { %v22_v4 = vld [vmem:[#allocation2] sm:$0xff] }
   0x9   :  { %96 = vmatmul.msk.bf16.vlgmr.msra.gmra.mxu0 %vm19_vm0, %v97_v3  ;;  %v23_v7 = vld [vmem:[#allocation2 + $0x8] sm:$0xff] }
  0x86   :  { %v60_v5 = vpop.f32.mrf.mxu0 }
  0x87   :  { %v65_v6 = vadd.f32 %v60_v5, %v22_v4 }
  0x89   :  { %67 = vst.msk [vmem:[#allocation2] sm:$0xff] %vm19_vm0, %v65_v6 }
  0x8e   :  { %v62_v9 = vpop.f32.mrf.mxu0 }
  0x8f   :  { %v66_v10 = vadd.f32 %v62_v9, %v23_v7 }
  0x90   :  { %v72_v11 = vld [vmem:[#allocation2] sm:$0xff] }
  0x91   :  { %v76_v12 = vadd.f32 %v74_v8, %v72_v11  ;;  %68 = vst.msk [vmem:[#allocation2 + $0x8] sm:$0xff] %vm19_vm0, %v66_v10 }
  0x93   :  { %78 = vst.msk [vmem:[%s153_s3] sm:$0xff] %vm19_vm0, %v76_v12 }
  0x98   :  { %v73_v14 = vld [vmem:[#allocation2 + $0x8] sm:$0xff] }
  0x99   :  { %v77_v15 = vadd.f32 %v75_v13, %v73_v14 }
  0x9b   :  { %79 = vst.msk [vmem:[%s153_s3 + $0x8] sm:$0xff] %vm19_vm0, %v77_v15 }

// kernel: beru_block_forward.15
= control target key start
LH: loop header
LB: loop body
LE: loop exit
PB: predicated region body
PF: predicated region fallthrough
CT: control target
= control target key end

     0   :  { %vm15_vm0 = vcmask 261120   ;;  %v78_v6 = vmov 32.0   ;;  %vm63_vm5 = vcmask 257024   ;;  %s109_s0 = inlined_call_operand.vmem [shape: f32[16,32], index: 0, kind: input, shape index: {}]   ;;  %s110_s1 = inlined_call_operand.vmem [shape: f32[1,32], index: 1, kind: input, shape index: {}]   ;;  %s111_s2 = inlined_call_operand.vmem [shape: bf16[16,32], index: 2, kind: output, shape index: {}]  }
   0x1   :  { %v11_v0 = vld [vmem:[%s109_s0] sm:$0xff]  ;;  %v12_v2 = vld [vmem:[%s109_s0 + $0x8] sm:$0xff]  ;;  %72 = vrcp.f32 %v78_v6 }
   0x2   :  { %v13_v1 = vmul.f32 %v11_v0, %v11_v0  ;;  %v14_v4 = vmul.f32 %v12_v2, %v12_v2  ;;  %v71_v27 = vld [vmem:[%s110_s1] ss:$0 sm:$0xff] }
   0x4   :  { %v16_v3 = vsel %vm15_vm0, %v13_v1, 0.0  ;;  %v19_v5 = vsel %vm15_vm0, %v14_v4, 0.0 }
   0x5   :  { %17 = vadd.xlane.f32.xlu0 %v16_v3 }
   0x7   :  { %v73_v7 = vpop.eup %72 }
   0x8   :  { %v23_v8 = vmul.f32 32.0, %v73_v7  ;;  %vm27_vm1 = vweird.f32 %v73_v7 }
   0xa   :  { %v24_v9 = vsub.f32 1.0, %v23_v8 }
   0xc   :  { %v25_v10 = vmul.f32 %v73_v7, %v24_v9 }
   0xd   :  { %20 = vadd.xlane.f32.xlu0 %v19_v5 }
   0xe   :  { %v26_v11 = vadd.f32 %v73_v7, %v25_v10 }
  0x10   :  { %v28_v12 = vsel %vm27_vm1, %v73_v7, %v26_v11 }
  0x78   :  { %v18_v13 = vpop.xlane.xlu0 %17 }
  0x79   :  { %v29_v14 = vmul.f32 %v28_v12, %v18_v13 }
  0x7b   :  { %v31_v15 = vadd.f32 1e-06, %v29_v14 }
  0x7d   :  { %74 = vrsqrt.f32 %v31_v15  ;;  %vm39_vm3 = vweird.f32 %v31_v15 }
  0x80   :  { %v21_v16 = vpop.xlane.xlu0 %20 }
  0x81   :  { %v30_v17 = vmul.f32 %v28_v12, %v21_v16 }
  0x83   :  { %v75_v18 = vpop.eup %74  ;;  %v32_v19 = vadd.f32 1e-06, %v30_v17 }
  0x84   :  { %v34_v20 = vmul.f32 %v75_v18, %v31_v15  ;;  %vm40_vm2 = vweird.f32 %v75_v18 }
  0x85   :  { %76 = vrsqrt.f32 %v32_v19  ;;  %vm41_vm4 = vmor %vm39_vm3, %vm40_vm2  ;;  %vm49_vm7 = vweird.f32 %v32_v19 }
  0x86   :  { %v35_v21 = vmul.f32 %v75_v18, %v34_v20 }
  0x88   :  { %v36_v22 = vmul.f32 0.5, %v35_v21 }
  0x8a   :  { %v37_v23 = vsub.f32 1.5, %v36_v22 }
  0x8b   :  { %v77_v24 = vpop.eup %76 }
  0x8c   :  { %v38_v25 = vmul.f32 %v75_v18, %v37_v23  ;;  %v44_v26 = vmul.f32 %v77_v24, %v32_v19  ;;  %vm50_vm6 = vweird.f32 %v77_v24 }
  0x8d   :  { %vm51_vm8 = vmor %vm49_vm7, %vm50_vm6 }
  0x8e   :  { %v42_v28 = vsel %vm41_vm4, %v75_v18, %v38_v25  ;;  %v45_v29 = vmul.f32 %v77_v24, %v44_v26 }
  0x8f   :  { %v53_v30 = vmul.f32 %v42_v28, %v11_v0 }
  0x90   :  { %v46_v31 = vmul.f32 0.5, %v45_v29 }
  0x91   :  { %v59_v32 = vmul.f32 %v71_v27, %v53_v30 }
  0x92   :  { %v47_v33 = vsub.f32 1.5, %v46_v31 }
  0x93   :  { %v61_v34 = vpack.c.bf16 %v59_v32, %v59_v32 }
  0x94   :  { %v48_v35 = vmul.f32 %v77_v24, %v47_v33 }
  0x95   :  { %64 = vst.msk [vmem:[%s111_s2] sm:$0xf] %vm63_vm5, %v61_v34 }
  0x96   :  { %v52_v36 = vsel %vm51_vm8, %v77_v24, %v48_v35 }
  0x97   :  { %v54_v37 = vmul.f32 %v52_v36, %v12_v2 }
  0x99   :  { %v60_v38 = vmul.f32 %v71_v27, %v54_v37 }
  0x9b   :  { %v62_v39 = vpack.c.bf16 %v60_v38, %v60_v38 }
  0x9d   :  { %65 = vst.msk [vmem:[%s111_s2 + $0x4] sm:$0xf] %vm63_vm5, %v62_v39 }

// kernel: beru_block_forward.16
= control target key start
LH: loop header
LB: loop body
LE: loop exit
PB: predicated region body
PF: predicated region fallthrough
CT: control target
= control target key end

     0   :  { %vm48_vm0 = vcmask 261120   ;;  %s241_s1 = inlined_call_operand.vmem [shape: bf16[32,128], index: 1, kind: input, shape index: {}]   ;;  %s242_s2 = inlined_call_operand.vmem [shape: bf16[32,128], index: 2, kind: input, shape index: {}]   ;;  %s243_s0 = inlined_call_operand.vmem [shape: bf16[16,32], index: 0, kind: input, shape index: {}]   ;;  %s244_s3 = inlined_call_operand.vmem [shape: bf16[16,128], index: 3, kind: output, shape index: {}]  }
   0x1   :  { %v187_v0 = vld [vmem:[%s241_s1 + $0x8] sm:$0xff]  ;;  %v186_v2 = vld [vmem:[%s241_s1] sm:$0xff] }
   0x2   :  { %v189_v1 = vld [vmem:[%s242_s2 + $0x8] sm:$0xff]  ;;  %58 = vmatpush.bf16.msra.mxu0 %v187_v0  ;;  %v188_v3 = vld [vmem:[%s242_s2] sm:$0xff] }
   0x3   :  { %94 = vmatpush.bf16.msra.mxu1 %v189_v1  ;;  %v185_v4 = vld [vmem:[%s243_s0] sm:$0xff] }
   0x6   :  { %59 = vmatpush.bf16.msra.mxu0 %v186_v2 }
   0x7   :  { %95 = vmatpush.bf16.msra.mxu1 %v188_v3 }
   0x9   :  { %175 = vmatmul.msk.bf16.vlgmr.msra.gmra.mxu0 %vm48_vm0, %v185_v4 }
   0xa   :  { %184 = vmatmul.msk.bf16.vlgmr.msra.gmra.mxu1 %vm48_vm0, %v185_v4 }
  0x86   :  { %v61_v5 = vpop.f32.mrf.mxu0 }
  0x87   :  { %v111_v6 = vsub.f32 0.0, %v61_v5  ;;  %v97_v24 = vpop.f32.mrf.mxu1 }
  0x89   :  { %v113_v7 = vmul.f32 1.442695, %v111_v6 }
  0x8b   :  { %195 = vpow2.f32 %v113_v7 }
  0x8e   :  { %v63_v8 = vpop.f32.mrf.mxu0 }
  0x8f   :  { %v112_v9 = vsub.f32 0.0, %v63_v8  ;;  %v99_v38 = vpop.f32.mrf.mxu1 }
  0x91   :  { %v196_v10 = vpop.eup %195  ;;  %v115_v11 = vmul.f32 1.442695, %v112_v9 }
  0x92   :  { %v117_v12 = vadd.f32 1.0, %v196_v10 }
  0x93   :  { %197 = vpow2.f32 %v115_v11 }
  0x94   :  { %199 = vrcp.f32 %v117_v12  ;;  %v130_v21 = vand.u32 2147483648, %v117_v12  ;;  %vm124_vm2 = vweird.f32 %v117_v12  ;;  %v128_v22 = vand.u32 2147483647, %v117_v12 }
  0x96   :  { %v131_v27 = vor.u32 1.1754944e-38, %v130_v21  ;;  %vm129_vm4 = vcmp.eq.f32.partialorder %v128_v22, 8.507059e+37 }
  0x99   :  { %v198_v13 = vpop.eup %197 }
  0x9a   :  { %v200_v14 = vpop.eup %199  ;;  %v118_v15 = vadd.f32 1.0, %v198_v13 }
  0x9b   :  { %v120_v16 = vmul.f32 %v200_v14, %v117_v12  ;;  %vm125_vm1 = vweird.f32 %v200_v14 }
  0x9c   :  { %201 = vrcp.f32 %v118_v15  ;;  %vm126_vm3 = vmor %vm124_vm2, %vm125_vm1  ;;  %v145_v28 = vand.u32 2147483648, %v118_v15  ;;  %v143_v30 = vand.u32 2147483647, %v118_v15  ;;  %vm139_vm6 = vweird.f32 %v118_v15 }
  0x9d   :  { %v121_v17 = vsub.f32 1.0, %v120_v16 }
  0x9e   :  { %v146_v33 = vor.u32 1.1754944e-38, %v145_v28  ;;  %vm144_vm8 = vcmp.eq.f32.partialorder %v143_v30, 8.507059e+37 }
  0x9f   :  { %v122_v18 = vmul.f32 %v200_v14, %v121_v17 }
  0xa1   :  { %v123_v19 = vadd.f32 %v200_v14, %v122_v18 }
  0xa2   :  { %v202_v20 = vpop.eup %201 }
  0xa3   :  { %v135_v23 = vmul.f32 %v202_v20, %v118_v15  ;;  %v127_v25 = vsel %vm126_vm3, %v200_v14, %v123_v19  ;;  %vm140_vm5 = vweird.f32 %v202_v20 }
  0xa4   :  { %v132_v31 = vsel %vm129_vm4, %v131_v27, %v127_v25  ;;  %vm141_vm7 = vmor %vm139_vm6, %vm140_vm5 }
  0xa5   :  { %v136_v26 = vsub.f32 1.0, %v135_v23  ;;  %v149_v34 = vmul.f32 %v132_v31, %v61_v5 }
  0xa7   :  { %v137_v29 = vmul.f32 %v202_v20, %v136_v26  ;;  %v153_v39 = vmul.f32 %v149_v34, %v97_v24 }
  0xa9   :  { %v138_v32 = vadd.f32 %v202_v20, %v137_v29 }
  0xab   :  { %v142_v35 = vsel %vm141_vm7, %v202_v20, %v138_v32 }
  0xac   :  { %v147_v36 = vsel %vm144_vm8, %v146_v33, %v142_v35 }
  0xad   :  { %v150_v37 = vmul.f32 %v147_v36, %v63_v8 }
  0xaf   :  { %v154_v40 = vmul.f32 %v150_v37, %v99_v38 }
  0xb1   :  { %v193_v41 = vpack.c.bf16 %v154_v40, %v153_v39 }
  0xb3   :  { %194 = vst [vmem:[%s244_s3] sm:$0xff] %v193_v41  }

// kernel: beru_block_forward.17
= control target key start
LH: loop header
LB: loop body
LE: loop exit
PB: predicated region body
PF: predicated region fallthrough
CT: control target
= control target key end

     0   :  { %vm19_vm0 = vcmask 261120   ;;  %v219_v2 = vmov 0.0   ;;  %s285_s0 = inlined_call_operand.vmem [shape: bf16[16,128], index: 0, kind: input, shape index: {}]   ;;  %s286_s1 = inlined_call_operand.vmem [shape: bf16[128,32], index: 1, kind: input, shape index: {}]   ;;  %s287_s2 = inlined_call_operand.vmem [shape: f32[16,32], index: 2, kind: input, shape index: {}]   ;;  %s288_s3 = inlined_call_operand.hbm [shape: f32[16,32], index: 3, kind: output, shape index: {}]  }
   0x1   :  { %v188_v0 = vld [vmem:[%s286_s1 + $0x38] sm:$0xff]  ;;  %v187_v1 = vld [vmem:[%s286_s1 + $0x30] sm:$0xff]  ;;  %20 = vst.msk [vmem:[#allocation2] sm:$0xff] %vm19_vm0, %v219_v2 }
   0x2   :  { %96 = vmatpush.bf16.msra.mxu0 %v188_v0  ;;  %21 = vst.msk [vmem:[#allocation2 + $0x8] sm:$0xff] %vm19_vm0, %v219_v2 }
   0x3   :  { %8 = vsyncpa [#allocation4], 0  ;;  %v186_v3 = vld [vmem:[%s286_s1 + $0x28] sm:$0xff]  ;;  %v185_v4 = vld [vmem:[%s286_s1 + $0x20] sm:$0xff]  ;;  %s132_s7 = sshll.u32 %s288_s3, 4  ;;  %s221_s10 = smov 128   ;;  %s133_s7 = int_to_ptr.hbm [resolvable:$true] %s132_s7 }
   0x4   :  { %v184_v5 = vld [vmem:[%s286_s1 + $0x18] sm:$0xff]  ;;  %v183_v6 = vld [vmem:[%s286_s1 + $0x10] sm:$0xff]  ;;  %v182_v7 = vld [vmem:[%s286_s1 + $0x8] sm:$0xff]  ;;  %s222_s11 = smov 8  }
   0x5   :  { %v181_v8 = vld [vmem:[%s286_s1] sm:$0xff]  ;;  %v121_v19 = vld [vmem:[%s287_s2 + $0x8] sm:$0xff] }
   0x6   :  { %97 = vmatpush.bf16.msra.mxu0 %v187_v1  ;;  %v180_v9 = vld [vmem:[%s285_s0] sm:$0xff]  ;;  %s220_s0 = smov [#allocation3]  }
   0x7   :  { %v120_v15 = vld [vmem:[%s287_s2] sm:$0xff]  ;;  %s130_s1 = sshll.u32 %s220_s0, 4  ;;  %s131_s1 = int_to_ptr.vmem [resolvable:$true] %s130_s1 }
   0x8   :  { %v22_v10 = vld [vmem:[#allocation2] sm:$0xff] }
   0x9   :  { %v23_v13 = vld [vmem:[#allocation2 + $0x8] sm:$0xff] }
   0xa   :  { %98 = vmatpush.bf16.msra.mxu0 %v186_v3 }
   0xe   :  { %99 = vmatpush.bf16.msra.mxu0 %v185_v4 }
  0x12   :  { %100 = vmatpush.bf16.msra.mxu0 %v184_v5 }
  0x16   :  { %101 = vmatpush.bf16.msra.mxu0 %v183_v6 }
  0x1a   :  { %102 = vmatpush.bf16.msra.mxu0 %v182_v7 }
  0x1e   :  { %103 = vmatpush.bf16.msra.mxu0 %v181_v8 }
  0x21   :  { %104 = vmatmul.bf16.vlgmr.msra.gmra.mxu0 %v180_v9 }
  0x9e   :  { %v105_v11 = vpop.f32.mrf.mxu0 }
  0x9f   :  { %v110_v12 = vadd.f32 %v105_v11, %v22_v10 }
  0xa1   :  { %113 = vst.msk [vmem:[#allocation2] sm:$0xff] %vm19_vm0, %v110_v12 }
  0xa6   :  { %v107_v14 = vpop.f32.mrf.mxu0 }
  0xa7   :  { %v111_v16 = vadd.f32 %v107_v14, %v23_v13 }
  0xa8   :  { %v118_v17 = vld [vmem:[#allocation2] sm:$0xff] }
  0xa9   :  { %114 = vst.msk [vmem:[#allocation2 + $0x8] sm:$0xff] %vm19_vm0, %v111_v16  ;;  %v122_v18 = vadd.f32 %v120_v15, %v118_v17 }
  0xab   :  { %124 = vst.msk [vmem:[#allocation3] sm:$0xff] %vm19_vm0, %v122_v18 }
  0xb0   :  { %v119_v20 = vld [vmem:[#allocation2 + $0x8] sm:$0xff] }
  0xb1   :  { %v123_v21 = vadd.f32 %v121_v19, %v119_v20 }
  0xb3   :  { %125 = vst.msk [vmem:[#allocation3 + $0x8] sm:$0xff] %vm19_vm0, %v123_v21 }
  0xb4   :  { %138 = dma.vmem_to_hbm [thread:$0]  %s131_s1, 256, %s133_s7, [#allocation4], %s221_s10, %s221_s10, %s222_s11  }
  0xb5   :  { %217 = dma.done.wait [#allocation4], 256  }
  0xb6   :  { %218 = vsyncadd [#allocation4], 4294967040 }
  0xb7   :  { %143 = vsyncpa [#allocation4], 1 }

// kernel: beru_block_forward.13
= control target key start
LH: loop header
LB: loop body
LE: loop exit
PB: predicated region body
PF: predicated region fallthrough
CT: control target
= control target key end

     0   :  { %s1315_s22 = smov 0   ;;  %s1317_s23 = smov 0   ;;  %s1507_s0 = inlined_call_operand.<no memory space> [shape: s32[1], index: 0, kind: input, shape index: {}, may-alias: {0,1}]   ;;  %s1508_s1 = inlined_call_operand.<no memory space> [shape: s32[1], index: 1, kind: input, shape index: {}, may-alias: {0,1}]   ;;  %s1509_s2 = inlined_call_operand.vmem [shape: bf16[2,8,32], index: 2, kind: input, shape index: {}]   ;;  %s1510_s3 = inlined_call_operand.vmem [shape: bf16[2,8,16], index: 3, kind: input, shape index: {}]   ;;  %s1511_s4 = inlined_call_operand.vmem [shape: bf16[2,8,16], index: 4, kind: input, shape index: {}]   ;;  %s1512_s5 = inlined_call_operand.vmem [shape: bf16[2,8,32], index: 5, kind: output, shape index: {}]  }
   0x1   :  { %10 = sst [smem:[#allocation6]] %s1507_s0  ;;  %s1319_s24 = smov 0  }
   0x2   :  { %11 = sst [smem:[#allocation7]] %s1508_s1 }
   0x3 LB: > { %s29_s0 = sadd.s32 1, %s1251_s23  ;;  %p1110_p0 = scmp.ge.s32.totalorder %s1255_s24, 1  ;;  %s1255_s24 = sphi %s1319_s24, %s17_s24   ;;  %s1251_s23 = sphi %s1317_s23, %s1514_s23   ;;  %s1247_s22 = sphi %s1315_s22, %s1513_s22  }
   0x4   : > { %p31_p1 = scmp.ge.s32.totalorder %s29_s0, 2  ;;  %p201_p2 = scmp.lt.s32.totalorder %s1255_s24, 3 }
   0x6   : > { %s1516_s0 = smov (%p31_p1, %s29_s0), 0  ;;  %p202_p3 = pnand %p1110_p0, %p201_p2 }
   0x7   : > { %s1333_s1 = sld [smem:[#allocation6]] (!%p202_p3)  ;;  %p248_p4 = scmp.lt.s32.totalorder (!%p202_p3), %s1247_s22, 1 }
   0x8   : > { %205 = sbr.rel (%p202_p3) target bundleno = 2175 (0x87f), region = 32  ;;  %s1335_s25 = sld [smem:[#allocation7]] (!%p202_p3) }
   0xd   : > { %s1518_s22 = smov (!%p248_p4, %s1247_s22), 1  ;;  %p250_p5 = scmp.lt.s32.totalorder %s1333_s1, 0 }
   0xe   : > { %p259_p6 = scmp.lt.s32.totalorder %s1335_s25, 0  ;;  %p1115_p7 = scmp.ne.s32.totalorder %s1335_s25, 0 }
   0xf   : > { %s251_s26 = scalar_select %p250_p5, %s1333_s1, 0 }
  0x10   : > { %s260_s27 = scalar_select %p259_p6, %s1335_s25, 0 }
  0x11   : > { %s252_s28 = sadd.s32 %s251_s26, %s1518_s22  ;;  %289 = sbr.rel (%p1115_p7) target bundleno = 26 (0x1a), region = 36 }
  0x12   : > { %s1111_s29 = sshll.u32 %s252_s28, 2  ;;  %s261_s30 = sadd.s32 %s260_s27, %s1518_s22 }
  0x13   : > { %s1344_s8 = scalar_lea.vmem %s1509_s2, %s1111_s29  ;;  %s1112_s9 = sshll.u32 %s261_s30, 2 }
  0x14   : > { %s1349_s12 = scalar_lea.vmem %s1510_s3, %s1112_s9  ;;  %s1354_s15 = scalar_lea.vmem %s1511_s4, %s1112_s9 }
  0x15   : > { %s1359_s18 = scalar_lea.vmem %s1512_s5, %s1111_s29 }
  0x16   : > { %vm290_vm0 = vcmask 31744   ;;  %vm293_vm1 = vcmask 261120   ;;  %v1257_v0 = vmov -1e+30   ;;  %v1258_v1 = vmov 0.0  }
  0x17   : > { %291 = vst.msk [vmem:[#allocation2] sm:$0xff] %vm290_vm0, %v1257_v0 }
  0x18   : > { %292 = vst.msk [vmem:[#allocation3] sm:$0xff] %vm290_vm0, %v1258_v1 }
  0x19   : > { %294 = vst.msk [vmem:[#allocation4] sm:$0xff] %vm293_vm1, %v1258_v1 }
  0x1a PF: > { %p1116_p8 = scmp.ge.s32.totalorder %s1335_s25, %s1333_s1 }
  0x1b   : > { %s1259_s19 = smov (!%p1116_p8), 120   ;;  %s1260_s20 = smov (!%p1116_p8), 112  }
  0x1c   : > { %298 = sbr.rel (%p1116_p8) target bundleno = 1066 (0x42a), region = 40  ;;  %s1261_s21 = smov (!%p1116_p8), 104  }
  0x1d   : > { %s1266_s22 = smov (!%p1116_p8), 8   ;;  %s1267_s26 = smov (!%p1116_p8), 16  }
  0x1e   : > { %s1268_s27 = smov (!%p1116_p8), 24  }
  0x21   : > { %v300_v2 = vld [vmem:[%s1349_s12] sm:$0xf]  ;;  %vm302_vm2 = vcmask 64512   ;;  %v1262_v17 = vmov 0   ;;  %vm373_vm3 = vcmask 7168   ;;  %vm355_vm4 = vcmask 1043456  }
  0x22   : > { %v299_v3 = vld [vmem:[%s1344_s8] sm:$0xf]  ;;  %v307_v4 = vsel %vm302_vm2, %v300_v2, 0  ;;  %v457_v7 = vunpack.c.l.b16 %v300_v2  ;;  %1182 = vset.pattern.permute.xlu0 %v1262_v17  ;;  %v1263_v32 = vmov 1   ;;  %vm449_vm5 = vcmask 15368   ;;  %v324_v45 = vld [vmem:[#allocation4] sm:$0xff] }
  0x23   : > { %v378_v5 = vunpack.c.l.b16 %v299_v3  ;;  %316 = vmatpush.bf16.xpose.msra.mxu0 %v307_v4  ;;  %392 = vmatpush.bf16.xpose.msra.mxu2 %v307_v4  ;;  %v322_v18 = vld [vmem:[#allocation2] sm:$0xff]  ;;  %v1264_v57 = vmov 2   ;;  %v1265_v58 = vmov 3   ;;  %vm539_vm6 = vcmask 23568  }
  0x24   : > { %v458_v8 = vpack.c.b16 %v457_v7, %v457_v7  ;;  %v301_v30 = vld [vmem:[%s1354_s15] sm:$0xf]  ;;  %1183 = vset.pattern.permute.xlu2 %v1263_v32  ;;  %1184 = vset.pattern.permute.xlu1 %v1264_v57  ;;  %vm613_vm7 = vcmask 31768   ;;  %vm452_vm8 = vcmask 130112   ;;  %vm542_vm9 = vcmask 195712  }
  0x25   : > { %v379_v6 = vpack.c.b16 %v378_v5, %v378_v5  ;;  %v357_v31 = vsel %vm355_vm4, %v301_v30, 0  ;;  %v511_v54 = vunpack.c.l.b16 %v301_v30  ;;  %vm616_vm10 = vcmask 261312  }
  0x26   : > { %366 = vmatpush.bf16.msra.mxu1 %v357_v31  ;;  %438 = vmatpush.bf16.msra.mxu3 %v357_v31 }
  0x27   : > { %380 = vrot.lane.b32.xlu1 %v379_v6, %s1259_s19  ;;  %454 = vrot.lane.b32.xlu2 %v379_v6, %s1260_s20  ;;  %v512_v55 = vpack.c.b16 %v511_v54, %v511_v54 }
  0x2a   : > { %1117 = vmatmul.msk.bf16.vlgmr.msra.gmra.mxu0 %vm302_vm2, %v299_v3 }
  0x2f   : > { %459 = vrot.lane.b32.xlu1 %v458_v8, %s1259_s19  ;;  %544 = vrot.lane.b32.xlu2 %v379_v6, %s1261_s21 }
  0x81   : > { %v455_v10 = vpop.permute.xlu2 %454 }
  0x89   : > { %v545_v13 = vpop.permute.xlu2 %544 }
  0x99   : > { %v381_v9 = vpop.permute.xlu1 %380 }
  0x9a   : > { %1119 = vmatmul.msk.bf16.vlgmr.msra.gmra.mxu2 %vm302_vm2, %v381_v9 }
  0xa1   : > { %v460_v11 = vpop.permute.xlu1 %459 }
  0xa2   : > { %v465_v12 = vsel %vm302_vm2, %v460_v11, 0  ;;  %v323_v11 = vld [vmem:[#allocation3] sm:$0xff] }
  0xa3   : > { %556 = vmatpush.bf16.xpose.msrb.mxu0 %v465_v12  ;;  %474 = vmatpush.bf16.xpose.msrb.mxu1 %v465_v12 }
  0xa7   : > { %v318_v14 = vpop.f32.mrf.mxu0 }
  0xa8   : > { %v325_v15 = vsel %vm302_vm2, %v318_v14, -inf }
  0xa9   : > { %326 = vmax.xlane.f32.xlu0 %v325_v15 }
  0xaa   : > { %1123 = vmatmul.msk.bf16.vlgmr.msrb.gmra.mxu0 %vm302_vm2, %v545_v13 }
  0xaf   : > { %v320_v16 = vpop.f32.mrf.mxu0 }
 0x11c   : > { %v327_v20 = vpop.xlane.xlu0 %326 }
 0x11d   : > { %v1374_v19 = vpop.f32.mrf.mxu2  ;;  %v328_v21 = vmax.f32 %v322_v18, %v327_v20 }
 0x11e   : > { %v401_v22 = vsel %vm302_vm2, %v1374_v19, -inf }
 0x11f   : > { %402 = vmax.xlane.f32.xlu1 %v401_v22  ;;  %374 = vst.msk [vmem:[#allocation2] sm:$0xff] %vm373_vm3, %v328_v21  ;;  %334 = vperm.xlu0 %1182, %v328_v21   ;;  %v329_v27 = vsub.f32 %v322_v18, %v328_v21 }
 0x121   : > { %v330_v28 = vmul.f32 1.442695, %v329_v27 }
 0x123   : > { %1189 = vpow2.f32 %v330_v28 }
 0x125   : > { %v396_v23 = vpop.f32.mrf.mxu2 }
 0x126   : > { %v398_v34 = vld [vmem:[#allocation2] sm:$0xff] }
 0x127   : > { %v1379_v24 = vpop.f32.mrf.mxu0 }
 0x128   : > { %v565_v26 = vsel %vm302_vm2, %v1379_v24, -inf }
 0x129   : > { %v1383_v29 = vpop.eup %1189 }
 0x12a   : > { %v340_v12 = vmul.f32 %v1383_v29, %v323_v11 }
 0x12f   : > { %v560_v25 = vpop.f32.mrf.mxu0 }
 0x149   : > { %566 = vmax.xlane.f32.xlu0 %v565_v26 }
 0x15d   : > { %347 = vperm.xlu0 %1182, %v1383_v29  }
 0x165   : > { %1186 = vset.pattern.permute.xlu0 %v1263_v32 }
 0x191   : > { %v335_v35 = vpop.permute.xlu0 %334 }
 0x192   : > { %v403_v33 = vpop.xlane.xlu1 %402  ;;  %v337_v37 = vsub.f32 %v318_v14, %v335_v35 }
 0x193   : > { %v404_v36 = vmax.f32 %v398_v34, %v403_v33 }
 0x194   : > { %v338_v39 = vmul.f32 1.442695, %v337_v37 }
 0x195   : > { %v405_v38 = vsub.f32 %v398_v34, %v404_v36  ;;  %450 = vst.msk [vmem:[#allocation2] sm:$0xff] %vm449_vm5, %v404_v36 }
 0x196   : > { %1191 = vpow2.f32 %v338_v39 }
 0x197   : > { %v406_v40 = vmul.f32 1.442695, %v405_v38 }
 0x199   : > { %1193 = vpow2.f32 %v406_v40 }
 0x19c   : > { %v1192_v41 = vpop.eup %1191  ;;  %v480_v60 = vld [vmem:[#allocation2] sm:$0xff] }
 0x19d   : > { %v351_v42 = vpack.c.bf16 %v1192_v41, %v1192_v41  ;;  %v341_v56 = vsel %vm302_vm2, %v1192_v41, 0.0 }
 0x19f   : > { %v1389_v43 = vpop.eup %1193  ;;  %1118 = vmatmul.msk.bf16.vlgmr.msra.gmra.mxu1 %vm302_vm2, %v351_v42 }
 0x1a0   : > { %423 = vperm.xlu0 %1186, %v1389_v43  }
 0x1a8   : > { %1188 = vset.pattern.permute.xlu0 %v1265_v58 }
 0x1af   : > { %1121 = vmatmul.msk.bf16.vlgmr.msrb.gmra.mxu1 %vm302_vm2, %v455_v10 }
 0x1bc   : > { %v567_v44 = vpop.xlane.xlu0 %566 }
 0x1cf   : > { %v348_v46 = vpop.permute.xlu0 %347 }
 0x1d0   : > { %v350_v47 = vmul.f32 %v348_v46, %v324_v45 }
 0x212   : > { %v424_v45 = vpop.permute.xlu0 %423 }
 0x21c   : > { %v368_v48 = vpop.f32.mrf.mxu1 }
 0x21d   : > { %v372_v49 = vadd.f32 %v368_v48, %v350_v47 }
 0x21f   : > { %376 = vst.msk [vmem:[#allocation4] sm:$0xff] %vm302_vm2, %v372_v49 }
 0x224   : > { %v370_v50 = vpop.f32.mrf.mxu1 }
 0x226   : > { %v400_v46 = vld [vmem:[#allocation4] sm:$0xff] }
 0x227   : > { %v426_v47 = vmul.f32 %v424_v45, %v400_v46 }
 0x22c   : > { %v476_v51 = vpop.f32.mrf.mxu1 }
 0x22d   : > { %v483_v52 = vsel %vm302_vm2, %v476_v51, -inf }
 0x22e   : > { %484 = vmax.xlane.f32.xlu2 %v483_v52 }
 0x234   : > { %v478_v53 = vpop.f32.mrf.mxu1 }
 0x246   : > { %410 = vperm.xlu2 %1183, %v404_v36  }
 0x24e   : > { %513 = vrot.lane.b32.xlu2 %v512_v55, %s1259_s19 }
 0x277   : > { %342 = vadd.xlane.f32.xlu2 %v341_v56 }
 0x2a1   : > { %v485_v59 = vpop.xlane.xlu2 %484 }
 0x2a2   : > { %v486_v61 = vmax.f32 %v480_v60, %v485_v59 }
 0x2a4   : > { %v487_v62 = vsub.f32 %v480_v60, %v486_v61  ;;  %540 = vst.msk [vmem:[#allocation2] sm:$0xff] %vm539_vm6, %v486_v61  ;;  %492 = vperm.xlu1 %1184, %v486_v61  }
 0x2a6   : > { %v488_v10 = vmul.f32 1.442695, %v487_v62 }
 0x2a9   : > { %v411_v63 = vpop.permute.xlu2 %410 }
 0x2aa   : > { %v413_v0 = vsub.f32 %v1374_v19, %v411_v63 }
 0x2ab   : > { %v562_v1 = vld [vmem:[#allocation2] sm:$0xff] }
 0x2ac   : > { %v414_v2 = vmul.f32 1.442695, %v413_v0  ;;  %1185 = vset.pattern.permute.xlu1 %v1265_v58  ;;  %v568_v3 = vmax.f32 %v562_v1, %v567_v44 }
 0x2ae   : > { %1195 = vpow2.f32 %v414_v2  ;;  %574 = vperm.xlu1 %1185, %v568_v3   ;;  %v569_v4 = vsub.f32 %v562_v1, %v568_v3  ;;  %614 = vst.msk [vmem:[#allocation2] sm:$0xff] %vm613_vm7, %v568_v3 }
 0x2af   : > { %1197 = vpow2.f32 %v488_v10 }
 0x2b0   : > { %v570_v36 = vmul.f32 1.442695, %v569_v4 }
 0x2b1   : > { %v514_v7 = vpop.permute.xlu2 %513 }
 0x2b2   : > { %v519_v8 = vsel %vm355_vm4, %v514_v7, 0 }
 0x2b3   : > { %528 = vmatpush.bf16.msrb.mxu3 %v519_v8  ;;  %602 = vmatpush.bf16.msrb.mxu2 %v519_v8 }
 0x2b4   : > { %v1196_v5 = vpop.eup %1195 }
 0x2b5   : > { %v427_v6 = vpack.c.bf16 %v1196_v5, %v1196_v5  ;;  %v417_v9 = vsel %vm302_vm2, %v1196_v5, 0.0  ;;  %v1198_v15 = vpop.eup %1197 }
 0x2b6   : > { %1187 = vset.pattern.permute.xlu1 %v1264_v57 }
 0x2b7   : > { %1120 = vmatmul.msk.bf16.vlgmr.msra.gmra.mxu3 %vm302_vm2, %v427_v6 }
 0x2d8   : > { %418 = vadd.xlane.f32.xlu1 %v417_v9 }
 0x2ea   : > { %v343_v13 = vpop.xlane.xlu2 %342 }
 0x2eb   : > { %v344_v14 = vadd.f32 %v343_v13, %v340_v12 }
 0x2ed   : > { %375 = vst.msk [vmem:[#allocation3] sm:$0xff] %vm373_vm3, %v344_v14 }
 0x2f1   : > { %505 = vperm.xlu1 %1187, %v1198_v15  }
 0x316   : > { %v493_v16 = vpop.permute.xlu1 %492 }
 0x317   : > { %v495_v17 = vsub.f32 %v476_v51, %v493_v16 }
 0x319   : > { %v496_v18 = vmul.f32 1.442695, %v495_v17 }
 0x31b   : > { %1199 = vpow2.f32 %v496_v18 }
 0x320   : > { %v575_v19 = vpop.permute.xlu1 %574 }
 0x321   : > { %v1200_v20 = vpop.eup %1199  ;;  %v577_v21 = vsub.f32 %v1379_v24, %v575_v19  ;;  %v399_v24 = vld [vmem:[#allocation3] sm:$0xff] }
 0x322   : > { %v499_v22 = vsel %vm302_vm2, %v1200_v20, 0.0  ;;  %v509_v23 = vpack.c.bf16 %v1200_v20, %v1200_v20  ;;  %v416_v31 = vmul.f32 %v1389_v43, %v399_v24 }
 0x323   : > { %v578_v25 = vmul.f32 1.442695, %v577_v21  ;;  %500 = vadd.xlane.f32.xlu2 %v499_v22 }
 0x324   : > { %1122 = vmatmul.msk.bf16.vlgmr.msrb.gmra.mxu3 %vm302_vm2, %v509_v23 }
 0x325   : > { %1201 = vpow2.f32 %v578_v25 }
 0x326   : > { %1203 = vpow2.f32 %v570_v36 }
 0x32b   : > { %v1202_v26 = vpop.eup %1201 }
 0x32c   : > { %v581_v27 = vsel %vm302_vm2, %v1202_v26, 0.0  ;;  %v591_v28 = vpack.c.bf16 %v1202_v26, %v1202_v26  ;;  %v1204_v39 = vpop.eup %1203 }
 0x32d   : > { %582 = vadd.xlane.f32.xlu2 %v581_v27 }
 0x32e   : > { %1124 = vmatmul.msk.bf16.vlgmr.msrb.gmra.mxu2 %vm302_vm2, %v591_v28 }
 0x33a   : > { %v440_v29 = vpop.f32.mrf.mxu3 }
 0x33b   : > { %445 = vrot.lane.b32.xlu0 %v440_v29, %s1266_s22 }
 0x342   : > { %v442_v30 = vpop.f32.mrf.mxu3 }
 0x34b   : > { %v419_v32 = vpop.xlane.xlu1 %418 }
 0x34c   : > { %v420_v33 = vadd.f32 %v419_v32, %v416_v31 }
 0x34e   : > { %451 = vst.msk [vmem:[#allocation3] sm:$0xff] %vm449_vm5, %v420_v33 }
 0x355   : > { %v481_v34 = vld [vmem:[#allocation3] sm:$0xff] }
 0x356   : > { %v498_v35 = vmul.f32 %v1198_v15, %v481_v34 }
 0x363   : > { %v506_v54 = vpop.permute.xlu1 %505 }
 0x396   : > { %v501_v37 = vpop.xlane.xlu2 %500 }
 0x397   : > { %v502_v38 = vadd.f32 %v501_v37, %v498_v35 }
 0x399   : > { %541 = vst.msk [vmem:[#allocation3] sm:$0xff] %vm539_vm6, %v502_v38 }
 0x3a0   : > { %v563_v40 = vld [vmem:[#allocation3] sm:$0xff]  ;;  %v583_v42 = vpop.xlane.xlu2 %582 }
 0x3a1   : > { %v580_v41 = vmul.f32 %v1204_v39, %v563_v40 }
 0x3a3   : > { %v584_v44 = vadd.f32 %v583_v42, %v580_v41 }
 0x3a5   : > { %615 = vst.msk [vmem:[#allocation3] sm:$0xff] %vm613_vm7, %v584_v44 }
 0x3a7   : > { %v530_v43 = vpop.f32.mrf.mxu3 }
 0x3a8   : > { %535 = vrot.lane.b32.xlu0 %v530_v43, %s1267_s26 }
 0x3ad   : > { %v446_v48 = vpop.permute.xlu0 %445 }
 0x3ae   : > { %v448_v49 = vadd.f32 %v446_v48, %v426_v47 }
 0x3af   : > { %v532_v50 = vpop.f32.mrf.mxu3 }
 0x3b0   : > { %453 = vst.msk [vmem:[#allocation4] sm:$0xff] %vm452_vm8, %v448_v49  ;;  %587 = vperm.xlu0 %1188, %v1204_v39  }
 0x3b1   : > { %v604_v51 = vpop.f32.mrf.mxu2 }
 0x3b2   : > { %609 = vrot.lane.b32.xlu2 %v604_v51, %s1268_s27 }
 0x3b7   : > { %v482_v53 = vld [vmem:[#allocation4] sm:$0xff] }
 0x3b8   : > { %v508_v55 = vmul.f32 %v506_v54, %v482_v53 }
 0x3b9   : > { %v606_v52 = vpop.f32.mrf.mxu2 }
 0x40c   : > { %v610_v61 = vpop.permute.xlu2 %609 }
 0x41a   : > { %v536_v56 = vpop.permute.xlu0 %535 }
 0x41b   : > { %v538_v57 = vadd.f32 %v536_v56, %v508_v55 }
 0x41d   : > { %543 = vst.msk [vmem:[#allocation4] sm:$0xff] %vm542_vm9, %v538_v57 }
 0x422   : > { %v588_v59 = vpop.permute.xlu0 %587 }
 0x424   : > { %v564_v58 = vld [vmem:[#allocation4] sm:$0xff] }
 0x425   : > { %v590_v60 = vmul.f32 %v588_v59, %v564_v58 }
 0x427   : > { %v612_v62 = vadd.f32 %v610_v61, %v590_v60 }
 0x429   : > { %617 = vst.msk [vmem:[#allocation4] sm:$0xff] %vm616_vm10, %v612_v62 }
 0x42a PF: > { %p1125_p9 = scmp.ne.s32.totalorder %s1335_s25, %s1333_s1 }
 0x42b   : > { %s1269_s28 = smov (!%p1125_p9), 120   ;;  %s1270_s29 = smov (!%p1125_p9), 112  }
 0x42c   : > { %621 = sbr.rel (%p1125_p9) target bundleno = 2175 (0x87f), region = 44  ;;  %s1271_s1 = smov (!%p1125_p9), 104  }
 0x42d   : > { %s1276_s25 = smov (!%p1125_p9), 8   ;;  %s1277_s30 = smov (!%p1125_p9), 16  }
 0x42e   : > { %s1278_s6 = smov (!%p1125_p9), 24  }
 0x431   : > { %v623_v63 = vld [vmem:[%s1349_s12] sm:$0xf]  ;;  %vm630_vm11 = vcmask 64512   ;;  %v625_v8 = vlaneseq  ;;  %v1272_v18 = vmov 0   ;;  %vm702_vm13 = vcmask 7168   ;;  %v653_v48 = vld [vmem:[#allocation4] sm:$0xff] }
 0x432   : > { %v622_v0 = vld [vmem:[%s1344_s8] sm:$0xf]  ;;  %v635_v1 = vsel %vm630_vm11, %v623_v63, 0  ;;  %v787_v4 = vunpack.c.l.b16 %v623_v63  ;;  %1205 = vset.pattern.permute.xlu0 %v1272_v18  ;;  %vm684_vm14 = vcmask 1043456   ;;  %v1273_v35 = vmov 1  }
 0x433   : > { %v707_v2 = vunpack.c.l.b16 %v622_v0  ;;  %644 = vmatpush.bf16.xpose.msra.mxu0 %v635_v1  ;;  %721 = vmatpush.bf16.xpose.msra.mxu2 %v635_v1  ;;  %v1426_v10 = vshrl.u32 %v625_v8, 7  ;;  %v1428_v11 = vand.u32 127, %v625_v8  ;;  %v651_v19 = vld [vmem:[#allocation2] sm:$0xff]  ;;  %vm779_vm15 = vcmask 15368  }
 0x434   : > { %v788_v5 = vpack.c.b16 %v787_v4, %v787_v4  ;;  %v624_v33 = vld [vmem:[%s1354_s15] sm:$0xf]  ;;  %1206 = vset.pattern.permute.xlu2 %v1273_v35  ;;  %v1274_v61 = vmov 2   ;;  %v1275_v62 = vmov 3   ;;  %vm870_vm0 = vcmask 23568  }
 0x435   : > { %v708_v3 = vpack.c.b16 %v707_v2, %v707_v2  ;;  %vm629_vm12 = vcmp.le.s32.totalorder %v1428_v11, %v1426_v10  ;;  %v686_v34 = vsel %vm684_vm14, %v624_v33, 0  ;;  %v842_v58 = vunpack.c.l.b16 %v624_v33  ;;  %1207 = vset.pattern.permute.xlu1 %v1274_v61 }
 0x436   : > { %695 = vmatpush.bf16.msra.mxu1 %v686_v34  ;;  %768 = vmatpush.bf16.msra.mxu3 %v686_v34  ;;  %vm945_vm1 = vcmask 31768   ;;  %vm782_vm2 = vcmask 130112   ;;  %vm873_vm3 = vcmask 195712   ;;  %vm948_vm4 = vcmask 261312  }
 0x437   : > { %709 = vrot.lane.b32.xlu1 %v708_v3, %s1269_s28  ;;  %784 = vrot.lane.b32.xlu2 %v708_v3, %s1270_s29  ;;  %v843_v59 = vpack.c.b16 %v842_v58, %v842_v58  ;;  %vm960_vm5 = vcmask 60416   ;;  %vm972_vm6 = vcmask 126016   ;;  %vm984_vm7 = vcmask 191616  }
 0x438   : > { %vm996_vm8 = vcmask 257216  }
 0x43a   : > { %1126 = vmatmul.msk.bf16.vlgmr.msra.gmra.mxu0 %vm630_vm11, %v622_v0 }
 0x43f   : > { %789 = vrot.lane.b32.xlu1 %v788_v5, %s1269_s28  ;;  %875 = vrot.lane.b32.xlu2 %v708_v3, %s1271_s1 }
 0x491   : > { %v1424_v7 = vpop.permute.xlu2 %784 }
 0x499   : > { %v876_v13 = vpop.permute.xlu2 %875 }
 0x4a9   : > { %v710_v6 = vpop.permute.xlu1 %709 }
 0x4aa   : > { %1128 = vmatmul.msk.bf16.vlgmr.msra.gmra.mxu2 %vm630_vm11, %v710_v6 }
 0x4b1   : > { %v790_v9 = vpop.permute.xlu1 %789 }
 0x4b2   : > { %v795_v12 = vsel %vm630_vm11, %v790_v9, 0 }
 0x4b3   : > { %887 = vmatpush.bf16.xpose.msrb.mxu0 %v795_v12  ;;  %804 = vmatpush.bf16.xpose.msrb.mxu1 %v795_v12 }
 0x4b7   : > { %v646_v14 = vpop.f32.mrf.mxu0 }
 0x4b8   : > { %v650_v15 = vsel %vm629_vm12, %v646_v14, -1e+30  ;;  %v652_v14 = vld [vmem:[#allocation3] sm:$0xff] }
 0x4b9   : > { %v654_v16 = vsel %vm630_vm11, %v650_v15, -inf }
 0x4ba   : > { %1132 = vmatmul.msk.bf16.vlgmr.msrb.gmra.mxu0 %vm630_vm11, %v876_v13  ;;  %655 = vmax.xlane.f32.xlu0 %v654_v16 }
 0x4bf   : > { %v648_v17 = vpop.f32.mrf.mxu0 }
 0x52d   : > { %v723_v20 = vpop.f32.mrf.mxu2  ;;  %v656_v22 = vpop.xlane.xlu0 %655 }
 0x52e   : > { %v1442_v21 = vsel %vm629_vm12, %v723_v20, -1e+30  ;;  %v657_v23 = vmax.f32 %v651_v19, %v656_v22 }
 0x52f   : > { %v731_v25 = vsel %vm630_vm11, %v1442_v21, -inf }
 0x530   : > { %732 = vmax.xlane.f32.xlu1 %v731_v25  ;;  %703 = vst.msk [vmem:[#allocation2] sm:$0xff] %vm702_vm13, %v657_v23  ;;  %663 = vperm.xlu0 %1205, %v657_v23   ;;  %v658_v24 = vsub.f32 %v651_v19, %v657_v23 }
 0x532   : > { %v659_v31 = vmul.f32 1.442695, %v658_v24 }
 0x534   : > { %1215 = vpow2.f32 %v659_v31 }
 0x535   : > { %v725_v26 = vpop.f32.mrf.mxu2 }
 0x537   : > { %v889_v27 = vpop.f32.mrf.mxu0  ;;  %v728_v37 = vld [vmem:[#allocation2] sm:$0xff] }
 0x538   : > { %v1450_v29 = vsel %vm629_vm12, %v889_v27, -1e+30 }
 0x539   : > { %v897_v30 = vsel %vm630_vm11, %v1450_v29, -inf }
 0x53a   : > { %v1454_v32 = vpop.eup %1215 }
 0x53f   : > { %v891_v28 = vpop.f32.mrf.mxu0 }
 0x55a   : > { %898 = vmax.xlane.f32.xlu0 %v897_v30 }
 0x56e   : > { %676 = vperm.xlu0 %1205, %v1454_v32  }
 0x576   : > { %1209 = vset.pattern.permute.xlu0 %v1273_v35 }
 0x5a2   : > { %v664_v38 = vpop.permute.xlu0 %663 }
 0x5a3   : > { %v733_v36 = vpop.xlane.xlu1 %732  ;;  %v666_v40 = vsub.f32 %v650_v15, %v664_v38  ;;  %v669_v15 = vmul.f32 %v1454_v32, %v652_v14 }
 0x5a4   : > { %v734_v39 = vmax.f32 %v728_v37, %v733_v36 }
 0x5a5   : > { %v667_v42 = vmul.f32 1.442695, %v666_v40 }
 0x5a6   : > { %v735_v41 = vsub.f32 %v728_v37, %v734_v39  ;;  %780 = vst.msk [vmem:[#allocation2] sm:$0xff] %vm779_vm15, %v734_v39 }
 0x5a7   : > { %1217 = vpow2.f32 %v667_v42 }
 0x5a8   : > { %v736_v44 = vmul.f32 1.442695, %v735_v41 }
 0x5aa   : > { %1219 = vpow2.f32 %v736_v44 }
 0x5ad   : > { %v1218_v45 = vpop.eup %1217  ;;  %v811_v0 = vld [vmem:[#allocation2] sm:$0xff] }
 0x5ae   : > { %v680_v43 = vpack.c.bf16 %v1218_v45, %v1218_v45  ;;  %v670_v60 = vsel %vm630_vm11, %v1218_v45, 0.0 }
 0x5b0   : > { %v1460_v46 = vpop.eup %1219  ;;  %1127 = vmatmul.msk.bf16.vlgmr.msra.gmra.mxu1 %vm630_vm11, %v680_v43 }
 0x5b1   : > { %753 = vperm.xlu0 %1209, %v1460_v46  }
 0x5b9   : > { %1214 = vset.pattern.permute.xlu0 %v1275_v62 }
 0x5c0   : > { %1130 = vmatmul.msk.bf16.vlgmr.msrb.gmra.mxu1 %vm630_vm11, %v1424_v7 }
 0x5cd   : > { %v899_v47 = vpop.xlane.xlu0 %898 }
 0x5e0   : > { %v677_v49 = vpop.permute.xlu0 %676 }
 0x5e1   : > { %v679_v50 = vmul.f32 %v677_v49, %v653_v48 }
 0x623   : > { %v754_v45 = vpop.permute.xlu0 %753 }
 0x62d   : > { %v697_v51 = vpop.f32.mrf.mxu1 }
 0x62e   : > { %v701_v52 = vadd.f32 %v697_v51, %v679_v50 }
 0x630   : > { %705 = vst.msk [vmem:[#allocation4] sm:$0xff] %vm630_vm11, %v701_v52 }
 0x635   : > { %v699_v53 = vpop.f32.mrf.mxu1 }
 0x63d   : > { %v806_v54 = vpop.f32.mrf.mxu1 }
 0x63e   : > { %v810_v55 = vsel %vm629_vm12, %v806_v54, -1e+30 }
 0x63f   : > { %v814_v56 = vsel %vm630_vm11, %v810_v55, -inf }
 0x640   : > { %815 = vmax.xlane.f32.xlu2 %v814_v56 }
 0x645   : > { %v808_v57 = vpop.f32.mrf.mxu1 }
 0x658   : > { %740 = vperm.xlu2 %1206, %v734_v39  }
 0x660   : > { %844 = vrot.lane.b32.xlu2 %v843_v59, %s1269_s28 }
 0x689   : > { %671 = vadd.xlane.f32.xlu2 %v670_v60 }
 0x6b3   : > { %v816_v63 = vpop.xlane.xlu2 %815 }
 0x6b4   : > { %v817_v1 = vmax.f32 %v811_v0, %v816_v63 }
 0x6b6   : > { %v818_v2 = vsub.f32 %v811_v0, %v817_v1  ;;  %871 = vst.msk [vmem:[#allocation2] sm:$0xff] %vm870_vm0, %v817_v1  ;;  %823 = vperm.xlu1 %1207, %v817_v1  }
 0x6b8   : > { %v819_v13 = vmul.f32 1.442695, %v818_v2 }
 0x6bb   : > { %v741_v3 = vpop.permute.xlu2 %740 }
 0x6bc   : > { %v743_v4 = vsub.f32 %v1442_v21, %v741_v3 }
 0x6bd   : > { %v894_v5 = vld [vmem:[#allocation2] sm:$0xff] }
 0x6be   : > { %v744_v6 = vmul.f32 1.442695, %v743_v4  ;;  %1208 = vset.pattern.permute.xlu1 %v1275_v62  ;;  %v900_v7 = vmax.f32 %v894_v5, %v899_v47  ;;  %v730_v47 = vld [vmem:[#allocation4] sm:$0xff] }
 0x6bf   : > { %v756_v48 = vmul.f32 %v754_v45, %v730_v47 }
 0x6c0   : > { %1221 = vpow2.f32 %v744_v6  ;;  %906 = vperm.xlu1 %1208, %v900_v7   ;;  %v901_v8 = vsub.f32 %v894_v5, %v900_v7  ;;  %946 = vst.msk [vmem:[#allocation2] sm:$0xff] %vm945_vm1, %v900_v7 }
 0x6c1   : > { %1223 = vpow2.f32 %v819_v13 }
 0x6c2   : > { %v902_v19 = vmul.f32 1.442695, %v901_v8 }
 0x6c3   : > { %v845_v12 = vpop.permute.xlu2 %844 }
 0x6c4   : > { %1225 = vpow2.f32 %v902_v19  ;;  %v850_v22 = vsel %vm684_vm14, %v845_v12, 0 }
 0x6c5   : > { %859 = vmatpush.bf16.msrb.mxu3 %v850_v22  ;;  %934 = vmatpush.bf16.msrb.mxu2 %v850_v22 }
 0x6c6   : > { %v1222_v9 = vpop.eup %1221 }
 0x6c7   : > { %v757_v10 = vpack.c.bf16 %v1222_v9, %v1222_v9  ;;  %v747_v11 = vsel %vm630_vm11, %v1222_v9, 0.0  ;;  %v1224_v20 = vpop.eup %1223 }
 0x6c8   : > { %1210 = vset.pattern.permute.xlu1 %v1274_v61 }
 0x6c9   : > { %1129 = vmatmul.msk.bf16.vlgmr.msra.gmra.mxu3 %vm630_vm11, %v757_v10 }
 0x6ca   : > { %v1226_v21 = vpop.eup %1225 }
 0x6ea   : > { %748 = vadd.xlane.f32.xlu1 %v747_v11 }
 0x6fc   : > { %v672_v16 = vpop.xlane.xlu2 %671 }
 0x6fd   : > { %v673_v17 = vadd.f32 %v672_v16, %v669_v15 }
 0x6ff   : > { %704 = vst.msk [vmem:[#allocation3] sm:$0xff] %vm702_vm13, %v673_v17 }
 0x703   : > { %836 = vperm.xlu1 %1210, %v1224_v20  }
 0x706   : > { %v729_v36 = vld [vmem:[#allocation3] sm:$0xff] }
 0x707   : > { %v746_v37 = vmul.f32 %v1460_v46, %v729_v36 }
 0x70b   : > { %1211 = vset.pattern.permute.xlu1 %v1275_v62 }
 0x70c   : > { %919 = vperm.xlu1 %1211, %v1226_v21  }
 0x714   : > { %1212 = vset.pattern.permute.xlu1 %v1272_v18 }
 0x728   : > { %v824_v23 = vpop.permute.xlu1 %823 }
 0x729   : > { %v826_v25 = vsub.f32 %v810_v55, %v824_v23 }
 0x72b   : > { %v827_v26 = vmul.f32 1.442695, %v826_v25 }
 0x72d   : > { %1227 = vpow2.f32 %v827_v26 }
 0x732   : > { %v907_v27 = vpop.permute.xlu1 %906 }
 0x733   : > { %v1228_v28 = vpop.eup %1227  ;;  %v909_v30 = vsub.f32 %v1450_v29, %v907_v27 }
 0x734   : > { %v830_v24 = vsel %vm630_vm11, %v1228_v28, 0.0  ;;  %v840_v31 = vpack.c.bf16 %v1228_v28, %v1228_v28 }
 0x735   : > { %v910_v32 = vmul.f32 1.442695, %v909_v30  ;;  %831 = vadd.xlane.f32.xlu2 %v830_v24 }
 0x736   : > { %1131 = vmatmul.msk.bf16.vlgmr.msrb.gmra.mxu3 %vm630_vm11, %v840_v31 }
 0x737   : > { %1229 = vpow2.f32 %v910_v32 }
 0x73d   : > { %v1230_v33 = vpop.eup %1229 }
 0x73e   : > { %v923_v34 = vpack.c.bf16 %v1230_v33, %v1230_v33  ;;  %v913_v39 = vsel %vm630_vm11, %v1230_v33, 0.0 }
 0x740   : > { %1133 = vmatmul.msk.bf16.vlgmr.msrb.gmra.mxu2 %vm630_vm11, %v923_v34 }
 0x74c   : > { %v770_v18 = vpop.f32.mrf.mxu3 }
 0x74d   : > { %775 = vrot.lane.b32.xlu0 %v770_v18, %s1276_s25 }
 0x754   : > { %v772_v35 = vpop.f32.mrf.mxu3 }
 0x75d   : > { %v749_v29 = vpop.xlane.xlu1 %748 }
 0x75e   : > { %v750_v38 = vadd.f32 %v749_v29, %v746_v37 }
 0x760   : > { %781 = vst.msk [vmem:[#allocation3] sm:$0xff] %vm779_vm15, %v750_v38 }
 0x767   : > { %v812_v40 = vld [vmem:[#allocation3] sm:$0xff] }
 0x768   : > { %v829_v41 = vmul.f32 %v1224_v20, %v812_v40 }
 0x775   : > { %v837_v60 = vpop.permute.xlu1 %836 }
 0x777   : > { %914 = vadd.xlane.f32.xlu0 %v913_v39 }
 0x77e   : > { %v920_v1 = vpop.permute.xlu1 %919 }
 0x7a8   : > { %v832_v42 = vpop.xlane.xlu2 %831 }
 0x7a9   : > { %v833_v44 = vadd.f32 %v832_v42, %v829_v41 }
 0x7ab   : > { %872 = vst.msk [vmem:[#allocation3] sm:$0xff] %vm870_vm0, %v833_v44 }
 0x7b2   : > { %v895_v53 = vld [vmem:[#allocation3] sm:$0xff] }
 0x7b3   : > { %v912_v54 = vmul.f32 %v1226_v21, %v895_v53 }
 0x7b9   : > { %v861_v43 = vpop.f32.mrf.mxu3 }
 0x7ba   : > { %866 = vrot.lane.b32.xlu2 %v861_v43, %s1277_s30 }
 0x7bf   : > { %v776_v46 = vpop.permute.xlu0 %775 }
 0x7c0   : > { %v778_v49 = vadd.f32 %v776_v46, %v756_v48 }
 0x7c1   : > { %v863_v50 = vpop.f32.mrf.mxu3 }
 0x7c2   : > { %783 = vst.msk [vmem:[#allocation4] sm:$0xff] %vm782_vm2, %v778_v49 }
 0x7c3   : > { %v936_v51 = vpop.f32.mrf.mxu2 }
 0x7c4   : > { %941 = vrot.lane.b32.xlu2 %v936_v51, %s1278_s6 }
 0x7c9   : > { %v813_v59 = vld [vmem:[#allocation4] sm:$0xff] }
 0x7ca   : > { %v839_v62 = vmul.f32 %v837_v60, %v813_v59 }
 0x7cb   : > { %v938_v52 = vpop.f32.mrf.mxu2 }
 0x7ea   : > { %v915_v55 = vpop.xlane.xlu0 %914 }
 0x7eb   : > { %v916_v56 = vadd.f32 %v915_v55, %v912_v54 }
 0x7ed   : > { %947 = vst.msk [vmem:[#allocation3] sm:$0xff] %vm945_vm1, %v916_v56 }
 0x7f4   : > { %v986_v57 = vld [vmem:[#allocation3] sm:$0xff] }
 0x7f5   : > { %1231 = vrcp.f32 %v986_v57 }
 0x7fb   : > { %v1232_v58 = vpop.eup %1231 }
 0x7fc   : > { %991 = vperm.xlu0 %1214, %v1232_v58   ;;  %967 = vperm.xlu2 %1206, %v1232_v58  }
 0x7fd   : > { %955 = vperm.xlu1 %1212, %v1232_v58  }
 0x805   : > { %1213 = vset.pattern.permute.xlu1 %v1274_v61 }
 0x806   : > { %979 = vperm.xlu1 %1213, %v1232_v58  }
 0x814   : > { %v867_v63 = vpop.permute.xlu2 %866 }
 0x815   : > { %v869_v0 = vadd.f32 %v867_v63, %v839_v62 }
 0x817   : > { %874 = vst.msk [vmem:[#allocation4] sm:$0xff] %vm873_vm3, %v869_v0 }
 0x81e   : > { %v896_v2 = vld [vmem:[#allocation4] sm:$0xff]  ;;  %v942_v4 = vpop.permute.xlu2 %941 }
 0x81f   : > { %v922_v3 = vmul.f32 %v920_v1, %v896_v2 }
 0x821   : > { %v944_v5 = vadd.f32 %v942_v4, %v922_v3 }
 0x823   : > { %949 = vst.msk [vmem:[#allocation4] sm:$0xff] %vm948_vm4, %v944_v5 }
 0x82a   : > { %v964_v7 = vld [vmem:[#allocation4] sm:$0xff] }
 0x856   : > { %v968_v6 = vpop.permute.xlu2 %967 }
 0x857   : > { %v970_v61 = vmul.f32 %v968_v6, %v964_v7 }
 0x859   : > { %v971_v11 = vpack.c.bf16 %v970_v61, %v970_v61 }
 0x86e   : > { %v992_v12 = vpop.permute.xlu0 %991 }
 0x86f   : > { %v956_v8 = vpop.permute.xlu1 %955  ;;  %v994_v13 = vmul.f32 %v992_v12, %v964_v7 }
 0x870   : > { %v958_v9 = vmul.f32 %v964_v7, %v956_v8 }
 0x871   : > { %v995_v17 = vpack.c.bf16 %v994_v13, %v994_v13 }
 0x872   : > { %v959_v10 = vpack.c.bf16 %v958_v9, %v958_v9 }
 0x874   : > { %961 = vst.msk [vmem:[%s1359_s18] sm:$0xf] %vm960_vm5, %v959_v10 }
 0x875   : > { %973 = vst.msk [vmem:[%s1359_s18] sm:$0xf] %vm972_vm6, %v971_v11 }
 0x878   : > { %v980_v14 = vpop.permute.xlu1 %979 }
 0x879   : > { %v982_v15 = vmul.f32 %v980_v14, %v964_v7 }
 0x87b   : > { %v983_v16 = vpack.c.bf16 %v982_v15, %v982_v15 }
 0x87d   : > { %985 = vst.msk [vmem:[%s1359_s18] sm:$0xf] %vm984_vm7, %v983_v16 }
 0x87e   : > { %997 = vst.msk [vmem:[%s1359_s18] sm:$0xf] %vm996_vm8, %v995_v17 }
 0x87f PF: > { %s17_s24 = sadd.s32 1, %s1255_s24   ;;  %s1513_s22 = smov %s1251_s23 }
 0x880   : > { %p14_p10 = scmp.ge.s32.totalorder %s17_s24, 4   ;;  %s1514_s23 = smov %s1516_s0 }
 0x882   :  { %16 = sbr.rel (!%p14_p10) target bundleno = 3 (0x3), region = 80 }

</bundles_post_ra>
